<compile_context>
chip_gen: v6e
topology: v6e:2x2x1
jax: 0.10.0
libtpu: 0.0.40
codegen_flags: <defaults>
</compile_context>

<pallas_src>
import functools

import jax
import jax.numpy as jnp
from jax.experimental import pallas as pl
from jax.experimental.pallas import tpu as pltpu

_BN_EPS = 1e-5
_LANES = 128


def _round_up(x, m):
    return (x + m - 1) // m * m


def _gelu(x):
    # tanh-approximate GELU: lowers to the otherwise-idle EUP slot.
    # (torch nn.GELU default is exact erf; max delta ~3e-4, inside tolerance.)
    return jax.nn.gelu(x, approximate=True)


# ---------------------------------------------------------------------------
# In-kernel helpers
# ---------------------------------------------------------------------------
def _stage_h1_with_halo(h1h_ref, h1, ho, wo, cp):
    """Store h1 (f32 (M, cp)) as bf16 into a halo'd scratch (ho+2, wo+16, cp).

    Interior lives at rows [1:ho+1], cols [8:wo+8] so the store is sublane-tile
    aligned.  Only the border lines conv2's taps actually read (rows 0/ho+1,
    cols 7 and wo+8) are zeroed -- every step, which is cheap and stays correct
    if the batch grid axis is sharded across TensorCores (scratch is per-core).
    """
    zrow = jnp.zeros((1, wo + 16, cp), jnp.bfloat16)
    h1h_ref[0:1] = zrow
    h1h_ref[ho + 1:ho + 2] = zrow
    zcol = jnp.zeros((ho + 2, 8, cp), jnp.bfloat16)
    h1h_ref[:, 0:8, :] = zcol
    h1h_ref[:, wo + 8:wo + 16, :] = zcol
    h1h_ref[1:ho + 1, 8:wo + 8, :] = h1.astype(jnp.bfloat16).reshape(ho, wo, cp)


def _im2col_conv2(pcol_ref, h1h_ref, ho, wo, cp):
    """9 unstrided tap slices from the halo'd h1 scratch -> (M, 9*cp) im2col."""
    m = ho * wo
    for t in range(9):
        di, dj = t // 3, t % 3
        pcol_ref[:, t * cp:(t + 1) * cp] = (
            h1h_ref[di:di + ho, 7 + dj:7 + dj + wo, :].reshape(m, cp))


# ---------------------------------------------------------------------------
# Pallas kernels (one image per grid step)
# ---------------------------------------------------------------------------
def _identity_kernel(x_ref, w1_ref, b1_ref, w2_ref, b2_ref, o_ref,
                     h1h_ref, pcol_ref):
    """stride == 1, Cin == Cout: conv1 -> BN1 -> GELU -> conv2 -> BN2 -> +x -> GELU."""
    _, hh, ww, cp = o_ref.shape
    m = hh * ww

    # conv1 im2col straight from the spatially pre-padded bf16 input block.
    for t in range(9):
        di, dj = t // 3, t % 3
        pcol_ref[:, t * cp:(t + 1) * cp] = (
            x_ref[0, di:di + hh, dj:dj + ww, :].reshape(m, cp))
    # Single deep-K matmul (bf16 operands, f32 accumulation); BN1 folded.
    h1 = _gelu(jnp.dot(pcol_ref[...], w1_ref[...],
                       preferred_element_type=jnp.float32) + b1_ref[...])

    _stage_h1_with_halo(h1h_ref, h1, hh, ww, cp)
    _im2col_conv2(pcol_ref, h1h_ref, hh, ww, cp)

    acc = jnp.dot(pcol_ref[...], w2_ref[...], preferred_element_type=jnp.float32)
    acc = acc + b2_ref[...]
    # Identity residual: interior of the padded input (x is bf16-rounded once
    # at the HBM boundary; accumulation stays f32).
    acc = acc + x_ref[0, 1:hh + 1, 1:ww + 1, :].astype(jnp.float32).reshape(m, cp)
    o_ref[0] = _gelu(acc).reshape(hh, ww, cp).astype(o_ref.dtype)


def _downsample_kernel(stride, cin_p, x_ref, w1_ref, b1_ref, w2_ref, wd_ref,
                       b2d_ref, o_ref, h1h_ref, pcol_ref):
    """Downsample path (Cin != Cout or stride != 1); stride in {1, 2}.

    stride == 1: x_ref is the spatially padded image (1, H+2, W+2, cin_p).
    stride == 2: x_ref stacks the 4 zero-halo'd phase images x[pi::2, pj::2]
                 along the row axis: (1, 4*(HO+1), WO+1, cin_p); every stride-2
                 conv tap is then an unstrided static slice.
    """
    _, ho, wo, cout_p = o_ref.shape
    m = ho * wo

    # conv1 im2col (tap-major, channel-minor), only unstrided slices.
    for t in range(9):
        di, dj = t // 3, t % 3
        if stride == 1:
            tap = x_ref[0, di:di + ho, dj:dj + wo, :]
        else:
            p = (0 if di == 1 else 1) * 2 + (0 if dj == 1 else 1)
            rs = (0 if di == 0 else 1) + p * (ho + 1)
            cs = 0 if dj == 0 else 1
            tap = x_ref[0, rs:rs + ho, cs:cs + wo, :]
        pcol_ref[:, t * cin_p:(t + 1) * cin_p] = tap.reshape(m, cin_p)

    h1 = _gelu(jnp.dot(pcol_ref[:, :9 * cin_p], w1_ref[...],
                       preferred_element_type=jnp.float32) + b1_ref[...])

    # Residual branch: the strided 1x1 downsample conv's input is exactly the
    # centre im2col tap -- x is never re-read.  (BN of the downsample is folded
    # into wd / b2d at trace time.)
    acc = jnp.dot(pcol_ref[:, 4 * cin_p:5 * cin_p], wd_ref[...],
                  preferred_element_type=jnp.float32)

    _stage_h1_with_halo(h1h_ref, h1, ho, wo, cout_p)
    _im2col_conv2(pcol_ref, h1h_ref, ho, wo, cout_p)

    acc = acc + jnp.dot(pcol_ref[:, :9 * cout_p], w2_ref[...],
                        preferred_element_type=jnp.float32)
    o_ref[0] = _gelu(acc + b2d_ref[...]).reshape(ho, wo, cout_p).astype(o_ref.dtype)


# ---------------------------------------------------------------------------
# Glue (plain JAX): BN folding, weight layout, wrapper
# ---------------------------------------------------------------------------
def _fold_bn(bn):
    scale = bn["gamma"] * jax.lax.rsqrt(bn["var"] + _BN_EPS)
    bias = bn["beta"] - bn["mean"] * scale
    return scale, bias


def _conv3x3_matrix(w_oihw, scale, cin_p, cout_p):
    """(Cout, Cin, 3, 3) -> (9*cin_p, cout_p) bf16, BN scale folded, channels
    zero-padded to the lane width; matches the tap-major / channel-minor
    im2col layout built in the kernels."""
    cout, cin = w_oihw.shape[0], w_oihw.shape[1]
    wt = jnp.transpose(w_oihw, (2, 3, 1, 0)) * scale[None, None, None, :]
    wt = jnp.pad(wt, ((0, 0), (0, 0), (0, cin_p - cin), (0, cout_p - cout)))
    return wt.reshape(9 * cin_p, cout_p).astype(jnp.bfloat16)


def _pad_bias(b, cout, cout_p):
    return jnp.pad(b, (0, cout_p - cout)).reshape(1, cout_p).astype(jnp.float32)


def residual_block_forward(x_nchw, params, stride):
    """Inference-mode ResidualBlock forward (eval BatchNorm, no dropout)."""
    if stride not in (1, 2):
        raise NotImplementedError("only stride 1 and 2 are implemented")  # TODO(synk)

    n, cin, h, w = x_nchw.shape
    cout = params["conv1_w"].shape[0]
    hout = (h - 1) // stride + 1
    wout = (w - 1) // stride + 1
    cin_p = _round_up(cin, _LANES)
    cout_p = _round_up(cout, _LANES)
    m = hout * wout

    s1, b1 = _fold_bn(params["bn1"])
    s2, b2 = _fold_bn(params["bn2"])
    w1 = _conv3x3_matrix(params["conv1_w"], s1, cin_p, cout_p)
    w2 = _conv3x3_matrix(params["conv2_w"], s2, cout_p, cout_p)
    b1p = _pad_bias(b1, cout, cout_p)

    # NHWC (channels on lanes), zero-padded to 128 lanes, bf16 at the HBM
    # boundary (halves the dominant input stream on v5e/v6e).
    x = jnp.transpose(x_nchw, (0, 2, 3, 1))
    x = jnp.pad(x, ((0, 0), (0, 0), (0, 0), (0, cin_p - cin))).astype(jnp.bfloat16)

    cparams = pltpu.CompilerParams(
        dimension_semantics=("parallel",),
        vmem_limit_bytes=32 * 1024 * 1024)
    out_shape = jax.ShapeDtypeStruct((n, hout, wout, cout_p), x_nchw.dtype)
    out_spec = pl.BlockSpec((1, hout, wout, cout_p), lambda i: (i, 0, 0, 0))
    h1h_scratch = pltpu.VMEM((hout + 2, wout + 16, cout_p), jnp.bfloat16)

    def wspec(shape):
        return pl.BlockSpec(shape, lambda i: tuple(0 for _ in shape))

    flops = (2 * n * m * (9 * cin_p) * cout_p
             + 2 * n * m * (9 * cout_p) * cout_p)
    transcendentals = 2 * n * m * cout_p

    if params["down"] is None:                       # stride == 1 and cin == cout
        xpad = jnp.pad(x, ((0, 0), (1, 1), (1, 1), (0, 0)))   # spatial zero halo
        cost = pl.CostEstimate(
            flops=flops, transcendentals=transcendentals,
            bytes_accessed=int(xpad.size * 2 + (w1.size + w2.size) * 2
                               + n * m * cout_p * 4))
        out = pl.pallas_call(
            _identity_kernel,
            out_shape=out_shape,
            grid_spec=pltpu.PrefetchScalarGridSpec(
                num_scalar_prefetch=0,
                grid=(n,),
                in_specs=[
                    pl.BlockSpec((1, h + 2, w + 2, cin_p), lambda i: (i, 0, 0, 0)),
                    wspec((9 * cin_p, cout_p)),
                    wspec((1, cout_p)),
                    wspec((9 * cout_p, cout_p)),
                    wspec((1, cout_p)),
                ],
                out_specs=out_spec,
                scratch_shapes=[h1h_scratch,
                                pltpu.VMEM((m, 9 * cout_p), jnp.bfloat16)],
            ),
            compiler_params=cparams,
            cost_estimate=cost,
        )(xpad, w1, b1p, w2, _pad_bias(b2, cout, cout_p))
    else:
        sd, bd = _fold_bn(params["down"]["bn"])
        wd = jnp.transpose(params["down"]["conv_w"][:, :, 0, 0]) * sd[None, :]
        wd = jnp.pad(wd, ((0, cin_p - cin), (0, cout_p - cout))).astype(jnp.bfloat16)
        b2d = _pad_bias(b2 + bd, cout, cout_p)       # bn2 bias + downsample-BN bias

        if stride == 1:
            x_in = jnp.pad(x, ((0, 0), (1, 1), (1, 1), (0, 0)))
            rows = h + 2
        else:
            # 4 stride-2 phase images with a top/left zero halo, stacked along
            # the row axis: total HBM bytes == x (bf16), no 2.25x im2col blow-up.
            assert h % 2 == 0 and w % 2 == 0, "stride-2 path assumes even H, W"
            phases = []
            for pi in (0, 1):
                for pj in (0, 1):
                    ph = x[:, pi::2, pj::2, :]
                    phases.append(jnp.pad(ph, ((0, 0), (1, 0), (1, 0), (0, 0))))
            x_in = jnp.concatenate(phases, axis=1)   # (n, 4*(hout+1), wout+1, cin_p)
            rows = 4 * (hout + 1)

        cost = pl.CostEstimate(
            flops=flops + 2 * n * m * cin_p * cout_p,
            transcendentals=transcendentals,
            bytes_accessed=int(x_in.size * 2
                               + (w1.size + w2.size + wd.size) * 2
                               + n * m * cout_p * 4))
        kernel = functools.partial(_downsample_kernel, stride, cin_p)
        out = pl.pallas_call(
            kernel,
            out_shape=out_shape,
            grid_spec=pltpu.PrefetchScalarGridSpec(
                num_scalar_prefetch=0,
                grid=(n,),
                in_specs=[
                    pl.BlockSpec((1, rows, x_in.shape[2], cin_p),
                                 lambda i: (i, 0, 0, 0)),
                    wspec((9 * cin_p, cout_p)),
                    wspec((1, cout_p)),
                    wspec((9 * cout_p, cout_p)),
                    wspec((cin_p, cout_p)),
                    wspec((1, cout_p)),
                ],
                out_specs=out_spec,
                scratch_shapes=[h1h_scratch,
                                pltpu.VMEM((m, 9 * max(cin_p, cout_p)),
                                           jnp.bfloat16)],
            ),
            compiler_params=cparams,
            cost_estimate=cost,
        )(x_in, w1, b1p, w2, wd, b2d)

    out = out[..., :cout]                            # drop lane padding
    return jnp.transpose(out, (0, 3, 1, 2))          # back to NCHW


# ---------------------------------------------------------------------------
# Parameter init + pure-JAX reference (torch semantics: erf GELU, f32 convs)
# ---------------------------------------------------------------------------
def init_params(key, cin, cout, stride):
    ks = jax.random.split(key, 6)

    def bn_params(k):
        k1, k2, k3, k4 = jax.random.split(k, 4)
        return dict(
            gamma=1.0 + 0.1 * jax.random.normal(k1, (cout,), jnp.float32),
            beta=0.1 * jax.random.normal(k2, (cout,), jnp.float32),
            mean=0.1 * jax.random.normal(k3, (cout,), jnp.float32),
            var=1.0 + 0.1 * jax.random.uniform(k4, (cout,), jnp.float32),
        )

    params = dict(
        conv1_w=0.1 * jax.random.normal(ks[0], (cout, cin, 3, 3), jnp.float32),
        bn1=bn_params(ks[1]),
        conv2_w=0.1 * jax.random.normal(ks[2], (cout, cout, 3, 3), jnp.float32),
        bn2=bn_params(ks[3]),
        down=None,
    )
    if cin != cout or stride != 1:
        params["down"] = dict(
            conv_w=0.1 * jax.random.normal(ks[4], (cout, cin, 1, 1), jnp.float32),
            bn=bn_params(ks[5]),
        )
    return params


def ref_forward(x, params, stride):
    def conv(z, wgt, s, p):
        return jax.lax.conv_general_dilated(
            z, wgt, (s, s), [(p, p), (p, p)],
            dimension_numbers=("NCHW", "OIHW", "NCHW"),
            precision=jax.lax.Precision.HIGHEST)

    def bn(z, bnp):
        sc, bi = _fold_bn(bnp)
        return z * sc[None, :, None, None] + bi[None, :, None, None]

    def gelu_exact(z):
        return jax.nn.gelu(z, approximate=False)

    out = gelu_exact(bn(conv(x, params["conv1_w"], stride, 1), params["bn1"]))
    out = bn(conv(out, params["conv2_w"], 1, 1), params["bn2"])
    if params["down"] is not None:
        identity = bn(conv(x, params["down"]["conv_w"], stride, 0),
                      params["down"]["bn"])
    else:
        identity = x
    return gelu_exact(out + identity)


if __name__ == "__main__":
    key = jax.random.PRNGKey(0)

    def run_case(k, n, cin, cout, hw, stride):
        kx, kp = jax.random.split(k)
        x = jax.random.normal(kx, (n, cin, hw, hw), jnp.float32)
        params = init_params(kp, cin, cout, stride)
        fwd = jax.jit(functools.partial(residual_block_forward, stride=stride))
        out = jax.block_until_ready(fwd(x, params))
        ref = ref_forward(x, params, stride)
        assert out.shape == ref.shape, (out.shape, ref.shape)
        err = float(jnp.max(jnp.abs(out - ref)))
        # bf16 MXU operands / bf16 x at the HBM boundary -> relaxed tolerance.
        assert jnp.allclose(out, ref, rtol=5e-2, atol=5e-2), err

    k1, k2, k3 = jax.random.split(key, 3)
    run_case(k1, 2, 4, 8, 16, 2)    # downsample path: stride 2, channel expansion
    run_case(k2, 2, 8, 8, 16, 1)    # identity path:   stride 1, cin == cout
    run_case(k3, 2, 4, 8, 16, 1)    # downsample path: stride 1, cin != cout

    print("KERNEL_OK")
</pallas_src>

<mosaic_0001>
module attributes {stable_mosaic.version = 11 : i64} {
  func.func @_downsample_kernel(%arg0: i32, %arg1: memref<1x36x9x128xbf16, #tpu.memory_space<vmem>>, %arg2: memref<1152x128xbf16, #tpu.memory_space<vmem>>, %arg3: memref<1x128xf32, #tpu.memory_space<vmem>>, %arg4: memref<1152x128xbf16, #tpu.memory_space<vmem>>, %arg5: memref<128x128xbf16, #tpu.memory_space<vmem>>, %arg6: memref<1x128xf32, #tpu.memory_space<vmem>>, %arg7: memref<1x8x8x128xf32, #tpu.memory_space<vmem>>, %arg8: memref<10x24x128xbf16, #tpu.memory_space<vmem>>, %arg9: memref<64x1152xbf16, #tpu.memory_space<vmem>>) attributes {dimension_semantics = [#tpu.dimension_semantics<parallel>], iteration_bounds = array<i64: 2>, scalar_prefetch = 0 : i64, scratch_operands = 2 : i64, tpu.core_type = #tpu.core_type<tc>, window_params = [{transform_indices = @transform_0, window_bounds = array<i64: 1, 36, 9, 128>}, {pipeline_mode = #tpu.pipeline_mode<synchronous>, transform_indices = @transform_1, window_bounds = array<i64: 1152, 128>}, {pipeline_mode = #tpu.pipeline_mode<synchronous>, transform_indices = @transform_2, window_bounds = array<i64: 1, 128>}, {pipeline_mode = #tpu.pipeline_mode<synchronous>, transform_indices = @transform_3, window_bounds = array<i64: 1152, 128>}, {pipeline_mode = #tpu.pipeline_mode<synchronous>, transform_indices = @transform_4, window_bounds = array<i64: 128, 128>}, {pipeline_mode = #tpu.pipeline_mode<synchronous>, transform_indices = @transform_5, window_bounds = array<i64: 1, 128>}, {transform_indices = @transform_6, window_bounds = array<i64: 1, 8, 8, 128>}]} {
    %c0 = arith.constant 0 : index
    %c27 = arith.constant 27 : index
    %c0_0 = arith.constant 0 : index
    %c0_1 = arith.constant 0 : index
    %0 = vector.load %arg1[%c0, %c27, %c0_0, %c0_1] : memref<1x36x9x128xbf16, #tpu.memory_space<vmem>>, vector<1x8x8x128xbf16>
    %1 = vector.shape_cast %0 : vector<1x8x8x128xbf16> to vector<8x8x128xbf16>
    %2 = vector.shape_cast %1 : vector<8x8x128xbf16> to vector<64x128xbf16>
    %c0_2 = arith.constant 0 : index
    %c0_3 = arith.constant 0 : index
    %3 = vector.load %arg9[%c0_2, %c0_3] : memref<64x1152xbf16, #tpu.memory_space<vmem>>, vector<64x128xbf16>
    tpu.vector_store %arg9[%c0_2, %c0_3], %2 {strides = array<i32>} : memref<64x1152xbf16, #tpu.memory_space<vmem>>, vector<64x128xbf16>,
    %c0_4 = arith.constant 0 : index
    %c18 = arith.constant 18 : index
    %c1 = arith.constant 1 : index
    %c0_5 = arith.constant 0 : index
    %4 = vector.load %arg1[%c0_4, %c18, %c1, %c0_5] : memref<1x36x9x128xbf16, #tpu.memory_space<vmem>>, vector<1x8x8x128xbf16>
    %5 = vector.shape_cast %4 : vector<1x8x8x128xbf16> to vector<8x8x128xbf16>
    %6 = vector.shape_cast %5 : vector<8x8x128xbf16> to vector<64x128xbf16>
    %c0_6 = arith.constant 0 : index
    %c128 = arith.constant 128 : index
    %7 = vector.load %arg9[%c0_6, %c128] : memref<64x1152xbf16, #tpu.memory_space<vmem>>, vector<64x128xbf16>
    tpu.vector_store %arg9[%c0_6, %c128], %6 {strides = array<i32>} : memref<64x1152xbf16, #tpu.memory_space<vmem>>, vector<64x128xbf16>,
    %c0_7 = arith.constant 0 : index
    %c27_8 = arith.constant 27 : index
    %c1_9 = arith.constant 1 : index
    %c0_10 = arith.constant 0 : index
    %8 = vector.load %arg1[%c0_7, %c27_8, %c1_9, %c0_10] : memref<1x36x9x128xbf16, #tpu.memory_space<vmem>>, vector<1x8x8x128xbf16>
    %9 = vector.shape_cast %8 : vector<1x8x8x128xbf16> to vector<8x8x128xbf16>
    %10 = vector.shape_cast %9 : vector<8x8x128xbf16> to vector<64x128xbf16>
    %c0_11 = arith.constant 0 : index
    %c256 = arith.constant 256 : index
    %11 = vector.load %arg9[%c0_11, %c256] : memref<64x1152xbf16, #tpu.memory_space<vmem>>, vector<64x128xbf16>
    tpu.vector_store %arg9[%c0_11, %c256], %10 {strides = array<i32>} : memref<64x1152xbf16, #tpu.memory_space<vmem>>, vector<64x128xbf16>,
    %c0_12 = arith.constant 0 : index
    %c10 = arith.constant 10 : index
    %c0_13 = arith.constant 0 : index
    %c0_14 = arith.constant 0 : index
    %12 = vector.load %arg1[%c0_12, %c10, %c0_13, %c0_14] : memref<1x36x9x128xbf16, #tpu.memory_space<vmem>>, vector<1x8x8x128xbf16>
    %13 = vector.shape_cast %12 : vector<1x8x8x128xbf16> to vector<8x8x128xbf16>
    %14 = vector.shape_cast %13 : vector<8x8x128xbf16> to vector<64x128xbf16>
    %c0_15 = arith.constant 0 : index
    %c384 = arith.constant 384 : index
    %15 = vector.load %arg9[%c0_15, %c384] : memref<64x1152xbf16, #tpu.memory_space<vmem>>, vector<64x128xbf16>
    tpu.vector_store %arg9[%c0_15, %c384], %14 {strides = array<i32>} : memref<64x1152xbf16, #tpu.memory_space<vmem>>, vector<64x128xbf16>,
    %c0_16 = arith.constant 0 : index
    %c1_17 = arith.constant 1 : index
    %c1_18 = arith.constant 1 : index
    %c0_19 = arith.constant 0 : index
    %16 = vector.load %arg1[%c0_16, %c1_17, %c1_18, %c0_19] : memref<1x36x9x128xbf16, #tpu.memory_space<vmem>>, vector<1x8x8x128xbf16>
    %17 = vector.shape_cast %16 : vector<1x8x8x128xbf16> to vector<8x8x128xbf16>
    %18 = vector.shape_cast %17 : vector<8x8x128xbf16> to vector<64x128xbf16>
    %c0_20 = arith.constant 0 : index
    %c512 = arith.constant 512 : index
    %19 = vector.load %arg9[%c0_20, %c512] : memref<64x1152xbf16, #tpu.memory_space<vmem>>, vector<64x128xbf16>
    tpu.vector_store %arg9[%c0_20, %c512], %18 {strides = array<i32>} : memref<64x1152xbf16, #tpu.memory_space<vmem>>, vector<64x128xbf16>,
    %c0_21 = arith.constant 0 : index
    %c10_22 = arith.constant 10 : index
    %c1_23 = arith.constant 1 : index
    %c0_24 = arith.constant 0 : index
    %20 = vector.load %arg1[%c0_21, %c10_22, %c1_23, %c0_24] : memref<1x36x9x128xbf16, #tpu.memory_space<vmem>>, vector<1x8x8x128xbf16>
    %21 = vector.shape_cast %20 : vector<1x8x8x128xbf16> to vector<8x8x128xbf16>
    %22 = vector.shape_cast %21 : vector<8x8x128xbf16> to vector<64x128xbf16>
    %c0_25 = arith.constant 0 : index
    %c640 = arith.constant 640 : index
    %23 = vector.load %arg9[%c0_25, %c640] : memref<64x1152xbf16, #tpu.memory_space<vmem>>, vector<64x128xbf16>
    tpu.vector_store %arg9[%c0_25, %c640], %22 {strides = array<i32>} : memref<64x1152xbf16, #tpu.memory_space<vmem>>, vector<64x128xbf16>,
    %c0_26 = arith.constant 0 : index
    %c28 = arith.constant 28 : index
    %c0_27 = arith.constant 0 : index
    %c0_28 = arith.constant 0 : index
    %24 = vector.load %arg1[%c0_26, %c28, %c0_27, %c0_28] : memref<1x36x9x128xbf16, #tpu.memory_space<vmem>>, vector<1x8x8x128xbf16>
    %25 = vector.shape_cast %24 : vector<1x8x8x128xbf16> to vector<8x8x128xbf16>
    %26 = vector.shape_cast %25 : vector<8x8x128xbf16> to vector<64x128xbf16>
    %c0_29 = arith.constant 0 : index
    %c768 = arith.constant 768 : index
    %27 = vector.load %arg9[%c0_29, %c768] : memref<64x1152xbf16, #tpu.memory_space<vmem>>, vector<64x128xbf16>
    tpu.vector_store %arg9[%c0_29, %c768], %26 {strides = array<i32>} : memref<64x1152xbf16, #tpu.memory_space<vmem>>, vector<64x128xbf16>,
    %c0_30 = arith.constant 0 : index
    %c19 = arith.constant 19 : index
    %c1_31 = arith.constant 1 : index
    %c0_32 = arith.constant 0 : index
    %28 = vector.load %arg1[%c0_30, %c19, %c1_31, %c0_32] : memref<1x36x9x128xbf16, #tpu.memory_space<vmem>>, vector<1x8x8x128xbf16>
    %29 = vector.shape_cast %28 : vector<1x8x8x128xbf16> to vector<8x8x128xbf16>
    %30 = vector.shape_cast %29 : vector<8x8x128xbf16> to vector<64x128xbf16>
    %c0_33 = arith.constant 0 : index
    %c896 = arith.constant 896 : index
    %31 = vector.load %arg9[%c0_33, %c896] : memref<64x1152xbf16, #tpu.memory_space<vmem>>, vector<64x128xbf16>
    tpu.vector_store %arg9[%c0_33, %c896], %30 {strides = array<i32>} : memref<64x1152xbf16, #tpu.memory_space<vmem>>, vector<64x128xbf16>,
    %c0_34 = arith.constant 0 : index
    %c28_35 = arith.constant 28 : index
    %c1_36 = arith.constant 1 : index
    %c0_37 = arith.constant 0 : index
    %32 = vector.load %arg1[%c0_34, %c28_35, %c1_36, %c0_37] : memref<1x36x9x128xbf16, #tpu.memory_space<vmem>>, vector<1x8x8x128xbf16>
    %33 = vector.shape_cast %32 : vector<1x8x8x128xbf16> to vector<8x8x128xbf16>
    %34 = vector.shape_cast %33 : vector<8x8x128xbf16> to vector<64x128xbf16>
    %c0_38 = arith.constant 0 : index
    %c1024 = arith.constant 1024 : index
    %35 = vector.load %arg9[%c0_38, %c1024] : memref<64x1152xbf16, #tpu.memory_space<vmem>>, vector<64x128xbf16>
    tpu.vector_store %arg9[%c0_38, %c1024], %34 {strides = array<i32>} : memref<64x1152xbf16, #tpu.memory_space<vmem>>, vector<64x128xbf16>,
    %c0_39 = arith.constant 0 : index
    %c0_40 = arith.constant 0 : index
    %36 = vector.load %arg9[%c0_39, %c0_40] : memref<64x1152xbf16, #tpu.memory_space<vmem>>, vector<64x1152xbf16>
    %c0_41 = arith.constant 0 : index
    %c0_42 = arith.constant 0 : index
    %37 = vector.load %arg2[%c0_41, %c0_42] : memref<1152x128xbf16, #tpu.memory_space<vmem>>, vector<1152x128xbf16>
    %cst = arith.constant dense<0.000000e+00> : vector<64x128xf32>
    %38 = tpu.matmul %36, %37, %cst {dimension_numbers = #tpu.dot_dimension_numbers<[1], [0], [0], [1], [0, 0, 1, 1], [], []>} : vector<64x1152xbf16>, vector<1152x128xbf16>, vector<64x128xf32> -> vector<64x128xf32>
    %c0_43 = arith.constant 0 : index
    %c0_44 = arith.constant 0 : index
    %39 = vector.load %arg3[%c0_43, %c0_44] : memref<1x128xf32, #tpu.memory_space<vmem>>, vector<1x128xf32>
    %40 = vector.broadcast %39 : vector<1x128xf32> to vector<64x128xf32>
    %41 = arith.addf %38, %40 : vector<64x128xf32>
    %42 = arith.mulf %41, %41 : vector<64x128xf32>
    %43 = arith.mulf %41, %42 : vector<64x128xf32>
    %cst_45 = arith.constant 4.471500e-02 : f32
    %44 = vector.broadcast %cst_45 : f32 to vector<64x128xf32>
    %45 = arith.mulf %44, %43 : vector<64x128xf32>
    %46 = arith.addf %41, %45 : vector<64x128xf32>
    %cst_46 = arith.constant 0.797884583 : f32
    %47 = vector.broadcast %cst_46 : f32 to vector<64x128xf32>
    %48 = arith.mulf %47, %46 : vector<64x128xf32>
    %49 = math.tanh %48 : vector<64x128xf32>
    %cst_47 = arith.constant 1.000000e+00 : f32
    %50 = vector.broadcast %cst_47 : f32 to vector<64x128xf32>
    %51 = arith.addf %50, %49 : vector<64x128xf32>
    %cst_48 = arith.constant 5.000000e-01 : f32
    %52 = vector.broadcast %cst_48 : f32 to vector<64x128xf32>
    %53 = arith.mulf %52, %51 : vector<64x128xf32>
    %54 = arith.mulf %41, %53 : vector<64x128xf32>
    %c0_49 = arith.constant 0 : index
    %c512_50 = arith.constant 512 : index
    %55 = vector.load %arg9[%c0_49, %c512_50] : memref<64x1152xbf16, #tpu.memory_space<vmem>>, vector<64x128xbf16>
    %c0_51 = arith.constant 0 : index
    %c0_52 = arith.constant 0 : index
    %56 = vector.load %arg5[%c0_51, %c0_52] : memref<128x128xbf16, #tpu.memory_space<vmem>>, vector<128x128xbf16>
    %cst_53 = arith.constant dense<0.000000e+00> : vector<64x128xf32>
    %57 = tpu.matmul %55, %56, %cst_53 {dimension_numbers = #tpu.dot_dimension_numbers<[1], [0], [0], [1], [0, 0, 1, 1], [], []>} : vector<64x128xbf16>, vector<128x128xbf16>, vector<64x128xf32> -> vector<64x128xf32>
    %cst_54 = arith.constant 0.000000e+00 : bf16
    %58 = vector.broadcast %cst_54 : bf16 to vector<1x24x128xbf16>
    %c0_55 = arith.constant 0 : index
    %c0_56 = arith.constant 0 : index
    %c0_57 = arith.constant 0 : index
    %59 = vector.load %arg8[%c0_55, %c0_56, %c0_57] : memref<10x24x128xbf16, #tpu.memory_space<vmem>>, vector<1x24x128xbf16>
    tpu.vector_store %arg8[%c0_55, %c0_56, %c0_57], %58 {strides = array<i32>} : memref<10x24x128xbf16, #tpu.memory_space<vmem>>, vector<1x24x128xbf16>,
    %c9 = arith.constant 9 : index
    %c0_58 = arith.constant 0 : index
    %c0_59 = arith.constant 0 : index
    %60 = vector.load %arg8[%c9, %c0_58, %c0_59] : memref<10x24x128xbf16, #tpu.memory_space<vmem>>, vector<1x24x128xbf16>
    tpu.vector_store %arg8[%c9, %c0_58, %c0_59], %58 {strides = array<i32>} : memref<10x24x128xbf16, #tpu.memory_space<vmem>>, vector<1x24x128xbf16>,
    %cst_60 = arith.constant 0.000000e+00 : bf16
    %61 = vector.broadcast %cst_60 : bf16 to vector<10x8x128xbf16>
    %c0_61 = arith.constant 0 : index
    %c0_62 = arith.constant 0 : index
    %c0_63 = arith.constant 0 : index
    %62 = vector.load %arg8[%c0_61, %c0_62, %c0_63] : memref<10x24x128xbf16, #tpu.memory_space<vmem>>, vector<10x8x128xbf16>
    tpu.vector_store %arg8[%c0_61, %c0_62, %c0_63], %61 {strides = array<i32>} : memref<10x24x128xbf16, #tpu.memory_space<vmem>>, vector<10x8x128xbf16>,
    %c0_64 = arith.constant 0 : index
    %c16 = arith.constant 16 : index
    %c0_65 = arith.constant 0 : index
    %63 = vector.load %arg8[%c0_64, %c16, %c0_65] : memref<10x24x128xbf16, #tpu.memory_space<vmem>>, vector<10x8x128xbf16>
    tpu.vector_store %arg8[%c0_64, %c16, %c0_65], %61 {strides = array<i32>} : memref<10x24x128xbf16, #tpu.memory_space<vmem>>, vector<10x8x128xbf16>,
    %64 = arith.truncf %54 : vector<64x128xf32> to vector<64x128xbf16>
    %65 = vector.shape_cast %64 : vector<64x128xbf16> to vector<8x8x128xbf16>
    %c1_66 = arith.constant 1 : index
    %c8 = arith.constant 8 : index
    %c0_67 = arith.constant 0 : index
    %66 = vector.load %arg8[%c1_66, %c8, %c0_67] : memref<10x24x128xbf16, #tpu.memory_space<vmem>>, vector<8x8x128xbf16>
    tpu.vector_store %arg8[%c1_66, %c8, %c0_67], %65 {strides = array<i32>} : memref<10x24x128xbf16, #tpu.memory_space<vmem>>, vector<8x8x128xbf16>,
    %c0_68 = arith.constant 0 : index
    %c7 = arith.constant 7 : index
    %c0_69 = arith.constant 0 : index
    %67 = vector.load %arg8[%c0_68, %c7, %c0_69] : memref<10x24x128xbf16, #tpu.memory_space<vmem>>, vector<8x8x128xbf16>
    %68 = vector.shape_cast %67 : vector<8x8x128xbf16> to vector<64x128xbf16>
    %c0_70 = arith.constant 0 : index
    %c0_71 = arith.constant 0 : index
    %69 = vector.load %arg9[%c0_70, %c0_71] : memref<64x1152xbf16, #tpu.memory_space<vmem>>, vector<64x128xbf16>
    tpu.vector_store %arg9[%c0_70, %c0_71], %68 {strides = array<i32>} : memref<64x1152xbf16, #tpu.memory_space<vmem>>, vector<64x128xbf16>,
    %c0_72 = arith.constant 0 : index
    %c8_73 = arith.constant 8 : index
    %c0_74 = arith.constant 0 : index
    %70 = vector.load %arg8[%c0_72, %c8_73, %c0_74] : memref<10x24x128xbf16, #tpu.memory_space<vmem>>, vector<8x8x128xbf16>
    %71 = vector.shape_cast %70 : vector<8x8x128xbf16> to vector<64x128xbf16>
    %c0_75 = arith.constant 0 : index
    %c128_76 = arith.constant 128 : index
    %72 = vector.load %arg9[%c0_75, %c128_76] : memref<64x1152xbf16, #tpu.memory_space<vmem>>, vector<64x128xbf16>
    tpu.vector_store %arg9[%c0_75, %c128_76], %71 {strides = array<i32>} : memref<64x1152xbf16, #tpu.memory_space<vmem>>, vector<64x128xbf16>,
    %c0_77 = arith.constant 0 : index
    %c9_78 = arith.constant 9 : index
    %c0_79 = arith.constant 0 : index
    %73 = vector.load %arg8[%c0_77, %c9_78, %c0_79] : memref<10x24x128xbf16, #tpu.memory_space<vmem>>, vector<8x8x128xbf16>
    %74 = vector.shape_cast %73 : vector<8x8x128xbf16> to vector<64x128xbf16>
    %c0_80 = arith.constant 0 : index
    %c256_81 = arith.constant 256 : index
    %75 = vector.load %arg9[%c0_80, %c256_81] : memref<64x1152xbf16, #tpu.memory_space<vmem>>, vector<64x128xbf16>
    tpu.vector_store %arg9[%c0_80, %c256_81], %74 {strides = array<i32>} : memref<64x1152xbf16, #tpu.memory_space<vmem>>, vector<64x128xbf16>,
    %c1_82 = arith.constant 1 : index
    %c7_83 = arith.constant 7 : index
    %c0_84 = arith.constant 0 : index
    %76 = vector.load %arg8[%c1_82, %c7_83, %c0_84] : memref<10x24x128xbf16, #tpu.memory_space<vmem>>, vector<8x8x128xbf16>
    %77 = vector.shape_cast %76 : vector<8x8x128xbf16> to vector<64x128xbf16>
    %c0_85 = arith.constant 0 : index
    %c384_86 = arith.constant 384 : index
    %78 = vector.load %arg9[%c0_85, %c384_86] : memref<64x1152xbf16, #tpu.memory_space<vmem>>, vector<64x128xbf16>
    tpu.vector_store %arg9[%c0_85, %c384_86], %77 {strides = array<i32>} : memref<64x1152xbf16, #tpu.memory_space<vmem>>, vector<64x128xbf16>,
    %c1_87 = arith.constant 1 : index
    %c8_88 = arith.constant 8 : index
    %c0_89 = arith.constant 0 : index
    %79 = vector.load %arg8[%c1_87, %c8_88, %c0_89] : memref<10x24x128xbf16, #tpu.memory_space<vmem>>, vector<8x8x128xbf16>
    %80 = vector.shape_cast %79 : vector<8x8x128xbf16> to vector<64x128xbf16>
    %c0_90 = arith.constant 0 : index
    %c512_91 = arith.constant 512 : index
    %81 = vector.load %arg9[%c0_90, %c512_91] : memref<64x1152xbf16, #tpu.memory_space<vmem>>, vector<64x128xbf16>
    tpu.vector_store %arg9[%c0_90, %c512_91], %80 {strides = array<i32>} : memref<64x1152xbf16, #tpu.memory_space<vmem>>, vector<64x128xbf16>,
    %c1_92 = arith.constant 1 : index
    %c9_93 = arith.constant 9 : index
    %c0_94 = arith.constant 0 : index
    %82 = vector.load %arg8[%c1_92, %c9_93, %c0_94] : memref<10x24x128xbf16, #tpu.memory_space<vmem>>, vector<8x8x128xbf16>
    %83 = vector.shape_cast %82 : vector<8x8x128xbf16> to vector<64x128xbf16>
    %c0_95 = arith.constant 0 : index
    %c640_96 = arith.constant 640 : index
    %84 = vector.load %arg9[%c0_95, %c640_96] : memref<64x1152xbf16, #tpu.memory_space<vmem>>, vector<64x128xbf16>
    tpu.vector_store %arg9[%c0_95, %c640_96], %83 {strides = array<i32>} : memref<64x1152xbf16, #tpu.memory_space<vmem>>, vector<64x128xbf16>,
    %c2 = arith.constant 2 : index
    %c7_97 = arith.constant 7 : index
    %c0_98 = arith.constant 0 : index
    %85 = vector.load %arg8[%c2, %c7_97, %c0_98] : memref<10x24x128xbf16, #tpu.memory_space<vmem>>, vector<8x8x128xbf16>
    %86 = vector.shape_cast %85 : vector<8x8x128xbf16> to vector<64x128xbf16>
    %c0_99 = arith.constant 0 : index
    %c768_100 = arith.constant 768 : index
    %87 = vector.load %arg9[%c0_99, %c768_100] : memref<64x1152xbf16, #tpu.memory_space<vmem>>, vector<64x128xbf16>
    tpu.vector_store %arg9[%c0_99, %c768_100], %86 {strides = array<i32>} : memref<64x1152xbf16, #tpu.memory_space<vmem>>, vector<64x128xbf16>,
    %c2_101 = arith.constant 2 : index
    %c8_102 = arith.constant 8 : index
    %c0_103 = arith.constant 0 : index
    %88 = vector.load %arg8[%c2_101, %c8_102, %c0_103] : memref<10x24x128xbf16, #tpu.memory_space<vmem>>, vector<8x8x128xbf16>
    %89 = vector.shape_cast %88 : vector<8x8x128xbf16> to vector<64x128xbf16>
    %c0_104 = arith.constant 0 : index
    %c896_105 = arith.constant 896 : index
    %90 = vector.load %arg9[%c0_104, %c896_105] : memref<64x1152xbf16, #tpu.memory_space<vmem>>, vector<64x128xbf16>
    tpu.vector_store %arg9[%c0_104, %c896_105], %89 {strides = array<i32>} : memref<64x1152xbf16, #tpu.memory_space<vmem>>, vector<64x128xbf16>,
    %c2_106 = arith.constant 2 : index
    %c9_107 = arith.constant 9 : index
    %c0_108 = arith.constant 0 : index
    %91 = vector.load %arg8[%c2_106, %c9_107, %c0_108] : memref<10x24x128xbf16, #tpu.memory_space<vmem>>, vector<8x8x128xbf16>
    %92 = vector.shape_cast %91 : vector<8x8x128xbf16> to vector<64x128xbf16>
    %c0_109 = arith.constant 0 : index
    %c1024_110 = arith.constant 1024 : index
    %93 = vector.load %arg9[%c0_109, %c1024_110] : memref<64x1152xbf16, #tpu.memory_space<vmem>>, vector<64x128xbf16>
    tpu.vector_store %arg9[%c0_109, %c1024_110], %92 {strides = array<i32>} : memref<64x1152xbf16, #tpu.memory_space<vmem>>, vector<64x128xbf16>,
    %c0_111 = arith.constant 0 : index
    %c0_112 = arith.constant 0 : index
    %94 = vector.load %arg9[%c0_111, %c0_112] : memref<64x1152xbf16, #tpu.memory_space<vmem>>, vector<64x1152xbf16>
    %c0_113 = arith.constant 0 : index
    %c0_114 = arith.constant 0 : index
    %95 = vector.load %arg4[%c0_113, %c0_114] : memref<1152x128xbf16, #tpu.memory_space<vmem>>, vector<1152x128xbf16>
    %cst_115 = arith.constant dense<0.000000e+00> : vector<64x128xf32>
    %96 = tpu.matmul %94, %95, %cst_115 {dimension_numbers = #tpu.dot_dimension_numbers<[1], [0], [0], [1], [0, 0, 1, 1], [], []>} : vector<64x1152xbf16>, vector<1152x128xbf16>, vector<64x128xf32> -> vector<64x128xf32>
    %97 = arith.addf %57, %96 : vector<64x128xf32>
    %c0_116 = arith.constant 0 : index
    %c0_117 = arith.constant 0 : index
    %98 = vector.load %arg6[%c0_116, %c0_117] : memref<1x128xf32, #tpu.memory_space<vmem>>, vector<1x128xf32>
    %99 = vector.broadcast %98 : vector<1x128xf32> to vector<64x128xf32>
    %100 = arith.addf %97, %99 : vector<64x128xf32>
    %101 = arith.mulf %100, %100 : vector<64x128xf32>
    %102 = arith.mulf %100, %101 : vector<64x128xf32>
    %cst_118 = arith.constant 4.471500e-02 : f32
    %103 = vector.broadcast %cst_118 : f32 to vector<64x128xf32>
    %104 = arith.mulf %103, %102 : vector<64x128xf32>
    %105 = arith.addf %100, %104 : vector<64x128xf32>
    %cst_119 = arith.constant 0.797884583 : f32
    %106 = vector.broadcast %cst_119 : f32 to vector<64x128xf32>
    %107 = arith.mulf %106, %105 : vector<64x128xf32>
    %108 = math.tanh %107 : vector<64x128xf32>
    %cst_120 = arith.constant 1.000000e+00 : f32
    %109 = vector.broadcast %cst_120 : f32 to vector<64x128xf32>
    %110 = arith.addf %109, %108 : vector<64x128xf32>
    %cst_121 = arith.constant 5.000000e-01 : f32
    %111 = vector.broadcast %cst_121 : f32 to vector<64x128xf32>
    %112 = arith.mulf %111, %110 : vector<64x128xf32>
    %113 = arith.mulf %100, %112 : vector<64x128xf32>
    %114 = vector.shape_cast %113 : vector<64x128xf32> to vector<8x8x128xf32>
    %c0_122 = arith.constant 0 : index
    %c0_123 = arith.constant 0 : index
    %c0_124 = arith.constant 0 : index
    %c0_125 = arith.constant 0 : index
    %115 = vector.load %arg7[%c0_122, %c0_123, %c0_124, %c0_125] : memref<1x8x8x128xf32, #tpu.memory_space<vmem>>, vector<1x8x8x128xf32>
    %116 = vector.shape_cast %115 : vector<1x8x8x128xf32> to vector<8x8x128xf32>
    %117 = vector.shape_cast %114 : vector<8x8x128xf32> to vector<1x8x8x128xf32>
    tpu.vector_store %arg7[%c0_122, %c0_123, %c0_124, %c0_125], %117 {strides = array<i32>} : memref<1x8x8x128xf32, #tpu.memory_space<vmem>>, vector<1x8x8x128xf32>,
    return
  }
  func.func @transform_0(%arg0: i32) -> (i32, i32, i32, i32) {
    %c0_i32 = arith.constant 0 : i32
    %c0_i32_0 = arith.constant 0 : i32
    %c0_i32_1 = arith.constant 0 : i32
    %c0_i32_2 = arith.constant 0 : i32
    return %arg0, %c0_i32, %c0_i32_0, %c0_i32_1 : i32, i32, i32, i32
  }
  func.func @transform_1(%arg0: i32) -> (i32, i32) {
    %c0_i32 = arith.constant 0 : i32
    %c0_i32_0 = arith.constant 0 : i32
    %c0_i32_1 = arith.constant 0 : i32
    return %c0_i32, %c0_i32_0 : i32, i32
  }
  func.func @transform_2(%arg0: i32) -> (i32, i32) {
    %c0_i32 = arith.constant 0 : i32
    %c0_i32_0 = arith.constant 0 : i32
    %c0_i32_1 = arith.constant 0 : i32
    return %c0_i32, %c0_i32_0 : i32, i32
  }
  func.func @transform_3(%arg0: i32) -> (i32, i32) {
    %c0_i32 = arith.constant 0 : i32
    %c0_i32_0 = arith.constant 0 : i32
    %c0_i32_1 = arith.constant 0 : i32
    return %c0_i32, %c0_i32_0 : i32, i32
  }
  func.func @transform_4(%arg0: i32) -> (i32, i32) {
    %c0_i32 = arith.constant 0 : i32
    %c0_i32_0 = arith.constant 0 : i32
    %c0_i32_1 = arith.constant 0 : i32
    return %c0_i32, %c0_i32_0 : i32, i32
  }
  func.func @transform_5(%arg0: i32) -> (i32, i32) {
    %c0_i32 = arith.constant 0 : i32
    %c0_i32_0 = arith.constant 0 : i32
    %c0_i32_1 = arith.constant 0 : i32
    return %c0_i32, %c0_i32_0 : i32, i32
  }
  func.func @transform_6(%arg0: i32) -> (i32, i32, i32, i32) {
    %c0_i32 = arith.constant 0 : i32
    %c0_i32_0 = arith.constant 0 : i32
    %c0_i32_1 = arith.constant 0 : i32
    %c0_i32_2 = arith.constant 0 : i32
    return %arg0, %c0_i32, %c0_i32_0, %c0_i32_1 : i32, i32, i32, i32
  }
}

</mosaic_0001>

<bundles_post_ra>
// kernel: residual_block_forward.1
= control target key start
LH: loop header
LB: loop body
LE: loop exit
PB: predicated region body
PF: predicated region fallthrough
CT: control target
= control target key end

     0   :  { %s5953_s21 = smov 0   ;;  %s7708_s0 = inlined_call_operand.vmem [shape: bf16[2,36,9,128], index: 0, kind: input, shape index: {}]   ;;  %s7709_s1 = inlined_call_operand.vmem [shape: bf16[1152,128], index: 1, kind: input, shape index: {}]   ;;  %s7710_s2 = inlined_call_operand.vmem [shape: f32[1,128], index: 2, kind: input, shape index: {}]   ;;  %s7711_s3 = inlined_call_operand.vmem [shape: bf16[1152,128], index: 3, kind: input, shape index: {}]   ;;  %s7712_s4 = inlined_call_operand.vmem [shape: bf16[128,128], index: 4, kind: input, shape index: {}]   ;;  %s7713_s5 = inlined_call_operand.vmem [shape: f32[1,128], index: 5, kind: input, shape index: {}]   ;;  %s7714_s6 = inlined_call_operand.vmem [shape: f32[2,8,8,128], index: 6, kind: output, shape index: {}]  }
   0x1 LB: > { %s4774_s22 = sadd.s32 4294967295, %s5915_s21   ;;  %p4778_p0 = scmp.ge.s32.totalorder %s5915_s21, 1  ;;  %s5915_s21 = sphi %s5953_s21, %s16_s21  }
   0x2   : > { %p212_p1 = scmp.lt.s32.totalorder %s5915_s21, 3 }
   0x4   : > { %p213_p2 = pnand %p4778_p0, %p212_p1 }
   0x6   : > { %216 = sbr.rel (%p213_p2) target bundleno = 825 (0x339), region = 44 }
   0xb   : > { %v5629_v0 = vld [vmem:[%s7709_s1 + $0x78] sm:$0xff]   ;;  %v5917_v3 = vmov 0   ;;  %v5633_v5 = vld [vmem:[%s7709_s1 + $0x70] sm:$0xff]   ;;  %v5637_v9 = vld [vmem:[%s7709_s1 + $0x68] sm:$0xff]   ;;  %p242_p3 = scmp.lt.s32.totalorder %s4774_s22, 1 }
   0xc   : > { %v5630_v1 = vld [vmem:[%s7709_s1 + $0x38] sm:$0xff]   ;;  %5175 = vmatprep.subr.bf16.mxu0 %v5629_v0  ;;  %2402 = vst [vmem:[#allocation2] sm:$0xf] %v5917_v3  ;;  %2403 = vst [vmem:[#allocation2 + $0x4] sm:$0xf] %v5917_v3  ;;  %v5634_v6 = vld [vmem:[%s7709_s1 + $0x30] sm:$0xff]  }
   0xd   : > { %v5631_v2 = vld [vmem:[%s7709_s1 + $0xf8] sm:$0xff]   ;;  %2404 = vst [vmem:[#allocation2 + $0x8] sm:$0xf] %v5917_v3  ;;  %2406 = vst [vmem:[#allocation2 + $0x6c] sm:$0xf] %v5917_v3  ;;  %5176 = vmatpush3.bf16.msra.mxu0 %v5630_v1  ;;  %v5635_v7 = vld [vmem:[%s7709_s1 + $0xf0] sm:$0xff]  }
   0xe   : > { %2407 = vst [vmem:[#allocation2 + $0x70] sm:$0xf] %v5917_v3  ;;  %2408 = vst [vmem:[#allocation2 + $0x74] sm:$0xf] %v5917_v3  ;;  %v5632_v4 = vld [vmem:[%s7709_s1 + $0xb8] sm:$0xff]   ;;  %5215 = vmatprep.subr.bf16.mxu1 %v5631_v2  ;;  %5177 = vmatprep.subr.bf16.mxu0 %v5633_v5  ;;  %v5636_v8 = vld [vmem:[%s7709_s1 + $0xb0] sm:$0xff]  }
   0xf   : > { %2410 = vst [vmem:[#allocation2 + $0xc] sm:$0xf] %v5917_v3  ;;  %2411 = vst [vmem:[#allocation2 + $0x18] sm:$0xf] %v5917_v3  ;;  %5216 = vmatpush3.bf16.msra.mxu1 %v5632_v4  ;;  %v5638_v10 = vld [vmem:[%s7709_s1 + $0x28] sm:$0xff]   ;;  %v5641_v13 = vld [vmem:[%s7709_s1 + $0x60] sm:$0xff]  }
  0x10   : > { %2412 = vst [vmem:[#allocation2 + $0x24] sm:$0xf] %v5917_v3  ;;  %2413 = vst [vmem:[#allocation2 + $0x30] sm:$0xf] %v5917_v3  ;;  %5217 = vmatprep.subr.bf16.mxu1 %v5635_v7  ;;  %v5639_v11 = vld [vmem:[%s7709_s1 + $0xe8] sm:$0xff]   ;;  %v5642_v14 = vld [vmem:[%s7709_s1 + $0x20] sm:$0xff]  }
  0x11   : > { %2414 = vst [vmem:[#allocation2 + $0x3c] sm:$0xf] %v5917_v3  ;;  %2415 = vst [vmem:[#allocation2 + $0x48] sm:$0xf] %v5917_v3  ;;  %5178 = vmatpush3.bf16.msra.mxu0 %v5634_v6  ;;  %v5640_v12 = vld [vmem:[%s7709_s1 + $0xa8] sm:$0xff]   ;;  %v5643_v15 = vld [vmem:[%s7709_s1 + $0xe0] sm:$0xff]  }
  0x12   : > { %2416 = vst [vmem:[#allocation2 + $0x54] sm:$0xf] %v5917_v3  ;;  %2417 = vst [vmem:[#allocation2 + $0x60] sm:$0xf] %v5917_v3  ;;  %5179 = vmatprep.subr.bf16.mxu0 %v5637_v9  ;;  %v5644_v16 = vld [vmem:[%s7709_s1 + $0xa0] sm:$0xff]   ;;  %v5645_v17 = vld [vmem:[%s7709_s1 + $0x58] sm:$0xff]  }
  0x13   : > { %2420 = vst [vmem:[#allocation2 + $0x14] sm:$0xf] %v5917_v3  ;;  %2421 = vst [vmem:[#allocation2 + $0x20] sm:$0xf] %v5917_v3  ;;  %5218 = vmatpush3.bf16.msra.mxu1 %v5636_v8  ;;  %v5646_v18 = vld [vmem:[%s7709_s1 + $0x18] sm:$0xff]   ;;  %v5649_v21 = vld [vmem:[%s7709_s1 + $0x50] sm:$0xff]  }
  0x14   : > { %2422 = vst [vmem:[#allocation2 + $0x2c] sm:$0xf] %v5917_v3  ;;  %2423 = vst [vmem:[#allocation2 + $0x38] sm:$0xf] %v5917_v3  ;;  %5219 = vmatprep.subr.bf16.mxu1 %v5639_v11  ;;  %v5647_v19 = vld [vmem:[%s7709_s1 + $0xd8] sm:$0xff]   ;;  %s7883_s22 = smov (!%p242_p3, %s4774_s22), 1 }
  0x15   : > { %2424 = vst [vmem:[#allocation2 + $0x44] sm:$0xf] %v5917_v3  ;;  %2425 = vst [vmem:[#allocation2 + $0x50] sm:$0xf] %v5917_v3  ;;  %5180 = vmatpush3.bf16.msra.mxu0 %v5638_v10  ;;  %v5648_v20 = vld [vmem:[%s7709_s1 + $0x98] sm:$0xff]   ;;  %v5650_v22 = vld [vmem:[%s7709_s1 + $0x10] sm:$0xff]  }
  0x16   : > { %2426 = vst [vmem:[#allocation2 + $0x5c] sm:$0xf] %v5917_v3  ;;  %2427 = vst [vmem:[#allocation2 + $0x68] sm:$0xf] %v5917_v3  ;;  %5181 = vmatprep.subr.bf16.mxu0 %v5641_v13  ;;  %v5651_v23 = vld [vmem:[%s7709_s1 + $0xd0] sm:$0xff]   ;;  %v5653_v25 = vld [vmem:[%s7709_s1 + $0x48] sm:$0xff]  }
  0x17   : > { %2409 = vst [vmem:[#allocation2] sm:$0xf] %v5917_v3  ;;  %2418 = vst [vmem:[#allocation2 + $0x6c] sm:$0xf] %v5917_v3  ;;  %5220 = vmatpush3.bf16.msra.mxu1 %v5640_v12  ;;  %v5652_v24 = vld [vmem:[%s7709_s1 + $0x90] sm:$0xff]   ;;  %s5619_s29 = smul.u32 288, %s7883_s22 }
  0x18   : > { %2419 = vst [vmem:[#allocation2 + $0x8] sm:$0xf] %v5917_v3  ;;  %2428 = vst [vmem:[#allocation2 + $0x74] sm:$0xf] %v5917_v3  ;;  %5221 = vmatprep.subr.bf16.mxu1 %v5643_v15  ;;  %v5654_v26 = vld [vmem:[%s7709_s1 + $0x8] sm:$0xff]   ;;  %v5657_v29 = vld [vmem:[%s7709_s1 + $0x40] sm:$0xff]  }
  0x19   : > { %5182 = vmatpush3.bf16.msra.mxu0 %v5642_v14  ;;  %v5655_v27 = vld [vmem:[%s7709_s1 + $0xc8] sm:$0xff]   ;;  %s6058_s16 = scalar_lea.vmem %s7708_s0, %s5619_s29  ;;  %v5658_v30 = vld [vmem:[%s7709_s1] sm:$0xff]   ;;  %vm287_vm0 = vsmask.f32 3328  ;;  %vm288_vm1 = vsmask.f32 7440 }
  0x1a   : > { %5183 = vmatprep.subr.bf16.mxu0 %v5645_v17  ;;  %v5656_v28 = vld [vmem:[%s7709_s1 + $0x88] sm:$0xff]   ;;  %v5659_v31 = vld [vmem:[%s7709_s1 + $0xc0] sm:$0xff]   ;;  %v4782_v32 = vld [vmem:[%s6058_s16 + $0xd8] sm:$0xf]  ;;  %vm2486_vm2 = vsmask.f32 256 }
  0x1b   : > { %5222 = vmatpush3.bf16.msra.mxu1 %v5644_v16  ;;  %v4783_v33 = vld [vmem:[%s6058_s16 + $0xe0] sm:$0xf]  ;;  %v4790_v34 = vld [vmem:[%s6058_s16 + $0x90] sm:$0xf]  ;;  %262 = vst [vmem:[#allocation3] sm:$0xf] %v4782_v32  ;;  %vm6073_vm3 = vmor %vm287_vm0, %vm288_vm1 }
  0x1c   : > { %5223 = vmatprep.subr.bf16.mxu1 %v5647_v19  ;;  %263 = vst [vmem:[#allocation3 + $0x24] sm:$0xf] %v4783_v33  ;;  %v4791_v35 = vld [vmem:[%s6058_s16 + $0x94] sm:$0x1]  ;;  %v4792_v36 = vld [vmem:[%s6058_s16 + $0x98] sm:$0xf] }
  0x1d   : > { %5184 = vmatpush3.bf16.msra.mxu0 %v5646_v18  ;;  %v4793_v37 = vld [vmem:[%s6058_s16 + $0x9c] sm:$0x1]  ;;  %v291_v38 = vshrl.u32 %v4790_v34, 16  ;;  %v294_v39 = vshll.u32 %v4790_v34, 16  ;;  %v300_v40 = vshll.u32 %v4791_v35, 16  ;;  %v305_v41 = vshrl.u32 %v4792_v36, 16 }
  0x1e   : > { %5185 = vmatprep.subr.bf16.mxu0 %v5649_v21  ;;  %v308_v42 = vshll.u32 %v4792_v36, 16  ;;  %v314_v43 = vshll.u32 %v4793_v37, 16  ;;  %v2471_v46 = vld [vmem:[#allocation2 + $0x4] sm:$0xf]  ;;  %v2470_v49 = vld [vmem:[#allocation2] sm:$0x8] }
  0x1f   : > { %5224 = vmatpush3.bf16.msra.mxu1 %v5648_v20  ;;  %v293_v44 = vrot.slane %v291_v38, 4  ;;  %v296_v45 = vrot.slane %v294_v39, 5  ;;  %v307_v47 = vrot.slane %v305_v41, 4  ;;  %v302_v51 = vrot.slane %v300_v40, 5  ;;  %v5662_v56 = vld [vmem:[%s7709_s1 + $0x80] sm:$0xff]   ;;  %v5663_v60 = vld [vmem:[%s7709_s1 + $0x178] sm:$0xff]  }
  0x20   : > { %5225 = vmatprep.subr.bf16.mxu1 %v5651_v23  ;;  %v310_v48 = vrot.slane %v308_v42, 5  ;;  %v2495_v52 = vshrl.u32 %v2471_v46, 16  ;;  %v316_v55 = vrot.slane %v314_v43, 5  ;;  %vm2487_vm4 = vsmask.f32 4368  ;;  %v5667_v9 = vld [vmem:[%s7709_s1 + $0x1f8] sm:$0xff]  }
  0x21   : > { %5186 = vmatpush3.bf16.msra.mxu0 %v5650_v22  ;;  %v297_v50 = vor.u32 %v296_v45, %v293_v44  ;;  %v2490_v58 = vshrl.u32 %v2470_v49, 16  ;;  %v2498_v59 = vshll.u32 %v2471_v46, 16  ;;  %v4806_v63 = vld [vmem:[%s6058_s16 + $0xd8] sm:$0xf]  ;;  %v4807_v1 = vld [vmem:[%s6058_s16 + $0xdc] sm:$0x1]  ;;  %vm6098_vm5 = vmor %vm2486_vm2, %vm2487_vm4 }
  0x22   : > { %5187 = vmatprep.subr.bf16.mxu0 %v5653_v25  ;;  %v311_v54 = vor.u32 %v310_v48, %v307_v47  ;;  %v2497_v62 = vrot.slane %v2495_v52, 7  ;;  %v4808_v2 = vld [vmem:[%s6058_s16 + $0xe0] sm:$0xf]  ;;  %v4809_v3 = vld [vmem:[%s6058_s16 + $0xe4] sm:$0x1]  ;;  %v435_v5 = vshrl.u32 %v4806_v63, 16 }
  0x23   : > { %5226 = vmatpush3.bf16.msra.mxu1 %v5652_v24  ;;  %v298_v57 = vrot.slane %v297_v50, 4  ;;  %v438_v6 = vshll.u32 %v4806_v63, 16  ;;  %v444_v7 = vshll.u32 %v4807_v1, 16  ;;  %v4822_v8 = vld [vmem:[%s6058_s16 + $0x50] sm:$0xf]  ;;  %v449_v10 = vshrl.u32 %v4808_v2, 16 }
  0x24   : > { %5227 = vmatprep.subr.bf16.mxu1 %v5655_v27  ;;  %v312_v61 = vrot.slane %v311_v54, 4  ;;  %v452_v11 = vshll.u32 %v4808_v2, 16  ;;  %v458_v12 = vshll.u32 %v4809_v3, 16  ;;  %v4823_v13 = vld [vmem:[%s6058_s16 + $0x58] sm:$0xf]  ;;  %v5019_v14 = vrot.slane %v2490_v58, 11 }
  0x25   : > { %5188 = vmatpush3.bf16.msra.mxu0 %v5654_v26  ;;  %v303_v0 = vsel %vm6073_vm3, %v298_v57, %v302_v51  ;;  %571 = vst [vmem:[#allocation3 + $0xc] sm:$0xf] %v4822_v8  ;;  %v2500_v15 = vor.u32 %v2498_v59, %v2497_v62  ;;  %v437_v16 = vrot.slane %v435_v5, 4  ;;  %v440_v17 = vrot.slane %v438_v6, 5  ;;  %572 = vst [vmem:[#allocation3 + $0x30] sm:$0xf] %v4823_v13 }
  0x26   : > { %5189 = vmatprep.subr.bf16.mxu0 %v5657_v29  ;;  %v317_v4 = vsel %vm6073_vm3, %v312_v61, %v316_v55  ;;  %410 = vst [vmem:[#allocation3 + $0x4] sm:$0xf] %v303_v0  ;;  %v2625_v18 = vld [vmem:[#allocation2 + $0x4] sm:$0xf]  ;;  %v451_v19 = vrot.slane %v449_v10, 4  ;;  %v454_v20 = vrot.slane %v452_v11, 5 }
  0x27   : > { %5228 = vmatpush3.bf16.msra.mxu1 %v5656_v28  ;;  %411 = vst [vmem:[#allocation3 + $0x28] sm:$0xf] %v317_v4  ;;  %v2626_v21 = vld [vmem:[#allocation2 + $0x8] sm:$0x1]  ;;  %v2642_v22 = vshrl.u32 %v2625_v18, 16  ;;  %v441_v24 = vor.u32 %v440_v17, %v437_v16  ;;  %v446_v25 = vrot.slane %v444_v7, 5 }
  0x28   : > { %5229 = vmatprep.subr.bf16.mxu1 %v5659_v31  ;;  %v2609_v23 = vld [vmem:[#allocation2 + $0x4] sm:$0xf]  ;;  %v2645_v26 = vshll.u32 %v2625_v18, 16  ;;  %v455_v28 = vor.u32 %v454_v20, %v451_v19  ;;  %v460_v29 = vrot.slane %v458_v12, 5  ;;  %v2501_v31 = vsel %vm6098_vm5, %v5019_v14, %v2500_v15  ;;  %v5666_v35 = vld [vmem:[%s7709_s1 + $0x138] sm:$0xff]   ;;  %v5669_v38 = vld [vmem:[%s7709_s1 + $0x170] sm:$0xff]  }
  0x29   : > { %5190 = vmatpush3.bf16.msra.mxu0 %v5658_v30  ;;  %v2644_v30 = vrot.slane %v2642_v22, 4  ;;  %v442_v32 = vrot.slane %v441_v24, 4  ;;  %v2651_v34 = vshll.u32 %v2626_v21, 16  ;;  %v5670_v47 = vld [vmem:[%s7709_s1 + $0x130] sm:$0xff]   ;;  %v4784_v48 = vld [vmem:[%s6058_s16 + $0xe8] sm:$0xf] }
  0x2a   : > { %5255 = vmatprep.subr.bf16.mxu0 %v5663_v60  ;;  %v2647_v33 = vrot.slane %v2645_v26, 5  ;;  %v456_v37 = vrot.slane %v455_v28, 4  ;;  %v4785_v49 = vld [vmem:[%s6058_s16 + $0xf0] sm:$0xf]  ;;  %264 = vst [vmem:[#allocation3 + $0x48] sm:$0xf] %v4784_v48 }
  0x2b   : > { %5230 = vmatpush3.bf16.msra.mxu1 %v5662_v56  ;;  %v447_v41 = vsel %vm6073_vm3, %v442_v32, %v446_v25  ;;  %v2653_v46 = vrot.slane %v2651_v34, 5  ;;  %v4794_v50 = vld [vmem:[%s6058_s16 + $0xa0] sm:$0xf]  ;;  %v4795_v51 = vld [vmem:[%s6058_s16 + $0xa4] sm:$0x1]  ;;  %v5668_v0 = vld [vmem:[%s7709_s1 + $0x1b8] sm:$0xff]  }
  0x2c   : > { %5295 = vmatprep.subr.bf16.mxu1 %v5667_v9  ;;  %v2648_v42 = vor.u32 %v2647_v33, %v2644_v30  ;;  %v461_v44 = vsel %vm6073_vm3, %v456_v37, %v460_v29  ;;  %554 = vst [vmem:[#allocation3 + $0x8] sm:$0xf] %v447_v41  ;;  %265 = vst [vmem:[#allocation3 + $0x6c] sm:$0xf] %v4785_v49  ;;  %v4796_v52 = vld [vmem:[%s6058_s16 + $0xa8] sm:$0xf] }
  0x2d   : > { %v1174_v36 = vld [vmem:[#allocation3] sm:$0xff]  ;;  %555 = vst [vmem:[#allocation3 + $0x2c] sm:$0xf] %v461_v44  ;;  %v4797_v54 = vld [vmem:[%s6058_s16 + $0xac] sm:$0x1]  ;;  %v319_v55 = vshrl.u32 %v4794_v50, 16 }
  0x2e   : > { %v1179_v39 = vld [vmem:[#allocation3 + $0x24] sm:$0xff]  ;;  %2601 = vst [vmem:[#allocation3] sm:$0xf] %v2501_v31  ;;  %v2649_v45 = vrot.slane %v2648_v42, 4  ;;  %v322_v56 = vshll.u32 %v4794_v50, 16  ;;  %v328_v57 = vshll.u32 %v4795_v51, 16 }
  0x2f   : > { %v5660_v40 = vld [vmem:[#allocation3 + $0x4] ss:$36 sps:$4 sm:$0xff]   ;;  %v4903_v43 = vcombine.low %v1174_v36, %v1179_v39  ;;  %v333_v58 = vshrl.u32 %v4796_v52, 16  ;;  %v336_v59 = vshll.u32 %v4796_v52, 16  ;;  %v342_v60 = vshll.u32 %v4797_v54, 16  ;;  %v5671_v4 = vld [vmem:[%s7709_s1 + $0x1f0] sm:$0xff]  }
  0x30   : > { %2617 = vst [vmem:[#allocation3 + $0x4] sm:$0xf] %v2609_v23  ;;  %2013 = vmatprep.mubr.bf16.mxu0 %v5660_v40  ;;  %v321_v61 = vrot.slane %v319_v55, 4  ;;  %v324_v62 = vrot.slane %v322_v56, 5  ;;  %v2654_v63 = vsel %vm6073_vm3, %v2649_v45, %v2653_v46  ;;  %v330_v6 = vrot.slane %v328_v57, 5  ;;  %v5676_v8 = vld [vmem:[%s7709_s1 + $0x168] sm:$0xff]  }
  0x31   : > { %2014 = vmatmul.mubr.bf16.vlgmr.msra.gmra.mxu0 %v4903_v43  ;;  %v335_v1 = vrot.slane %v333_v58, 4  ;;  %v338_v2 = vrot.slane %v336_v59, 5  ;;  %v344_v7 = vrot.slane %v342_v60, 5  ;;  %v4810_v9 = vld [vmem:[%s6058_s16 + $0xe8] sm:$0xf]  ;;  %v5674_v33 = vld [vmem:[%s7709_s1 + $0x1b0] sm:$0xff]  }
  0x32   : > { %5256 = vmatpush3.bf16.msra.mxu0 %v5666_v35  ;;  %v325_v5 = vor.u32 %v324_v62, %v321_v61  ;;  %v5664_v11 = vld [vmem:[#allocation3 + $0xc] ss:$36 sps:$4 sm:$0xff]   ;;  %v4811_v13 = vld [vmem:[%s6058_s16 + $0xec] sm:$0x1]  ;;  %v463_v14 = vshrl.u32 %v4810_v9, 16  ;;  %v466_v19 = vshll.u32 %v4810_v9, 16 }
  0x33   : > { %5257 = vmatprep.subr.bf16.mxu0 %v5669_v38  ;;  %v1175_v3 = vld [vmem:[#allocation3 + $0x8] sm:$0xff]  ;;  %v339_v12 = vor.u32 %v338_v2, %v335_v1  ;;  %v4812_v17 = vld [vmem:[%s6058_s16 + $0xf0] sm:$0xf]  ;;  %v4813_v18 = vld [vmem:[%s6058_s16 + $0xf4] sm:$0x1]  ;;  %2078 = vmatprep.mubr.bf16.mxu1 %v5664_v11  ;;  %v472_v22 = vshll.u32 %v4811_v13, 16 }
  0x34   : > { %v1180_v10 = vld [vmem:[#allocation3 + $0x2c] sm:$0xff]  ;;  %2761 = vst [vmem:[#allocation3 + $0x8] sm:$0xf] %v2654_v63  ;;  %v326_v16 = vrot.slane %v325_v5, 4  ;;  %v465_v21 = vrot.slane %v463_v14, 4  ;;  %v477_v23 = vshrl.u32 %v4812_v17, 16 }
  0x35   : > { %v4905_v15 = vcombine.low %v1175_v3, %v1180_v10  ;;  %v340_v20 = vrot.slane %v339_v12, 4  ;;  %v4824_v24 = vld [vmem:[%s6058_s16 + $0x60] sm:$0xf]  ;;  %v468_v26 = vrot.slane %v466_v19, 5  ;;  %v480_v28 = vshll.u32 %v4812_v17, 16  ;;  %v5679_v31 = vld [vmem:[%s7709_s1 + $0x128] sm:$0xff]  }
  0x36   : > { %5258 = vmatpush3.bf16.msra.mxu0 %v5670_v47  ;;  %v331_v25 = vsel %vm6073_vm3, %v326_v16, %v330_v6  ;;  %v486_v29 = vshll.u32 %v4813_v18, 16  ;;  %v4825_v30 = vld [vmem:[%s6058_s16 + $0x68] sm:$0xf]  ;;  %573 = vst [vmem:[#allocation3 + $0x54] sm:$0xf] %v4824_v24  ;;  %v479_v34 = vrot.slane %v477_v23, 4 }
  0x37   : > { %5259 = vmatprep.subr.bf16.mxu0 %v5676_v8  ;;  %2079 = vmatmul.mubr.bf16.vlgmr.msra.gmra.mxu1 %v4905_v15  ;;  %v345_v32 = vsel %vm6073_vm3, %v340_v20, %v344_v7  ;;  %412 = vst [vmem:[#allocation3 + $0x4c] sm:$0xf] %v331_v25  ;;  %574 = vst [vmem:[#allocation3 + $0x78] sm:$0xf] %v4825_v30  ;;  %v469_v35 = vor.u32 %v468_v26, %v465_v21  ;;  %v474_v36 = vrot.slane %v472_v22, 5  ;;  %v5681_v39 = vld [vmem:[%s7709_s1 + $0x1e8] sm:$0xff]  }
  0x38   : > { %5296 = vmatpush3.bf16.msra.mxu1 %v5668_v0  ;;  %413 = vst [vmem:[#allocation3 + $0x70] sm:$0xf] %v345_v32  ;;  %v482_v37 = vrot.slane %v480_v28, 5  ;;  %v488_v38 = vrot.slane %v486_v29, 5  ;;  %v5682_v42 = vld [vmem:[%s7709_s1 + $0x1a8] sm:$0xff]   ;;  %v5683_v43 = vld [vmem:[%s7709_s1 + $0x160] sm:$0xff]  }
  0x39   : > { %5297 = vmatprep.subr.bf16.mxu1 %v5671_v4  ;;  %v470_v40 = vrot.slane %v469_v35, 4  ;;  %v5684_v46 = vld [vmem:[%s7709_s1 + $0x120] sm:$0xff]   ;;  %v4786_v48 = vld [vmem:[%s6058_s16 + $0xf8] sm:$0xf]  ;;  %v4798_v51 = vld [vmem:[%s6058_s16 + $0xb0] sm:$0xf] }
  0x3a   : > { %5260 = vmatpush3.bf16.msra.mxu0 %v5679_v31  ;;  %v483_v41 = vor.u32 %v482_v37, %v479_v34  ;;  %v5685_v47 = vld [vmem:[%s7709_s1 + $0x1e0] sm:$0xff]   ;;  %266 = vst [vmem:[#allocation3 + $0x90] sm:$0xf] %v4786_v48  ;;  %v4799_v52 = vld [vmem:[%s6058_s16 + $0xb4] sm:$0x1]  ;;  %v347_v56 = vshrl.u32 %v4798_v51, 16 }
  0x3b   : > { %v475_v44 = vsel %vm6073_vm3, %v470_v40, %v474_v36  ;;  %5261 = vmatprep.subr.bf16.mxu0 %v5683_v43  ;;  %v4787_v49 = vld [vmem:[%s6058_s16 + $0x100] sm:$0xf]  ;;  %v4800_v57 = vld [vmem:[%s6058_s16 + $0xb8] sm:$0xf]  ;;  %v4801_v58 = vld [vmem:[%s6058_s16 + $0xbc] sm:$0x1] }
  0x3c   : > { %5298 = vmatpush3.bf16.msra.mxu1 %v5674_v33  ;;  %v484_v45 = vrot.slane %v483_v41, 4  ;;  %556 = vst [vmem:[#allocation3 + $0x50] sm:$0xf] %v475_v44  ;;  %267 = vst [vmem:[#allocation3 + $0xb4] sm:$0xf] %v4787_v49  ;;  %v350_v59 = vshll.u32 %v4798_v51, 16 }
  0x3d   : > { %5299 = vmatprep.subr.bf16.mxu1 %v5681_v39  ;;  %v5675_v55 = vld [vmem:[#allocation3 + $0x48] ss:$36 sps:$4 sm:$0xff]   ;;  %v356_v60 = vshll.u32 %v4799_v52, 16  ;;  %v349_v61 = vrot.slane %v347_v56, 4  ;;  %v361_v62 = vshrl.u32 %v4800_v57, 16  ;;  %v364_v63 = vshll.u32 %v4800_v57, 16 }
  0x3e   : > { %v489_v50 = vsel %vm6073_vm3, %v484_v45, %v488_v38  ;;  %5262 = vmatpush3.bf16.msra.mxu0 %v5684_v46  ;;  %v370_v0 = vshll.u32 %v4801_v58, 16  ;;  %v352_v1 = vrot.slane %v350_v59, 5  ;;  %v5688_v2 = vld [vmem:[%s7709_s1 + $0x1a0] sm:$0xff]   ;;  %v5690_v3 = vld [vmem:[%s7709_s1 + $0x158] sm:$0xff]   ;;  %v5677_v15 = vld [vmem:[#allocation3 + $0x54] ss:$36 sps:$4 sm:$0xff]  }
  0x3f   : > { %v5672_v54 = vld [vmem:[#allocation3 + $0x4c] ss:$36 sps:$4 sm:$0xff]   ;;  %557 = vst [vmem:[#allocation3 + $0x74] sm:$0xf] %v489_v50  ;;  %v358_v4 = vrot.slane %v356_v60, 5  ;;  %v363_v5 = vrot.slane %v361_v62, 4  ;;  %5263 = vmatprep.subr.bf16.mxu0 %v5690_v3  ;;  %2086 = vmatprep.mubr.bf16.mxu1 %v5677_v15 }
  0x40   : > { %5300 = vmatpush3.bf16.msra.mxu1 %v5682_v42  ;;  %2021 = vmatprep.mubr.bf16.mxu0 %v5672_v54  ;;  %v366_v6 = vrot.slane %v364_v63, 5  ;;  %v5693_v7 = vld [vmem:[%s7709_s1 + $0x118] sm:$0xff]   ;;  %v353_v8 = vor.u32 %v352_v1, %v349_v61  ;;  %v372_v9 = vrot.slane %v370_v0, 5  ;;  %v4816_v13 = vld [vmem:[%s6058_s16 + $0x100] sm:$0xf]  ;;  %v5697_v38 = vld [vmem:[%s7709_s1 + $0x150] sm:$0xff]  }
  0x41   : > { %5301 = vmatprep.subr.bf16.mxu1 %v5685_v47  ;;  %2022 = vmatmul.mubr.bf16.gmra.mxu0 %v5675_v55  ;;  %v4814_v10 = vld [vmem:[%s6058_s16 + $0xf8] sm:$0xf]  ;;  %v4815_v12 = vld [vmem:[%s6058_s16 + $0xfc] sm:$0x1]  ;;  %v4817_v14 = vld [vmem:[%s6058_s16 + $0x104] sm:$0x1] }
  0x42   : > { %v367_v11 = vor.u32 %v366_v6, %v363_v5  ;;  %5264 = vmatpush3.bf16.msra.mxu0 %v5693_v7  ;;  %v354_v17 = vrot.slane %v353_v8, 4  ;;  %v491_v19 = vshrl.u32 %v4814_v10, 16  ;;  %v494_v20 = vshll.u32 %v4814_v10, 16  ;;  %v4826_v22 = vld [vmem:[%s6058_s16 + $0x70] sm:$0xf]  ;;  %v5695_v29 = vld [vmem:[%s7709_s1 + $0x1d8] sm:$0xff]  }
  0x43   : > { %v500_v21 = vshll.u32 %v4815_v12, 16  ;;  %v505_v24 = vshrl.u32 %v4816_v13, 16  ;;  %v508_v25 = vshll.u32 %v4816_v13, 16  ;;  %v514_v26 = vshll.u32 %v4817_v14, 16  ;;  %v4827_v28 = vld [vmem:[%s6058_s16 + $0x78] sm:$0xf]  ;;  %5265 = vmatprep.subr.bf16.mxu0 %v5697_v38 }
  0x44   : > { %5302 = vmatpush3.bf16.msra.mxu1 %v5688_v2  ;;  %v368_v18 = vrot.slane %v367_v11, 4  ;;  %v359_v23 = vsel %vm6073_vm3, %v354_v17, %v358_v4  ;;  %575 = vst [vmem:[#allocation3 + $0x9c] sm:$0xf] %v4826_v22  ;;  %v493_v31 = vrot.slane %v491_v19, 4  ;;  %v496_v32 = vrot.slane %v494_v20, 5  ;;  %v5696_v34 = vld [vmem:[%s7709_s1 + $0x198] sm:$0xff]  }
  0x45   : > { %414 = vst [vmem:[#allocation3 + $0x94] sm:$0xf] %v359_v23  ;;  %v502_v33 = vrot.slane %v500_v21, 5  ;;  %576 = vst [vmem:[#allocation3 + $0xc0] sm:$0xf] %v4827_v28  ;;  %v507_v35 = vrot.slane %v505_v24, 4  ;;  %5303 = vmatprep.subr.bf16.mxu1 %v5695_v29 }
  0x46   : > { %v5680_v16 = vld [vmem:[#allocation3 + $0x50] ss:$36 sps:$4 sm:$0xff]   ;;  %v373_v30 = vsel %vm6073_vm3, %v368_v18, %v372_v9  ;;  %v510_v36 = vrot.slane %v508_v25, 5  ;;  %v516_v37 = vrot.slane %v514_v26, 5  ;;  %v497_v39 = vor.u32 %v496_v32, %v493_v31  ;;  %v5698_v42 = vld [vmem:[%s7709_s1 + $0x110] sm:$0xff]   ;;  %v5843_v53 = vld [vmem:[%s7711_s3 + $0x180] sm:$0xff]  }
  0x47   : > { %2087 = vmatmul.mubr.bf16.gmra.mxu1 %v5680_v16  ;;  %415 = vst [vmem:[#allocation3 + $0xb8] sm:$0xf] %v373_v30  ;;  %v5699_v44 = vld [vmem:[%s7709_s1 + $0x1d0] sm:$0xff]   ;;  %5266 = vmatpush3.bf16.msra.mxu0 %v5698_v42  ;;  %v4788_v46 = vld [vmem:[%s6058_s16 + $0x108] sm:$0xf]  ;;  %s5166_s30 = sshll.u32 %s7883_s22, 6 }
  0x48   : > { %5304 = vmatpush3.bf16.msra.mxu1 %v5696_v34  ;;  %v511_v40 = vor.u32 %v510_v36, %v507_v35  ;;  %v498_v41 = vrot.slane %v497_v39, 4  ;;  %v4789_v47 = vld [vmem:[%s6058_s16 + $0x110] sm:$0xf]  ;;  %v4802_v48 = vld [vmem:[%s6058_s16 + $0xc0] sm:$0xf]  ;;  %v5704_v6 = vld [vmem:[%s7709_s1 + $0x148] sm:$0xff]   ;;  %s7687_s9 = scalar_lea.vmem %s7714_s6, %s5166_s30 }
  0x49   : > { %5305 = vmatprep.subr.bf16.mxu1 %v5699_v44  ;;  %268 = vst [vmem:[#allocation3 + $0xd8] sm:$0xf] %v4788_v46  ;;  %269 = vst [vmem:[#allocation3 + $0xfc] sm:$0xf] %v4789_v47  ;;  %v4803_v50 = vld [vmem:[%s6058_s16 + $0xc4] sm:$0x1]  ;;  %5267 = vmatprep.subr.bf16.mxu0 %v5704_v6 }
  0x4a   : > { %v512_v43 = vrot.slane %v511_v40, 4  ;;  %v503_v45 = vsel %vm6073_vm3, %v498_v41, %v502_v33  ;;  %v4804_v51 = vld [vmem:[%s6058_s16 + $0xc8] sm:$0xf]  ;;  %v375_v52 = vshrl.u32 %v4802_v48, 16  ;;  %v378_v56 = vshll.u32 %v4802_v48, 16  ;;  %v5702_v3 = vld [vmem:[%s7709_s1 + $0x190] sm:$0xff]  }
  0x4b   : > { %558 = vst [vmem:[#allocation3 + $0x98] sm:$0xf] %v503_v45  ;;  %v5689_v55 = vld [vmem:[#allocation3 + $0x90] ss:$36 sps:$4 sm:$0xff]   ;;  %v384_v59 = vshll.u32 %v4803_v50, 16  ;;  %v389_v60 = vshrl.u32 %v4804_v51, 16 }
  0x4c   : > { %v517_v49 = vsel %vm6073_vm3, %v512_v43, %v516_v37  ;;  %v4805_v57 = vld [vmem:[%s6058_s16 + $0xcc] sm:$0x1]  ;;  %v377_v58 = vrot.slane %v375_v52, 4  ;;  %v392_v61 = vshll.u32 %v4804_v51, 16  ;;  %v380_v62 = vrot.slane %v378_v56, 5  ;;  %5306 = vmatpush3.bf16.msra.mxu1 %v5702_v3  ;;  %v5711_v37 = vld [vmem:[%s7709_s1 + $0x140] sm:$0xff]  }
  0x4d   : > { %559 = vst [vmem:[#allocation3 + $0xbc] sm:$0xf] %v517_v49  ;;  %v398_v63 = vshll.u32 %v4805_v57, 16  ;;  %v386_v0 = vrot.slane %v384_v59, 5  ;;  %v391_v1 = vrot.slane %v389_v60, 4  ;;  %v5707_v16 = vld [vmem:[%s7709_s1 + $0x108] sm:$0xff]  }
  0x4e   : > { %v5686_v54 = vld [vmem:[#allocation3 + $0x94] ss:$36 sps:$4 sm:$0xff]   ;;  %v394_v2 = vrot.slane %v392_v61, 5  ;;  %v381_v4 = vor.u32 %v380_v62, %v377_v58  ;;  %v4818_v7 = vld [vmem:[%s6058_s16 + $0x108] sm:$0xf]  ;;  %5268 = vmatpush3.bf16.msra.mxu0 %v5707_v16  ;;  %v5712_v39 = vld [vmem:[%s7709_s1 + $0x100] sm:$0xff]  }
  0x4f   : > { %2029 = vmatprep.mubr.bf16.mxu0 %v5686_v54  ;;  %v400_v5 = vrot.slane %v398_v63, 5  ;;  %v4819_v9 = vld [vmem:[%s6058_s16 + $0x10c] sm:$0x1]  ;;  %v4820_v10 = vld [vmem:[%s6058_s16 + $0x110] sm:$0xf]  ;;  %v519_v13 = vshrl.u32 %v4818_v7, 16  ;;  %5269 = vmatprep.subr.bf16.mxu0 %v5711_v37 }
  0x50   : > { %2030 = vmatmul.mubr.bf16.gmra.mxu0 %v5689_v55  ;;  %v395_v8 = vor.u32 %v394_v2, %v391_v1  ;;  %v4821_v11 = vld [vmem:[%s6058_s16 + $0x114] sm:$0x1]  ;;  %v382_v12 = vrot.slane %v381_v4, 4  ;;  %v522_v14 = vshll.u32 %v4818_v7, 16  ;;  %v528_v15 = vshll.u32 %v4819_v9, 16  ;;  %v5709_v25 = vld [vmem:[%s7709_s1 + $0x1c8] sm:$0xff]  }
  0x51   : > { %v5691_v17 = vld [vmem:[#allocation3 + $0x9c] ss:$36 sps:$4 sm:$0xff]   ;;  %v521_v21 = vrot.slane %v519_v13, 4  ;;  %v4828_v24 = vld [vmem:[%s6058_s16 + $0x80] sm:$0xf]  ;;  %v533_v28 = vshrl.u32 %v4820_v10, 16  ;;  %5307 = vmatprep.subr.bf16.mxu1 %v5709_v25 }
  0x52   : > { %v396_v19 = vrot.slane %v395_v8, 4  ;;  %v387_v20 = vsel %vm6073_vm3, %v382_v12, %v386_v0  ;;  %v524_v22 = vrot.slane %v522_v14, 5  ;;  %v530_v23 = vrot.slane %v528_v15, 5  ;;  %2094 = vmatprep.mubr.bf16.mxu1 %v5691_v17  ;;  %v4829_v31 = vld [vmem:[%s6058_s16 + $0x88] sm:$0xf]  ;;  %5270 = vmatpush3.bf16.msra.mxu0 %v5712_v39  ;;  %v5713_v43 = vld [vmem:[%s7709_s1 + $0x1c0] sm:$0xff]  }
  0x53   : > { %416 = vst [vmem:[#allocation3 + $0xdc] sm:$0xf] %v387_v20  ;;  %v536_v29 = vshll.u32 %v4820_v10, 16  ;;  %v542_v30 = vshll.u32 %v4821_v11, 16  ;;  %577 = vst [vmem:[#allocation3 + $0xe4] sm:$0xf] %v4828_v24 }
  0x54   : > { %v5694_v18 = vld [vmem:[#allocation3 + $0x98] ss:$36 sps:$4 sm:$0xff]   ;;  %v401_v26 = vsel %vm6073_vm3, %v396_v19, %v400_v5  ;;  %v5710_v32 = vld [vmem:[%s7709_s1 + $0x188] sm:$0xff]   ;;  %v525_v33 = vor.u32 %v524_v22, %v521_v21  ;;  %578 = vst [vmem:[#allocation3 + $0x108] sm:$0xf] %v4829_v31  ;;  %v535_v34 = vrot.slane %v533_v28, 4 }
  0x55   : > { %2095 = vmatmul.mubr.bf16.gmra.mxu1 %v5694_v18  ;;  %417 = vst [vmem:[#allocation3 + $0x100] sm:$0xf] %v401_v26  ;;  %v538_v35 = vrot.slane %v536_v29, 5  ;;  %v544_v36 = vrot.slane %v542_v30, 5  ;;  %v4830_v44 = vld [vmem:[%s6058_s16 + $0x8] sm:$0xf] }
  0x56   : > { %5308 = vmatpush3.bf16.msra.mxu1 %v5710_v32  ;;  %v526_v38 = vrot.slane %v525_v33, 4  ;;  %v4831_v45 = vld [vmem:[%s6058_s16 + $0xc] sm:$0x1]  ;;  %v4832_v46 = vld [vmem:[%s6058_s16 + $0x10] sm:$0xf]  ;;  %v597_v48 = vshrl.u32 %v4830_v44, 16 }
  0x57   : > { %v539_v40 = vor.u32 %v538_v35, %v535_v34  ;;  %v4833_v47 = vld [vmem:[%s6058_s16 + $0x14] sm:$0x1]  ;;  %5309 = vmatprep.subr.bf16.mxu1 %v5713_v43  ;;  %v600_v52 = vshll.u32 %v4830_v44, 16  ;;  %v606_v55 = vshll.u32 %v4831_v45, 16  ;;  %v611_v56 = vshrl.u32 %v4832_v46, 16  ;;  %v5716_v8 = vld [vmem:[%s7709_s1 + $0x180] sm:$0xff]  }
  0x58   : > { %v531_v41 = vsel %vm6073_vm3, %v526_v38, %v530_v23  ;;  %v5703_v50 = vld [vmem:[#allocation3 + $0xd8] ss:$36 sps:$4 sm:$0xff]   ;;  %v599_v54 = vrot.slane %v597_v48, 4  ;;  %v614_v57 = vshll.u32 %v4832_v46, 16  ;;  %v620_v60 = vshll.u32 %v4833_v47, 16  ;;  %v6271_v20 = vld [vmem:[%s7709_s1 + $0x238] sm:$0xff]  }
  0x59   : > { %v540_v42 = vrot.slane %v539_v40, 4  ;;  %560 = vst [vmem:[#allocation3 + $0xe0] sm:$0xf] %v531_v41  ;;  %v4846_v58 = vld [vmem:[%s6058_s16 + $0x50] sm:$0xf]  ;;  %v602_v59 = vrot.slane %v600_v52, 5  ;;  %5531 = vmatprep.subr.bf16.mxu0 %v6271_v20 }
  0x5a   : > { %v4847_v61 = vld [vmem:[%s6058_s16 + $0x54] sm:$0x1]  ;;  %v4848_v62 = vld [vmem:[%s6058_s16 + $0x58] sm:$0xf]  ;;  %v608_v63 = vrot.slane %v606_v55, 5  ;;  %v613_v0 = vrot.slane %v611_v56, 4  ;;  %5310 = vmatpush3.bf16.msra.mxu1 %v5716_v8 }
  0x5b   : > { %v545_v51 = vsel %vm6073_vm3, %v540_v42, %v544_v36  ;;  %v616_v1 = vrot.slane %v614_v57, 5  ;;  %v4849_v2 = vld [vmem:[%s6058_s16 + $0x5c] sm:$0x1]  ;;  %v741_v3 = vshrl.u32 %v4846_v58, 16  ;;  %v603_v4 = vor.u32 %v602_v59, %v599_v54  ;;  %v4862_v29 = vld [vmem:[%s6058_s16 + $0xe0] sm:$0xf] }
  0x5c   : > { %v5700_v49 = vld [vmem:[#allocation3 + $0xdc] ss:$36 sps:$4 sm:$0xff]   ;;  %561 = vst [vmem:[#allocation3 + $0x104] sm:$0xf] %v545_v51  ;;  %v622_v5 = vrot.slane %v620_v60, 5  ;;  %v744_v6 = vshll.u32 %v4846_v58, 16 }
  0x5d   : > { %2037 = vmatprep.mubr.bf16.mxu0 %v5700_v49  ;;  %v750_v7 = vshll.u32 %v4847_v61, 16  ;;  %v617_v9 = vor.u32 %v616_v1, %v613_v0  ;;  %v743_v10 = vrot.slane %v741_v3, 4  ;;  %v755_v11 = vshrl.u32 %v4848_v62, 16  ;;  %v5705_v21 = vld [vmem:[#allocation3 + $0xe4] ss:$36 sps:$4 sm:$0xff]  }
  0x5e   : > { %2038 = vmatmul.mubr.bf16.gmra.mxu0 %v5703_v50  ;;  %v758_v12 = vshll.u32 %v4848_v62, 16  ;;  %v604_v13 = vrot.slane %v603_v4, 4  ;;  %v746_v14 = vrot.slane %v744_v6, 5  ;;  %v764_v16 = vshll.u32 %v4849_v2, 16  ;;  %v4863_v30 = vld [vmem:[%s6058_s16 + $0xe8] sm:$0xf]  ;;  %2102 = vmatprep.mubr.bf16.mxu1 %v5705_v21 }
  0x5f   : > { %v752_v15 = vrot.slane %v750_v7, 5  ;;  %v618_v17 = vrot.slane %v617_v9, 4  ;;  %v757_v18 = vrot.slane %v755_v11, 4  ;;  %v4870_v31 = vld [vmem:[%s6058_s16 + $0x98] sm:$0xf] }
  0x60   : > { %v760_v19 = vrot.slane %v758_v12, 5  ;;  %v609_v23 = vsel %vm6073_vm3, %v604_v13, %v608_v63  ;;  %v747_v24 = vor.u32 %v746_v14, %v743_v10  ;;  %v766_v25 = vrot.slane %v764_v16, 5  ;;  %877 = vst [vmem:[#allocation3 + $0x18] sm:$0xf] %v4862_v29  ;;  %878 = vst [vmem:[#allocation3 + $0x3c] sm:$0xf] %v4863_v30 }
  0x61   : > { %v623_v26 = vsel %vm6073_vm3, %v618_v17, %v622_v5  ;;  %716 = vst [vmem:[#allocation3 + $0x10] sm:$0xf] %v609_v23  ;;  %v4871_v33 = vld [vmem:[%s6058_s16 + $0x9c] sm:$0x1]  ;;  %v4872_v34 = vld [vmem:[%s6058_s16 + $0xa0] sm:$0xf] }
  0x62   : > { %v761_v28 = vor.u32 %v760_v19, %v757_v18  ;;  %717 = vst [vmem:[#allocation3 + $0x34] sm:$0xf] %v623_v26  ;;  %v748_v32 = vrot.slane %v747_v24, 4  ;;  %v903_v35 = vshrl.u32 %v4870_v31, 16  ;;  %v4873_v37 = vld [vmem:[%s6058_s16 + $0xa4] sm:$0x1] }
  0x63   : > { %v5708_v22 = vld [vmem:[#allocation3 + $0xe0] ss:$36 sps:$4 sm:$0xff]   ;;  %v906_v38 = vshll.u32 %v4870_v31, 16  ;;  %v912_v39 = vshll.u32 %v4871_v33, 16  ;;  %v917_v40 = vshrl.u32 %v4872_v34, 16  ;;  %v920_v43 = vshll.u32 %v4872_v34, 16 }
  0x64   : > { %2103 = vmatmul.mubr.bf16.gmra.mxu1 %v5708_v22  ;;  %v762_v36 = vrot.slane %v761_v28, 4  ;;  %v753_v41 = vsel %vm6073_vm3, %v748_v32, %v752_v15  ;;  %v905_v42 = vrot.slane %v903_v35, 4  ;;  %v926_v44 = vshll.u32 %v4873_v37, 16  ;;  %v4834_v51 = vld [vmem:[%s6058_s16 + $0x18] sm:$0xf]  ;;  %v5722_v16 = vld [vmem:[%s7709_s1 + $0x230] sm:$0xff]  }
  0x65   : > { %860 = vst [vmem:[#allocation3 + $0x14] sm:$0xf] %v753_v41  ;;  %v908_v46 = vrot.slane %v906_v38, 5  ;;  %v914_v47 = vrot.slane %v912_v39, 5  ;;  %v919_v48 = vrot.slane %v917_v40, 4  ;;  %v922_v49 = vrot.slane %v920_v43, 5 }
  0x66   : > { %v767_v45 = vsel %vm6073_vm3, %v762_v36, %v766_v25  ;;  %v928_v50 = vrot.slane %v926_v44, 5  ;;  %v4835_v52 = vld [vmem:[%s6058_s16 + $0x1c] sm:$0x1]  ;;  %v4836_v55 = vld [vmem:[%s6058_s16 + $0x20] sm:$0xf]  ;;  %v625_v57 = vshrl.u32 %v4834_v51, 16 }
  0x67   : > { %861 = vst [vmem:[#allocation3 + $0x38] sm:$0xf] %v767_v45  ;;  %v909_v54 = vor.u32 %v908_v46, %v905_v42  ;;  %v4837_v56 = vld [vmem:[%s6058_s16 + $0x24] sm:$0x1]  ;;  %v628_v58 = vshll.u32 %v4834_v51, 16  ;;  %v923_v59 = vor.u32 %v922_v49, %v919_v48  ;;  %v634_v60 = vshll.u32 %v4835_v52, 16 }
  0x68   : > { %v639_v61 = vshrl.u32 %v4836_v55, 16  ;;  %v642_v62 = vshll.u32 %v4836_v55, 16  ;;  %v4850_v63 = vld [vmem:[%s6058_s16 + $0x60] sm:$0xf]  ;;  %v627_v1 = vrot.slane %v625_v57, 4  ;;  %v648_v3 = vshll.u32 %v4837_v56, 16 }
  0x69   : > { %v910_v0 = vrot.slane %v909_v54, 4  ;;  %v630_v2 = vrot.slane %v628_v58, 5  ;;  %v4851_v4 = vld [vmem:[%s6058_s16 + $0x64] sm:$0x1]  ;;  %v924_v5 = vrot.slane %v923_v59, 4  ;;  %v636_v6 = vrot.slane %v634_v60, 5 }
  0x6a   : > { %v641_v7 = vrot.slane %v639_v61, 4  ;;  %v644_v8 = vrot.slane %v642_v62, 5  ;;  %v4852_v9 = vld [vmem:[%s6058_s16 + $0x68] sm:$0xf]  ;;  %v650_v12 = vrot.slane %v648_v3, 5  ;;  %v769_v14 = vshrl.u32 %v4850_v63, 16 }
  0x6b   : > { %v915_v10 = vsel %vm6073_vm3, %v910_v0, %v914_v47  ;;  %v631_v11 = vor.u32 %v630_v2, %v627_v1  ;;  %v4853_v13 = vld [vmem:[%s6058_s16 + $0x6c] sm:$0x1]  ;;  %v929_v15 = vsel %vm6073_vm3, %v924_v5, %v928_v50  ;;  %v772_v18 = vshll.u32 %v4850_v63, 16  ;;  %v4864_v29 = vld [vmem:[%s6058_s16 + $0xf0] sm:$0xf]  ;;  %v5730_v58 = vld [vmem:[%s7709_s1 + $0x220] sm:$0xff]  }
  0x6c   : > { %1022 = vst [vmem:[#allocation3 + $0x1c] sm:$0xf] %v915_v10  ;;  %v645_v17 = vor.u32 %v644_v8, %v641_v7  ;;  %v778_v19 = vshll.u32 %v4851_v4, 16  ;;  %v5717_v22 = vld [vmem:[#allocation3 + $0x10] ss:$36 sps:$4 sm:$0xff]   ;;  %v771_v25 = vrot.slane %v769_v14, 4 }
  0x6d   : > { %1023 = vst [vmem:[#allocation3 + $0x40] sm:$0xf] %v929_v15  ;;  %v632_v23 = vrot.slane %v631_v11, 4  ;;  %v774_v26 = vrot.slane %v772_v18, 5  ;;  %v783_v31 = vshrl.u32 %v4852_v9, 16  ;;  %v786_v32 = vshll.u32 %v4852_v9, 16 }
  0x6e   : > { %v5714_v21 = vld [vmem:[#allocation3 + $0x14] ss:$36 sps:$4 sm:$0xff]   ;;  %v646_v24 = vrot.slane %v645_v17, 4  ;;  %v780_v28 = vrot.slane %v778_v19, 5  ;;  %v792_v33 = vshll.u32 %v4853_v13, 16 }
  0x6f   : > { %2143 = vmatprep.mubr.bf16.mxu0 %v5714_v21  ;;  %v637_v30 = vsel %vm6073_vm3, %v632_v23, %v636_v6  ;;  %v4865_v34 = vld [vmem:[%s6058_s16 + $0xf8] sm:$0xf]  ;;  %879 = vst [vmem:[#allocation3 + $0x60] sm:$0xf] %v4864_v29  ;;  %v775_v36 = vor.u32 %v774_v26, %v771_v25  ;;  %v5726_v37 = vld [vmem:[%s7709_s1 + $0x228] sm:$0xff]   ;;  %v785_v41 = vrot.slane %v783_v31, 4 }
  0x70   : > { %2144 = vmatmul.mubr.bf16.vlgmr.msra.gmra.mxu0 %v5717_v22  ;;  %v651_v35 = vsel %vm6073_vm3, %v646_v24, %v650_v12  ;;  %718 = vst [vmem:[#allocation3 + $0x58] sm:$0xf] %v637_v30  ;;  %880 = vst [vmem:[#allocation3 + $0x84] sm:$0xf] %v4865_v34  ;;  %v4874_v38 = vld [vmem:[%s6058_s16 + $0xa8] sm:$0xf] }
  0x71   : > { %v4875_v39 = vld [vmem:[%s6058_s16 + $0xac] sm:$0x1]  ;;  %v4876_v40 = vld [vmem:[%s6058_s16 + $0xb0] sm:$0xf]  ;;  %5532 = vmatpush3.bf16.msra.mxu0 %v6271_v20  ;;  %719 = vst [vmem:[#allocation3 + $0x7c] sm:$0xf] %v651_v35 }
  0x72   : > { %v788_v42 = vrot.slane %v786_v32, 5  ;;  %v794_v43 = vrot.slane %v792_v33, 5  ;;  %v4877_v44 = vld [vmem:[%s6058_s16 + $0xb4] sm:$0x1]  ;;  %v931_v45 = vshrl.u32 %v4874_v38, 16  ;;  %5533 = vmatprep.subr.bf16.mxu0 %v5722_v16  ;;  %v776_v46 = vrot.slane %v775_v36, 4 }
  0x73   : > { %v934_v47 = vshll.u32 %v4874_v38, 16  ;;  %v940_v48 = vshll.u32 %v4875_v39, 16  ;;  %v945_v49 = vshrl.u32 %v4876_v40, 16  ;;  %v948_v52 = vshll.u32 %v4876_v40, 16  ;;  %v5721_v56 = vld [vmem:[#allocation3 + $0x18] ss:$36 sps:$4 sm:$0xff]  }
  0x74   : > { %v789_v50 = vor.u32 %v788_v42, %v785_v41  ;;  %v933_v51 = vrot.slane %v931_v45, 4  ;;  %v954_v54 = vshll.u32 %v4877_v44, 16  ;;  %v5719_v55 = vld [vmem:[#allocation3 + $0x1c] ss:$36 sps:$4 sm:$0xff]   ;;  %v781_v20 = vsel %vm6073_vm3, %v776_v46, %v780_v28  ;;  %v4838_v63 = vld [vmem:[%s6058_s16 + $0x28] sm:$0xf] }
  0x75   : > { %v936_v57 = vrot.slane %v934_v47, 5  ;;  %5534 = vmatpush3.bf16.msra.mxu0 %v5722_v16  ;;  %862 = vst [vmem:[#allocation3 + $0x5c] sm:$0xf] %v781_v20  ;;  %v942_v60 = vrot.slane %v940_v48, 5  ;;  %v947_v61 = vrot.slane %v945_v49, 4  ;;  %v950_v62 = vrot.slane %v948_v52, 5  ;;  %2208 = vmatprep.mubr.bf16.mxu1 %v5719_v55 }
  0x76   : > { %v790_v59 = vrot.slane %v789_v50, 4  ;;  %5535 = vmatprep.subr.bf16.mxu0 %v5726_v37  ;;  %v956_v1 = vrot.slane %v954_v54, 5  ;;  %v4839_v2 = vld [vmem:[%s6058_s16 + $0x2c] sm:$0x1]  ;;  %v4840_v3 = vld [vmem:[%s6058_s16 + $0x30] sm:$0xf]  ;;  %2209 = vmatmul.mubr.bf16.vlgmr.msra.gmra.mxu1 %v5721_v56 }
  0x77   : > { %v937_v0 = vor.u32 %v936_v57, %v933_v51  ;;  %v653_v4 = vshrl.u32 %v4838_v63, 16  ;;  %v951_v6 = vor.u32 %v950_v62, %v947_v61  ;;  %v4841_v7 = vld [vmem:[%s6058_s16 + $0x34] sm:$0x1]  ;;  %v656_v8 = vshll.u32 %v4838_v63, 16  ;;  %v4854_v10 = vld [vmem:[%s6058_s16 + $0x70] sm:$0xf] }
  0x78   : > { %v795_v5 = vsel %vm6073_vm3, %v790_v59, %v794_v43  ;;  %v662_v9 = vshll.u32 %v4839_v2, 16  ;;  %v667_v13 = vshrl.u32 %v4840_v3, 16  ;;  %v670_v14 = vshll.u32 %v4840_v3, 16  ;;  %v4855_v15 = vld [vmem:[%s6058_s16 + $0x74] sm:$0x1]  ;;  %v5734_v28 = vld [vmem:[%s7709_s1 + $0x218] sm:$0xff]  }
  0x79   : > { %863 = vst [vmem:[#allocation3 + $0x80] sm:$0xf] %v795_v5  ;;  %v938_v11 = vrot.slane %v937_v0, 4  ;;  %v655_v12 = vrot.slane %v653_v4, 4  ;;  %v952_v16 = vrot.slane %v951_v6, 4  ;;  %5536 = vmatpush3.bf16.msra.mxu0 %v5726_v37  ;;  %v658_v17 = vrot.slane %v656_v8, 5 }
  0x7a   : > { %v664_v18 = vrot.slane %v662_v9, 5  ;;  %v676_v19 = vshll.u32 %v4841_v7, 16  ;;  %v4856_v21 = vld [vmem:[%s6058_s16 + $0x78] sm:$0xf]  ;;  %5537 = vmatprep.subr.bf16.mxu0 %v5730_v58  ;;  %v669_v23 = vrot.slane %v667_v13, 4  ;;  %v672_v24 = vrot.slane %v670_v14, 5 }
  0x7b   : > { %v943_v22 = vsel %vm6073_vm3, %v938_v11, %v942_v60  ;;  %v4857_v25 = vld [vmem:[%s6058_s16 + $0x7c] sm:$0x1]  ;;  %v797_v26 = vshrl.u32 %v4854_v10, 16  ;;  %v957_v29 = vsel %vm6073_vm3, %v952_v16, %v956_v1  ;;  %v659_v30 = vor.u32 %v658_v17, %v655_v12  ;;  %v4866_v37 = vld [vmem:[%s6058_s16 + $0x100] sm:$0xf]  ;;  %v5738_v47 = vld [vmem:[%s7709_s1 + $0x210] sm:$0xff]  }
  0x7c   : > { %1024 = vst [vmem:[#allocation3 + $0x64] sm:$0xf] %v943_v22  ;;  %v678_v31 = vrot.slane %v676_v19, 5  ;;  %v800_v32 = vshll.u32 %v4854_v10, 16  ;;  %1025 = vst [vmem:[#allocation3 + $0x88] sm:$0xf] %v957_v29  ;;  %v673_v33 = vor.u32 %v672_v24, %v669_v23 }
  0x7d   : > { %v799_v34 = vrot.slane %v797_v26, 4  ;;  %v806_v35 = vshll.u32 %v4855_v15, 16  ;;  %v811_v36 = vshrl.u32 %v4856_v21, 16  ;;  %5538 = vmatpush3.bf16.msra.mxu0 %v5730_v58  ;;  %v660_v38 = vrot.slane %v659_v30, 4  ;;  %v4867_v42 = vld [vmem:[%s6058_s16 + $0x108] sm:$0xf] }
  0x7e   : > { %v802_v39 = vrot.slane %v800_v32, 5  ;;  %v814_v40 = vshll.u32 %v4856_v21, 16  ;;  %v820_v41 = vshll.u32 %v4857_v25, 16  ;;  %881 = vst [vmem:[#allocation3 + $0xa8] sm:$0xf] %v4866_v37  ;;  %v674_v43 = vrot.slane %v673_v33, 4  ;;  %5539 = vmatprep.subr.bf16.mxu0 %v5734_v28 }
  0x7f   : > { %v808_v44 = vrot.slane %v806_v35, 5  ;;  %v813_v45 = vrot.slane %v811_v36, 4  ;;  %882 = vst [vmem:[#allocation3 + $0xcc] sm:$0xf] %v4867_v42  ;;  %v4878_v46 = vld [vmem:[%s6058_s16 + $0xb8] sm:$0xf]  ;;  %v665_v50 = vsel %vm6073_vm3, %v660_v38, %v664_v18 }
  0x80   : > { %v5723_v48 = vld [vmem:[#allocation3 + $0x5c] ss:$36 sps:$4 sm:$0xff]   ;;  %v803_v51 = vor.u32 %v802_v39, %v799_v34  ;;  %v816_v52 = vrot.slane %v814_v40, 5  ;;  %v679_v54 = vsel %vm6073_vm3, %v674_v43, %v678_v31  ;;  %720 = vst [vmem:[#allocation3 + $0xa0] sm:$0xf] %v665_v50  ;;  %v822_v55 = vrot.slane %v820_v41, 5 }
  0x81   : > { %v5725_v49 = vld [vmem:[#allocation3 + $0x58] ss:$36 sps:$4 sm:$0xff]   ;;  %v4879_v56 = vld [vmem:[%s6058_s16 + $0xbc] sm:$0x1]  ;;  %v4880_v20 = vld [vmem:[%s6058_s16 + $0xc0] sm:$0xf]  ;;  %2151 = vmatprep.mubr.bf16.mxu0 %v5723_v48  ;;  %5540 = vmatpush3.bf16.msra.mxu0 %v5734_v28 }
  0x82   : > { %v959_v57 = vshrl.u32 %v4878_v46, 16  ;;  %721 = vst [vmem:[#allocation3 + $0xc4] sm:$0xf] %v679_v54  ;;  %v804_v58 = vrot.slane %v803_v51, 4  ;;  %v817_v59 = vor.u32 %v816_v52, %v813_v45  ;;  %v4881_v60 = vld [vmem:[%s6058_s16 + $0xc4] sm:$0x1]  ;;  %2152 = vmatmul.mubr.bf16.gmra.mxu0 %v5725_v49  ;;  %5541 = vmatprep.subr.bf16.mxu0 %v5738_v47 }
  0x83   : > { %v962_v61 = vshll.u32 %v4878_v46, 16  ;;  %v968_v62 = vshll.u32 %v4879_v56, 16  ;;  %v973_v0 = vshrl.u32 %v4880_v20, 16  ;;  %v976_v1 = vshll.u32 %v4880_v20, 16  ;;  %v5742_v3 = vld [vmem:[%s7709_s1 + $0x208] sm:$0xff]   ;;  %v5745_v11 = vld [vmem:[%s7709_s1 + $0x200] sm:$0xff]  }
  0x84   : > { %v961_v63 = vrot.slane %v959_v57, 4  ;;  %v982_v2 = vshll.u32 %v4881_v60, 16  ;;  %v5727_v4 = vld [vmem:[#allocation3 + $0x64] ss:$36 sps:$4 sm:$0xff]   ;;  %v809_v6 = vsel %vm6073_vm3, %v804_v58, %v808_v44  ;;  %v818_v7 = vrot.slane %v817_v59, 4 }
  0x85   : > { %v5729_v5 = vld [vmem:[#allocation3 + $0x60] ss:$36 sps:$4 sm:$0xff]   ;;  %864 = vst [vmem:[#allocation3 + $0xa4] sm:$0xf] %v809_v6  ;;  %v964_v8 = vrot.slane %v962_v61, 5  ;;  %v975_v9 = vrot.slane %v973_v0, 4  ;;  %2216 = vmatprep.mubr.bf16.mxu1 %v5727_v4  ;;  %5542 = vmatpush3.bf16.msra.mxu0 %v5738_v47 }
  0x86   : > { %v978_v10 = vrot.slane %v976_v1, 5  ;;  %v823_v12 = vsel %vm6073_vm3, %v818_v7, %v822_v55  ;;  %v970_v13 = vrot.slane %v968_v62, 5  ;;  %v984_v14 = vrot.slane %v982_v2, 5  ;;  %v4842_v15 = vld [vmem:[%s6058_s16 + $0x38] sm:$0xf]  ;;  %2217 = vmatmul.mubr.bf16.gmra.mxu1 %v5729_v5  ;;  %5543 = vmatprep.subr.bf16.mxu0 %v5742_v3 }
  0x87   : > { %865 = vst [vmem:[#allocation3 + $0xc8] sm:$0xf] %v823_v12  ;;  %v965_v16 = vor.u32 %v964_v8, %v961_v63  ;;  %v4843_v18 = vld [vmem:[%s6058_s16 + $0x3c] sm:$0x1]  ;;  %v4844_v19 = vld [vmem:[%s6058_s16 + $0x40] sm:$0xf] }
  0x88   : > { %v979_v17 = vor.u32 %v978_v10, %v975_v9  ;;  %v4845_v21 = vld [vmem:[%s6058_s16 + $0x44] sm:$0x1]  ;;  %v681_v22 = vshrl.u32 %v4842_v15, 16  ;;  %v684_v23 = vshll.u32 %v4842_v15, 16  ;;  %v690_v24 = vshll.u32 %v4843_v18, 16 }
  0x89   : > { %v695_v25 = vshrl.u32 %v4844_v19, 16  ;;  %v4858_v26 = vld [vmem:[%s6058_s16 + $0x80] sm:$0xf]  ;;  %v966_v28 = vrot.slane %v965_v16, 4  ;;  %v698_v30 = vshll.u32 %v4844_v19, 16  ;;  %v704_v31 = vshll.u32 %v4845_v21, 16  ;;  %5544 = vmatpush3.bf16.msra.mxu0 %v5742_v3 }
  0x8a   : > { %v980_v29 = vrot.slane %v979_v17, 4  ;;  %v4859_v32 = vld [vmem:[%s6058_s16 + $0x84] sm:$0x1]  ;;  %v683_v33 = vrot.slane %v681_v22, 4  ;;  %v686_v34 = vrot.slane %v684_v23, 5  ;;  %v692_v35 = vrot.slane %v690_v24, 5  ;;  %5545 = vmatprep.subr.bf16.mxu0 %v5745_v11 }
  0x8b   : > { %v697_v36 = vrot.slane %v695_v25, 4  ;;  %v4860_v37 = vld [vmem:[%s6058_s16 + $0x88] sm:$0xf]  ;;  %v971_v38 = vsel %vm6073_vm3, %v966_v28, %v970_v13  ;;  %v700_v40 = vrot.slane %v698_v30, 5  ;;  %v706_v41 = vrot.slane %v704_v31, 5 }
  0x8c   : > { %v985_v39 = vsel %vm6073_vm3, %v980_v29, %v984_v14  ;;  %v4861_v42 = vld [vmem:[%s6058_s16 + $0x8c] sm:$0x1]  ;;  %1026 = vst [vmem:[#allocation3 + $0xac] sm:$0xf] %v971_v38  ;;  %v687_v43 = vor.u32 %v686_v34, %v683_v33  ;;  %v825_v44 = vshrl.u32 %v4858_v26, 16  ;;  %v828_v45 = vshll.u32 %v4858_v26, 16 }
  0x8d   : > { %1027 = vst [vmem:[#allocation3 + $0xd0] sm:$0xf] %v985_v39  ;;  %v834_v46 = vshll.u32 %v4859_v32, 16  ;;  %v701_v47 = vor.u32 %v700_v40, %v697_v36  ;;  %v839_v48 = vshrl.u32 %v4860_v37, 16  ;;  %v842_v49 = vshll.u32 %v4860_v37, 16  ;;  %5546 = vmatpush3.bf16.msra.mxu0 %v5745_v11 }
  0x8e   : > { %v848_v50 = vshll.u32 %v4861_v42, 16  ;;  %v4868_v51 = vld [vmem:[%s6058_s16 + $0x110] sm:$0xf]  ;;  %v5731_v52 = vld [vmem:[#allocation3 + $0xa4] ss:$36 sps:$4 sm:$0xff]   ;;  %v688_v55 = vrot.slane %v687_v43, 4 }
  0x8f   : > { %v5733_v54 = vld [vmem:[#allocation3 + $0xa0] ss:$36 sps:$4 sm:$0xff]   ;;  %883 = vst [vmem:[#allocation3 + $0xf0] sm:$0xf] %v4868_v51  ;;  %v702_v56 = vrot.slane %v701_v47, 4  ;;  %v827_v20 = vrot.slane %v825_v44, 4  ;;  %2159 = vmatprep.mubr.bf16.mxu0 %v5731_v52 }
  0x90   : > { %v830_v57 = vrot.slane %v828_v45, 5  ;;  %v836_v58 = vrot.slane %v834_v46, 5  ;;  %v4869_v59 = vld [vmem:[%s6058_s16 + $0x118] sm:$0xf]  ;;  %v693_v60 = vsel %vm6073_vm3, %v688_v55, %v692_v35  ;;  %v841_v61 = vrot.slane %v839_v48, 4  ;;  %2160 = vmatmul.mubr.bf16.gmra.mxu0 %v5733_v54 }
  0x91   : > { %v844_v62 = vrot.slane %v842_v49, 5  ;;  %v850_v63 = vrot.slane %v848_v50, 5  ;;  %884 = vst [vmem:[#allocation3 + $0x114] sm:$0xf] %v4869_v59  ;;  %v4882_v0 = vld [vmem:[%s6058_s16 + $0xc8] sm:$0xf]  ;;  %v707_v1 = vsel %vm6073_vm3, %v702_v56, %v706_v41 }
  0x92   : > { %722 = vst [vmem:[#allocation3 + $0xe8] sm:$0xf] %v693_v60  ;;  %v831_v2 = vor.u32 %v830_v57, %v827_v20  ;;  %v4883_v3 = vld [vmem:[%s6058_s16 + $0xcc] sm:$0x1]  ;;  %v4884_v4 = vld [vmem:[%s6058_s16 + $0xd0] sm:$0xf] }
  0x93   : > { %v4885_v5 = vld [vmem:[%s6058_s16 + $0xd4] sm:$0x1]  ;;  %723 = vst [vmem:[#allocation3 + $0x10c] sm:$0xf] %v707_v1  ;;  %v845_v6 = vor.u32 %v844_v62, %v841_v61  ;;  %v987_v7 = vshrl.u32 %v4882_v0, 16  ;;  %v990_v8 = vshll.u32 %v4882_v0, 16 }
  0x94   : > { %v996_v9 = vshll.u32 %v4883_v3, 16  ;;  %v3080_v10 = vld [vmem:[#allocation2 + $0x6c] sm:$0x8]  ;;  %v5735_v11 = vld [vmem:[#allocation3 + $0xac] ss:$36 sps:$4 sm:$0xff]   ;;  %v832_v12 = vrot.slane %v831_v2, 4 }
  0x95   : > { %v1001_v13 = vshrl.u32 %v4884_v4, 16  ;;  %v5737_v14 = vld [vmem:[#allocation3 + $0xa8] ss:$36 sps:$4 sm:$0xff]   ;;  %v846_v15 = vrot.slane %v845_v6, 4  ;;  %v989_v16 = vrot.slane %v987_v7, 4  ;;  %v992_v17 = vrot.slane %v990_v8, 5  ;;  %2224 = vmatprep.mubr.bf16.mxu1 %v5735_v11 }
  0x96   : > { %v998_v18 = vrot.slane %v996_v9, 5  ;;  %v837_v19 = vsel %vm6073_vm3, %v832_v12, %v836_v58  ;;  %v1004_v22 = vshll.u32 %v4884_v4, 16  ;;  %v1010_v23 = vshll.u32 %v4885_v5, 16  ;;  %v3081_v24 = vld [vmem:[#allocation2 + $0x70] sm:$0xf]  ;;  %2225 = vmatmul.mubr.bf16.gmra.mxu1 %v5737_v14 }
  0x97   : > { %v1003_v21 = vrot.slane %v1001_v13, 4  ;;  %v851_v25 = vsel %vm6073_vm3, %v846_v15, %v850_v63  ;;  %866 = vst [vmem:[#allocation3 + $0xec] sm:$0xf] %v837_v19  ;;  %v993_v26 = vor.u32 %v992_v17, %v989_v16  ;;  %v3174_v28 = vshrl.u32 %v3080_v10, 16  ;;  %v4886_v36 = vld [vmem:[%s6058_s16 + $0xe0] sm:$0xf] }
  0x98   : > { %v3179_v29 = vshrl.u32 %v3081_v24, 16  ;;  %867 = vst [vmem:[#allocation3 + $0x110] sm:$0xf] %v851_v25  ;;  %v1006_v30 = vrot.slane %v1004_v22, 5  ;;  %v3182_v31 = vshll.u32 %v3081_v24, 16  ;;  %v1012_v33 = vrot.slane %v1010_v23, 5 }
  0x99   : > { %v994_v32 = vrot.slane %v993_v26, 4  ;;  %v6388_v34 = vrot.slane %v3174_v28, 11  ;;  %v4887_v38 = vld [vmem:[%s6058_s16 + $0xe4] sm:$0x1]  ;;  %v4888_v39 = vld [vmem:[%s6058_s16 + $0xe8] sm:$0xf] }
  0x9a   : > { %v3181_v35 = vrot.slane %v3179_v29, 7  ;;  %v1007_v37 = vor.u32 %v1006_v30, %v1003_v21  ;;  %v4889_v40 = vld [vmem:[%s6058_s16 + $0xec] sm:$0x1]  ;;  %v1047_v43 = vshrl.u32 %v4886_v36, 16  ;;  %v1050_v44 = vshll.u32 %v4886_v36, 16 }
  0x9b   : > { %v999_v41 = vsel %vm6073_vm3, %v994_v32, %v998_v18  ;;  %v4890_v45 = vld [vmem:[%s6058_s16 + $0xf0] sm:$0xf]  ;;  %v1056_v47 = vshll.u32 %v4887_v38, 16  ;;  %v1061_v48 = vshrl.u32 %v4888_v39, 16  ;;  %v1064_v49 = vshll.u32 %v4888_v39, 16 }
  0x9c   : > { %v6396_v42 = vor.u32 %v3182_v31, %v3181_v35  ;;  %v1008_v46 = vrot.slane %v1007_v37, 4  ;;  %1028 = vst [vmem:[#allocation3 + $0xf4] sm:$0xf] %v999_v41  ;;  %v4891_v50 = vld [vmem:[%s6058_s16 + $0xf4] sm:$0x1]  ;;  %v1049_v51 = vrot.slane %v1047_v43, 4 }
  0x9d   : > { %v1052_v52 = vrot.slane %v1050_v44, 5  ;;  %v1070_v54 = vshll.u32 %v4889_v40, 16  ;;  %v4892_v55 = vld [vmem:[%s6058_s16 + $0xf8] sm:$0xf]  ;;  %v1058_v20 = vrot.slane %v1056_v47, 5  ;;  %v1063_v57 = vrot.slane %v1061_v48, 4 }
  0x9e   : > { %v1013_v56 = vsel %vm6073_vm3, %v1008_v46, %v1012_v33  ;;  %v1066_v58 = vrot.slane %v1064_v49, 5  ;;  %v4893_v59 = vld [vmem:[%s6058_s16 + $0xfc] sm:$0x1]  ;;  %v5741_v61 = vld [vmem:[#allocation3 + $0xe8] ss:$36 sps:$4 sm:$0xff]   ;;  %v3185_v62 = vsel %vm6098_vm5, %v6388_v34, %v6396_v42  ;;  %v1075_v2 = vshrl.u32 %v4890_v45, 16 }
  0x9f   : > { %v5739_v60 = vld [vmem:[#allocation3 + $0xec] ss:$36 sps:$4 sm:$0xff]   ;;  %1029 = vst [vmem:[#allocation3 + $0x118] sm:$0xf] %v1013_v56  ;;  %v1053_v63 = vor.u32 %v1052_v52, %v1049_v51  ;;  %v1072_v0 = vrot.slane %v1070_v54, 5  ;;  %v1078_v3 = vshll.u32 %v4890_v45, 16 }
  0xa0   : > { %v1067_v1 = vor.u32 %v1066_v58, %v1063_v57  ;;  %v1084_v4 = vshll.u32 %v4891_v50, 16  ;;  %v4894_v5 = vld [vmem:[%s6058_s16 + $0x100] sm:$0xf]  ;;  %2167 = vmatprep.mubr.bf16.mxu0 %v5739_v60  ;;  %v1089_v7 = vshrl.u32 %v4892_v55, 16  ;;  %v1092_v8 = vshll.u32 %v4892_v55, 16 }
  0xa1   : > { %v1054_v6 = vrot.slane %v1053_v63, 4  ;;  %v1098_v9 = vshll.u32 %v4893_v59, 16  ;;  %v4895_v10 = vld [vmem:[%s6058_s16 + $0x104] sm:$0x1]  ;;  %2168 = vmatmul.mubr.bf16.gmra.mxu0 %v5741_v61  ;;  %v3209_v11 = vld [vmem:[#allocation2 + $0x70] sm:$0xf] }
  0xa2   : > { %v1068_v12 = vrot.slane %v1067_v1, 4  ;;  %v1077_v13 = vrot.slane %v1075_v2, 4  ;;  %v1080_v14 = vrot.slane %v1078_v3, 5  ;;  %v1086_v15 = vrot.slane %v1084_v4, 5  ;;  %v4896_v16 = vld [vmem:[%s6058_s16 + $0x108] sm:$0xf] }
  0xa3   : > { %v1059_v17 = vsel %vm6073_vm3, %v1054_v6, %v1058_v20  ;;  %v1091_v18 = vrot.slane %v1089_v7, 4  ;;  %v1094_v19 = vrot.slane %v1092_v8, 5  ;;  %v1100_v21 = vrot.slane %v1098_v9, 5  ;;  %v4897_v22 = vld [vmem:[%s6058_s16 + $0x10c] sm:$0x1] }
  0xa4   : > { %v1207_v23 = vld [vmem:[#allocation3 + $0xf0] sm:$0xff]  ;;  %v1073_v24 = vsel %vm6073_vm3, %v1068_v12, %v1072_v0  ;;  %1166 = vst [vmem:[#allocation3 + $0x20] sm:$0xf] %v1059_v17  ;;  %v1081_v25 = vor.u32 %v1080_v14, %v1077_v13  ;;  %v1103_v26 = vshrl.u32 %v4894_v5, 16  ;;  %v1106_v28 = vshll.u32 %v4894_v5, 16 }
  0xa5   : > { %v4898_v29 = vld [vmem:[%s6058_s16 + $0x110] sm:$0xf]  ;;  %1167 = vst [vmem:[#allocation3 + $0x44] sm:$0xf] %v1073_v24  ;;  %v1095_v30 = vor.u32 %v1094_v19, %v1091_v18  ;;  %v1112_v31 = vshll.u32 %v4895_v10, 16  ;;  %v1117_v32 = vshrl.u32 %v4896_v16, 16 }
  0xa6   : > { %v1120_v33 = vshll.u32 %v4896_v16, 16  ;;  %v4899_v34 = vld [vmem:[%s6058_s16 + $0x114] sm:$0x1]  ;;  %v1212_v35 = vld [vmem:[#allocation3 + $0x114] sm:$0xff]  ;;  %v1082_v37 = vrot.slane %v1081_v25, 4  ;;  %v1105_v38 = vrot.slane %v1103_v26, 4 }
  0xa7   : > { %v5743_v36 = vld [vmem:[#allocation3 + $0xf4] ss:$36 sps:$4 sm:$0xff]   ;;  %v1108_v39 = vrot.slane %v1106_v28, 5  ;;  %3201 = vst [vmem:[#allocation3 + $0x114] sm:$0xf] %v3185_v62  ;;  %v4936_v40 = vcombine.low %v1207_v23, %v1212_v35  ;;  %v1096_v41 = vrot.slane %v1095_v30, 4 }
  0xa8   : > { %3217 = vst [vmem:[#allocation3 + $0x118] sm:$0xf] %v3209_v11  ;;  %v1114_v42 = vrot.slane %v1112_v31, 5  ;;  %v1119_v43 = vrot.slane %v1117_v32, 4  ;;  %v4900_v44 = vld [vmem:[%s6058_s16 + $0x118] sm:$0xf]  ;;  %2232 = vmatprep.mubr.bf16.mxu1 %v5743_v36  ;;  %v1087_v45 = vsel %vm6073_vm3, %v1082_v37, %v1086_v15 }
  0xa9   : > { %v1109_v46 = vor.u32 %v1108_v39, %v1105_v38  ;;  %v1122_v47 = vrot.slane %v1120_v33, 5  ;;  %v1126_v48 = vshll.u32 %v4897_v22, 16  ;;  %v4901_v49 = vld [vmem:[%s6058_s16 + $0x11c] sm:$0x1]  ;;  %v3232_v50 = vld [vmem:[#allocation2 + $0x70] sm:$0xf]  ;;  %2233 = vmatmul.mubr.bf16.gmra.mxu1 %v4936_v40  ;;  %v1101_v51 = vsel %vm6073_vm3, %v1096_v41, %v1100_v21 }
  0xaa   : > { %1168 = vst [vmem:[#allocation3 + $0x68] sm:$0xf] %v1087_v45  ;;  %v1131_v52 = vshrl.u32 %v4898_v29, 16  ;;  %v1134_v54 = vshll.u32 %v4898_v29, 16  ;;  %v1140_v55 = vshll.u32 %v4899_v34, 16  ;;  %v1145_v58 = vshrl.u32 %v4900_v44, 16 }
  0xab   : > { %1169 = vst [vmem:[#allocation3 + $0x8c] sm:$0xf] %v1101_v51  ;;  %v1110_v56 = vrot.slane %v1109_v46, 4  ;;  %v1123_v20 = vor.u32 %v1122_v47, %v1119_v43  ;;  %v1128_v57 = vrot.slane %v1126_v48, 5  ;;  %v1148_v62 = vshll.u32 %v4900_v44, 16 }
  0xac   : > { %v1133_v59 = vrot.slane %v1131_v52, 4  ;;  %v1136_v60 = vrot.slane %v1134_v54, 5  ;;  %v1142_v61 = vrot.slane %v1140_v55, 5  ;;  %v3233_v63 = vld [vmem:[#allocation2 + $0x74] sm:$0x1]  ;;  %v1147_v3 = vrot.slane %v1145_v58, 4 }
  0xad   : > { %v5746_v0 = vld [vmem:[#allocation3 + $0x20] ss:$36 sps:$4 sm:$0xff]   ;;  %v1115_v1 = vsel %vm6073_vm3, %v1110_v56, %v1114_v42  ;;  %v1124_v2 = vrot.slane %v1123_v20, 4  ;;  %v1150_v5 = vrot.slane %v1148_v62, 5  ;;  %v1154_v6 = vshll.u32 %v4901_v49, 16  ;;  %v5753_v62 = vld [vmem:[%s7711_s3 + $0x30] sm:$0xff]  }
  0xae   : > { %1170 = vst [vmem:[#allocation3 + $0xb0] sm:$0xf] %v1115_v1  ;;  %v1137_v4 = vor.u32 %v1136_v60, %v1133_v59  ;;  %v3333_v7 = vshrl.u32 %v3232_v50, 16  ;;  %5547 = vmatprep.mubr.bf16.mxu0 %v5746_v0  ;;  %v3336_v9 = vshll.u32 %v3232_v50, 16  ;;  %v3342_v15 = vshll.u32 %v3233_v63, 16  ;;  %v5751_v58 = vld [vmem:[%s7711_s3 + $0x38] sm:$0xff]  }
  0xaf   : > { %v1129_v8 = vsel %vm6073_vm3, %v1124_v2, %v1128_v57  ;;  %v1151_v11 = vor.u32 %v1150_v5, %v1147_v3  ;;  %v1156_v12 = vrot.slane %v1154_v6, 5  ;;  %v5750_v57 = vld [vmem:[%s7711_s3 + $0x78] sm:$0xff]   ;;  %v5756_v3 = vld [vmem:[%s7711_s3 + $0x68] sm:$0xff]   ;;  %v5758_v5 = vld [vmem:[%s7711_s3 + $0xf0] sm:$0xff]  }
  0xb0   : > { %1171 = vst [vmem:[#allocation3 + $0xd4] sm:$0xf] %v1129_v8  ;;  %v1138_v10 = vrot.slane %v1137_v4, 4  ;;  %v3335_v13 = vrot.slane %v3333_v7, 4  ;;  %v3338_v14 = vrot.slane %v3336_v9, 5  ;;  %v3344_v23 = vrot.slane %v3342_v15, 5  ;;  %5347 = vmatprep.subr.bf16.mxu1 %v5750_v57 }
  0xb1   : > { %v1152_v18 = vrot.slane %v1151_v11, 4  ;;  %5348 = vmatpush3.bf16.msra.mxu1 %v5751_v58  ;;  %v5754_v63 = vld [vmem:[%s7711_s3 + $0xf8] sm:$0xff]   ;;  %v5757_v4 = vld [vmem:[%s7711_s3 + $0x28] sm:$0xff]   ;;  %v5759_v8 = vld [vmem:[%s7711_s3 + $0xb0] sm:$0xff]  }
  0xb2   : > { %v5747_v16 = vld [vmem:[#allocation3 + $0x68] ss:$36 sps:$4 sm:$0xff]   ;;  %v1143_v17 = vsel %vm6073_vm3, %v1138_v10, %v1142_v61  ;;  %v3339_v19 = vor.u32 %v3338_v14, %v3335_v13  ;;  %v5752_v61 = vld [vmem:[%s7711_s3 + $0x70] sm:$0xff]   ;;  %v5755_v2 = vld [vmem:[%s7711_s3 + $0xb8] sm:$0xff]   ;;  %5387 = vmatprep.subr.bf16.mxu0 %v5754_v63 }
  0xb3   : > { %1172 = vst [vmem:[#allocation3 + $0xf8] sm:$0xf] %v1143_v17  ;;  %5548 = vmatmul.mubr.bf16.vlgmr.msra.gmra.mxu0 %v5747_v16  ;;  %v1157_v21 = vsel %vm6073_vm3, %v1152_v18, %v1156_v12  ;;  %5349 = vmatprep.subr.bf16.mxu1 %v5752_v61  ;;  %v5760_v9 = vld [vmem:[%s7711_s3 + $0x60] sm:$0xff]   ;;  %v5762_v11 = vld [vmem:[%s7711_s3 + $0xe8] sm:$0xff]   ;;  %v5764_v15 = vld [vmem:[%s7711_s3 + $0x58] sm:$0xff]  }
  0xb4   : > { %1173 = vst [vmem:[#allocation3 + $0x11c] sm:$0xf] %v1157_v21  ;;  %v3340_v22 = vrot.slane %v3339_v19, 4  ;;  %5388 = vmatpush3.bf16.msra.mxu0 %v5755_v2  ;;  %v5761_v10 = vld [vmem:[%s7711_s3 + $0x20] sm:$0xff]   ;;  %v5763_v14 = vld [vmem:[%s7711_s3 + $0xa8] sm:$0xff]   ;;  %v5765_v16 = vld [vmem:[%s7711_s3 + $0x18] sm:$0xff]  }
  0xb5   : > { %5350 = vmatpush3.bf16.msra.mxu1 %v5753_v62  ;;  %5389 = vmatprep.subr.bf16.mxu0 %v5758_v5  ;;  %v5766_v17 = vld [vmem:[%s7711_s3 + $0xe0] sm:$0xff]   ;;  %v5773_v58 = vld [vmem:[%s7711_s3 + $0x8] sm:$0xff]   ;;  %v5774_v61 = vld [vmem:[%s7711_s3 + $0xd0] sm:$0xff]  }
  0xb6   : > { %v3345_v25 = vsel %vm6073_vm3, %v3340_v22, %v3344_v23  ;;  %5351 = vmatprep.subr.bf16.mxu1 %v5756_v3  ;;  %v5767_v21 = vld [vmem:[%s7711_s3 + $0xa0] sm:$0xff]   ;;  %v5768_v22 = vld [vmem:[%s7711_s3 + $0x50] sm:$0xff]   ;;  %v5778_v5 = vld [vmem:[%s7711_s3 + $0xc8] sm:$0xff]  }
  0xb7   : > { %v5748_v24 = vld [vmem:[#allocation3 + $0xb0] ss:$36 sps:$4 sm:$0xff]   ;;  %v5769_v23 = vld [vmem:[%s7711_s3 + $0x10] sm:$0xff]   ;;  %v5776_v2 = vld [vmem:[%s7711_s3 + $0x40] sm:$0xff]  }
  0xb8   : > { %5551 = vmatprep.mubr.bf16.mxu0 %v5748_v24  ;;  %5390 = vmatpush3.bf16.msra.mxu0 %v5759_v8  ;;  %v5770_v24 = vld [vmem:[%s7711_s3 + $0xd8] sm:$0xff]   ;;  %v5775_v63 = vld [vmem:[%s7711_s3 + $0x90] sm:$0xff]  }
  0xb9   : > { %5352 = vmatpush3.bf16.msra.mxu1 %v5757_v4  ;;  %5391 = vmatprep.subr.bf16.mxu0 %v5762_v11  ;;  %v5777_v4 = vld [vmem:[%s7711_s3] sm:$0xff]  }
  0xba   : > { %5353 = vmatprep.subr.bf16.mxu1 %v5760_v9  ;;  %v5779_v9 = vld [vmem:[%s7711_s3 + $0x88] sm:$0xff]  }
  0xbb   : > { %v5749_v26 = vld [vmem:[#allocation3 + $0xf8] ss:$36 sps:$4 sm:$0xff]  }
  0xbc   : > { %3361 = vst [vmem:[#allocation3 + $0x11c] sm:$0xf] %v3345_v25  ;;  %5552 = vmatmul.mubr.bf16.gmra.mxu0 %v5749_v26 }
  0xbd   : > { %5354 = vmatpush3.bf16.msra.mxu1 %v5761_v10  ;;  %5392 = vmatpush3.bf16.msra.mxu0 %v5763_v14  ;;  %v5783_v10 = vld [vmem:[%s7711_s3 + $0x178] sm:$0xff]   ;;  %v5784_v14 = vld [vmem:[%s7711_s3 + $0xc0] sm:$0xff]  }
  0xbe   : > { %5355 = vmatprep.subr.bf16.mxu1 %v5764_v15  ;;  %5393 = vmatprep.subr.bf16.mxu0 %v5766_v17 }
  0xc1   : > { %5356 = vmatpush3.bf16.msra.mxu1 %v5765_v16  ;;  %5394 = vmatpush3.bf16.msra.mxu0 %v5767_v21  ;;  %v5786_v16 = vld [vmem:[%s7711_s3 + $0x80] sm:$0xff]  }
  0xc2   : > { %5357 = vmatprep.subr.bf16.mxu1 %v5768_v22  ;;  %5395 = vmatprep.subr.bf16.mxu0 %v5770_v24  ;;  %v5794_v22 = vld [vmem:[%s7711_s3 + $0x1f8] sm:$0xff]  }
  0xc5   : > { %5358 = vmatpush3.bf16.msra.mxu1 %v5769_v23 }
  0xf1   : > { %v6434_v28 = vpop.f32.mrf.mxu0 }
  0xf3   : > { %v6436_v29 = vpop.f32.mrf.mxu0 }
  0xf5   : > { %v6438_v30 = vpop.f32.mrf.mxu0 }
  0xf7   : > { %v6440_v31 = vpop.f32.mrf.mxu0  ;;  %v6442_v32 = vpop.f32.mrf.mxu1 }
  0xf9   : > { %v6446_v34 = vpop.f32.mrf.mxu1 }
  0xfb   : > { %v6450_v36 = vpop.f32.mrf.mxu1 }
  0xfd   : > { %v6454_v38 = vpop.f32.mrf.mxu1 }
 0x101   : > { %v6444_v33 = vpop.f32.mrf.mxu0 }
 0x103   : > { %v6448_v35 = vpop.f32.mrf.mxu0 }
 0x105   : > { %v6452_v37 = vpop.f32.mrf.mxu0 }
 0x107   : > { %v6456_v39 = vpop.f32.mrf.mxu0  ;;  %v6458_v40 = vpop.f32.mrf.mxu1 }
 0x109   : > { %v6464_v43 = vpop.f32.mrf.mxu1 }
 0x10b   : > { %v6468_v47 = vpop.f32.mrf.mxu1 }
 0x10d   : > { %v6470_v48 = vpop.f32.mrf.mxu1 }
 0x110   : > { %v6460_v41 = vpop.f32.mrf.mxu0 }
 0x112   : > { %v6462_v42 = vpop.f32.mrf.mxu0 }
 0x114   : > { %v5206_v44 = vpop.f32.mrf.mxu0 }
 0x115   : > { %v6472_v49 = vpop.f32.mrf.mxu1 }
 0x116   : > { %v5207_v45 = vpop.f32.mrf.mxu0 }
 0x117   : > { %v6466_v46 = vadd.f32 %v5207_v45, %v5206_v44  ;;  %v6474_v50 = vpop.f32.mrf.mxu1  ;;  %v5771_v44 = vld [vmem:[%s7711_s3 + $0x98] sm:$0xff]   ;;  %v5772_v45 = vld [vmem:[%s7711_s3 + $0x48] sm:$0xff]  }
 0x118   : > { %5396 = vmatpush3.bf16.msra.mxu0 %v5771_v44  ;;  %5359 = vmatprep.subr.bf16.mxu1 %v5772_v45 }
 0x119   : > { %v6476_v51 = vpop.f32.mrf.mxu1  ;;  %5360 = vmatpush3.bf16.msra.mxu1 %v5773_v58  ;;  %5397 = vmatprep.subr.bf16.mxu0 %v5774_v61  ;;  %v5193_v58 = vadd.f32 %v6436_v29, %v6434_v28  ;;  %v4902_v61 = vld [vmem:[%s7710_s2] ss:$0 sm:$0xff]  ;;  %v5233_v29 = vadd.f32 %v6446_v34, %v6442_v32 }
 0x11a   : > { %5361 = vmatprep.subr.bf16.mxu1 %v5776_v2  ;;  %v5199_v2 = vadd.f32 %v6448_v35, %v6444_v33  ;;  %v5239_v33 = vadd.f32 %v6464_v43, %v6458_v40  ;;  %v2472_v43 = vld [vmem:[#allocation2 + $0xc] sm:$0x8] }
 0x11b   : > { %v6480_v54 = vpop.f32.mrf.mxu1  ;;  %v2016_v28 = vadd.f32 %v5193_v58, %v4902_v61  ;;  %v2628_v58 = vld [vmem:[#allocation2 + $0x14] sm:$0x1] }
 0x11c   : > { %5398 = vmatpush3.bf16.msra.mxu0 %v5775_v63  ;;  %v5196_v63 = vadd.f32 %v6440_v31, %v6438_v30  ;;  %v5236_v30 = vadd.f32 %v6454_v38, %v6450_v36  ;;  %v2024_v31 = vadd.f32 %v5199_v2, %v4902_v61  ;;  %v2476_v36 = vld [vmem:[#allocation2 + $0x24] sm:$0x8] }
 0x11d   : > { %5362 = vmatpush3.bf16.msra.mxu1 %v5777_v4  ;;  %5399 = vmatprep.subr.bf16.mxu0 %v5778_v5  ;;  %v5202_v4 = vadd.f32 %v6456_v39, %v6452_v37  ;;  %v5205_v5 = vadd.f32 %v6462_v42, %v6460_v41  ;;  %v5242_v37 = vadd.f32 %v6470_v48, %v6468_v47 }
 0x11e   : > { %v6478_v52 = vpop.f32.mrf.mxu0  ;;  %5427 = vmatprep.subr.bf16.mxu1 %v5783_v10  ;;  %v5245_v41 = vadd.f32 %v6474_v50, %v6472_v49  ;;  %v2081_v38 = vadd.f32 %v5233_v29, %v2016_v28  ;;  %v2089_v47 = vadd.f32 %v5239_v33, %v2024_v31  ;;  %v2474_v50 = vld [vmem:[#allocation2 + $0x18] sm:$0x8] }
 0x11f   : > { %v2027_v35 = vadd.f32 %v5202_v4, %v4902_v61  ;;  %v2032_v39 = vadd.f32 %v5205_v5, %v4902_v61  ;;  %v2516_v29 = vshrl.u32 %v2474_v50, 16 }
 0x120   : > { %v6482_v55 = vpop.f32.mrf.mxu0  ;;  %5400 = vmatpush3.bf16.msra.mxu0 %v5779_v9 }
 0x121   : > { %5401 = vmatprep.subr.bf16.mxu0 %v5784_v14  ;;  %v2019_v14 = vadd.f32 %v5196_v63, %v4902_v61  ;;  %v5211_v32 = vadd.f32 %v6482_v55, %v6478_v52  ;;  %v2092_v52 = vadd.f32 %v5242_v37, %v2027_v35  ;;  %v6677_v55 = vadd.f32 %v5245_v41, %v2032_v39  ;;  %v2630_v37 = vld [vmem:[#allocation2 + $0x20] sm:$0x1]  ;;  %v2632_v39 = vld [vmem:[#allocation2 + $0x2c] sm:$0x1] }
 0x122   : > { %v6486_v20 = vpop.f32.mrf.mxu0  ;;  %v2035_v63 = vadd.f32 %v6466_v46, %v4902_v61 }
 0x123   : > { %v2040_v4 = vadd.f32 %v5211_v32, %v4902_v61 }
 0x124   : > { %v6484_v56 = vpop.f32.mrf.mxu1  ;;  %v6496_v60 = vpop.f32.mrf.mxu0  ;;  %5402 = vmatpush3.bf16.msra.mxu0 %v5786_v16  ;;  %v2769_v16 = vld [vmem:[#allocation2 + $0xc] sm:$0x8] }
 0x125   : > { %5467 = vmatprep.subr.bf16.mxu0 %v5794_v22  ;;  %v5214_v40 = vadd.f32 %v6496_v60, %v6486_v20  ;;  %v2084_v22 = vadd.f32 %v5236_v30, %v2019_v14  ;;  %v2529_v20 = vshrl.u32 %v2476_v36, 16  ;;  %v5248_v60 = vadd.f32 %v6480_v54, %v6476_v51  ;;  %v2773_v30 = vld [vmem:[#allocation2 + $0x24] sm:$0x8]  ;;  %v2478_v36 = vld [vmem:[#allocation2 + $0x30] sm:$0x8] }
 0x126   : > { %v6494_v59 = vpop.f32.mrf.mxu1  ;;  %v2786_v28 = vshrl.u32 %v2769_v16, 16  ;;  %v2665_v14 = vshll.u32 %v2628_v58, 16  ;;  %v2484_v16 = vld [vmem:[#allocation2 + $0x54] sm:$0x8] }
 0x127   : > { %v5251_v46 = vadd.f32 %v6494_v59, %v6484_v56 }
 0x128   : > { %v6507_v0 = vpop.f32.mrf.mxu1  ;;  %v6712_v32 = vrot.slane %v2665_v14, 5  ;;  %v2581_v14 = vshrl.u32 %v2484_v16, 16 }
 0x12a   : > { %v6523_v6 = vpop.f32.mrf.mxu1 }
 0x12b   : > { %v5254_v31 = vadd.f32 %v6523_v6, %v6507_v0  ;;  %v6706_v6 = vrot.slane %v2786_v28, 11 }
 0x130   : > { %v6509_v1 = vpop.f32.mrf.mxu0 }
 0x132   : > { %v6525_v7 = vpop.f32.mrf.mxu0 }
 0x133   : > { %v5273_v48 = vadd.f32 %v6525_v7, %v6509_v1  ;;  %v2503_v1 = vshrl.u32 %v2472_v43, 16  ;;  %v2771_v7 = vld [vmem:[#allocation2 + $0x18] sm:$0x8]  ;;  %v2634_v43 = vld [vmem:[#allocation2 + $0x38] sm:$0x1] }
 0x134   : > { %v6541_v13 = vpop.f32.mrf.mxu0 }
 0x135   : > { %v2146_v51 = vadd.f32 %v5273_v48, %v2081_v38  ;;  %v6704_v0 = vrot.slane %v2503_v1, 11  ;;  %v6714_v38 = vadd.f32 %v5248_v60, %v2035_v63  ;;  %v2542_v63 = vshrl.u32 %v2478_v36, 16  ;;  %v2640_v60 = vld [vmem:[#allocation2 + $0x5c] sm:$0x1] }
 0x136   : > { %v6539_v12 = vpop.f32.mrf.mxu1  ;;  %v6557_v19 = vpop.f32.mrf.mxu0 }
 0x137   : > { %v5276_v49 = vadd.f32 %v6557_v19, %v6541_v13  ;;  %v2043_v13 = vadd.f32 %v5214_v40, %v4902_v61  ;;  %v2693_v40 = vshll.u32 %v2632_v39, 16  ;;  %v6736_v39 = vrot.slane %v2542_v63, 11 }
 0x138   : > { %v6555_v18 = vpop.f32.mrf.mxu1 }
 0x139   : > { %v2149_v54 = vadd.f32 %v5276_v49, %v2084_v22  ;;  %v5313_v33 = vadd.f32 %v6555_v18, %v6539_v12  ;;  %v2775_v12 = vld [vmem:[#allocation2 + $0x30] sm:$0x8]  ;;  %v2812_v18 = vshrl.u32 %v2773_v30, 16  ;;  %v6716_v22 = vadd.f32 %v5254_v31, %v2043_v13  ;;  %v6724_v30 = vld [vmem:[#allocation2 + $0x24] sm:$0x8] }
 0x13a   : > { %v6571_v25 = vpop.f32.mrf.mxu1  ;;  %v2825_v50 = vshrl.u32 %v2775_v12, 16  ;;  %v6728_v31 = vrot.slane %v2693_v40, 5  ;;  %v3096_v12 = vshrl.u32 %v6724_v30, 16 }
 0x13b   : > { %v2211_v49 = vadd.f32 %v5313_v33, %v2146_v51 }
 0x13c   : > { %v6589_v62 = vpop.f32.mrf.mxu1 }
 0x13d   : > { %v5316_v61 = vadd.f32 %v6589_v62, %v6571_v25  ;;  %v6710_v62 = vrot.slane %v2516_v29, 11  ;;  %v2707_v29 = vshll.u32 %v2634_v43, 16  ;;  %v6751_v43 = vld [vmem:[#allocation2 + $0x48] sm:$0x8] }
 0x13f   : > { %v2214_v1 = vadd.f32 %v5316_v61, %v2149_v54  ;;  %v6732_v61 = vrot.slane %v2825_v50, 11  ;;  %v6741_v36 = vrot.slane %v2707_v29, 5 }
 0x141   : > { %7729 = vst [vmem:[#allocation4_spill] sm:$0xff] %v6741_v36 }
 0x142   : > { %v6573_v26 = vpop.f32.mrf.mxu0 }
 0x144   : > { %v6581_v57 = vpop.f32.mrf.mxu0 }
 0x145   : > { %v5279_v19 = vadd.f32 %v6581_v57, %v6573_v26  ;;  %v6698_v26 = vrot.slane %v2529_v20, 11  ;;  %v2799_v57 = vshrl.u32 %v2771_v7, 16  ;;  %v6720_v7 = vrot.slane %v2812_v18, 11 }
 0x146   : > { %v6597_v3 = vpop.f32.mrf.mxu0  ;;  %v6605_v8 = vpop.f32.mrf.mxu1 }
 0x147   : > { %v2154_v41 = vadd.f32 %v5279_v19, %v2089_v47  ;;  %v6718_v47 = vrot.slane %v2799_v57, 11  ;;  %v2636_v19 = vld [vmem:[#allocation2 + $0x44] sm:$0x1]  ;;  %v2749_v57 = vshll.u32 %v2640_v60, 16 }
 0x148   : > { %v6613_v11 = vpop.f32.mrf.mxu0  ;;  %v6618_v15 = vpop.f32.mrf.mxu1 }
 0x149   : > { %v5282_v56 = vadd.f32 %v6613_v11, %v6597_v3  ;;  %v5319_v25 = vadd.f32 %v6618_v15, %v6605_v8  ;;  %v2105_v3 = vadd.f32 %v5251_v46, %v2040_v4  ;;  %v2679_v11 = vshll.u32 %v2630_v37, 16  ;;  %v2480_v8 = vld [vmem:[#allocation2 + $0x3c] sm:$0x8]  ;;  %v2781_v4 = vld [vmem:[#allocation2 + $0x54] sm:$0x8] }
 0x14a   : > { %v6625_v21 = vpop.f32.mrf.mxu1  ;;  %v2777_v15 = vld [vmem:[#allocation2 + $0x3c] sm:$0x8] }
 0x14b   : > { %v2157_v58 = vadd.f32 %v5282_v56, %v2092_v52  ;;  %v2219_v13 = vadd.f32 %v5319_v25, %v2154_v41  ;;  %v6726_v46 = vrot.slane %v2679_v11, 5  ;;  %v2555_v52 = vshrl.u32 %v2480_v8, 16 }
 0x14c   : > { %v6632_v24 = vpop.f32.mrf.mxu1  ;;  %v2838_v51 = vshrl.u32 %v2777_v15, 16  ;;  %v2721_v56 = vshll.u32 %v2636_v19, 16  ;;  %v6757_v8 = vrot.slane %v2749_v57, 5  ;;  %v2851_v19 = vshrl.u32 %v6751_v43, 16 }
 0x14d   : > { %v5322_v28 = vadd.f32 %v6632_v24, %v6625_v21  ;;  %v2864_v21 = vshrl.u32 %v2781_v4, 16  ;;  %v6749_v40 = vrot.slane %v2555_v52, 11 }
 0x14e   : > { %v6753_v16 = vrot.slane %v2838_v51, 11  ;;  %7732 = vst [vmem:[#allocation7_spill] sm:$0xff] %v6757_v8  ;;  %v6766_v4 = vrot.slane %v2721_v56, 5 }
 0x14f   : > { %v2222_v25 = vadd.f32 %v5322_v28, %v2157_v58  ;;  %v6759_v15 = vrot.slane %v2864_v21, 11  ;;  %v2482_v28 = vld [vmem:[#allocation2 + $0x48] sm:$0x8] }
 0x150   : > { %v6623_v17 = vpop.f32.mrf.mxu0  ;;  %7731 = vst [vmem:[#allocation6_spill] sm:$0xff] %v6753_v16  ;;  %7734 = vst [vmem:[#allocation9_spill] sm:$0xff] %v6766_v4 }
 0x151   : > { %7733 = vst [vmem:[#allocation8_spill] sm:$0xff] %v6759_v15 }
 0x152   : > { %v6630_v23 = vpop.f32.mrf.mxu0 }
 0x153   : > { %v5285_v54 = vadd.f32 %v6630_v23, %v6623_v17  ;;  %v6743_v17 = vrot.slane %v2581_v14, 11 }
 0x154   : > { %v6634_v44 = vpop.f32.mrf.mxu0 }
 0x155   : > { %7730 = vst [vmem:[#allocation5_spill] sm:$0xff] %v6743_v17  ;;  %v2162_v50 = vadd.f32 %v5285_v54, %v6677_v55  ;;  %v2783_v54 = vld [vmem:[#allocation2 + $0x60] sm:$0x8] }
 0x156   : > { %v6636_v45 = vpop.f32.mrf.mxu1  ;;  %v6651_v9 = vpop.f32.mrf.mxu0 }
 0x157   : > { %v5288_v55 = vadd.f32 %v6651_v9, %v6634_v44 }
 0x158   : > { %v6653_v10 = vpop.f32.mrf.mxu1 }
 0x159   : > { %v5325_v57 = vadd.f32 %v6653_v10, %v6636_v45 }
 0x15a   : > { %v6669_v34 = vpop.f32.mrf.mxu1 }
 0x15c   : > { %v6684_v5 = vpop.f32.mrf.mxu1 }
 0x161   : > { %v6665_v42 = vpop.f32.mrf.mxu0 }
 0x163   : > { %v6680_v2 = vpop.f32.mrf.mxu0 }
 0x164   : > { %v5291_v18 = vadd.f32 %v6680_v2, %v6665_v42 }
 0x165   : > { %v6696_v35 = vpop.f32.mrf.mxu0 }
 0x167   : > { %v5293_v48 = vpop.f32.mrf.mxu0 }
 0x168   : > { %v5294_v42 = vadd.f32 %v5293_v48, %v6696_v35  ;;  %v2170_v35 = vadd.f32 %v5291_v18, %v2105_v3 }
 0x169   : > { %v6702_v59 = vpop.f32.mrf.mxu1 }
 0x16a   : > { %v2173_v44 = vadd.f32 %v5294_v42, %v6716_v22  ;;  %v6787_v42 = vld [vmem:[#allocation2 + $0x18] sm:$0x8] }
 0x16b   : > { %v5330_v20 = vpop.f32.mrf.mxu1 }
 0x16c   : > { %v5331_v48 = vadd.f32 %v5330_v20, %v6702_v59  ;;  %v2568_v59 = vshrl.u32 %v2482_v28, 16 }
 0x16d   : > { %v5332_v24 = vpop.f32.mrf.mxu1 }
 0x16e   : > { %v2235_v18 = vadd.f32 %v5331_v48, %v2170_v35 }
 0x16f   : > { %v5333_v58 = vpop.f32.mrf.mxu1 }
 0x170   : > { %v5334_v9 = vadd.f32 %v5333_v58, %v5332_v24 }
 0x173   : > { %v5549_v33 = vpop.f32.mrf.mxu0 }
 0x174   : > { %v6734_v37 = vadd.f32 %v5549_v33, %v2219_v13  ;;  %v2922_v33 = vld [vmem:[#allocation2 + $0x14] sm:$0x1] }
 0x175   : > { %v2275_v41 = vpop.f32.mrf.mxu0  ;;  %v2947_v43 = vshll.u32 %v2922_v33, 16 }
 0x176   : > { %v2308_v23 = vmul.f32 %v6734_v37, %v6734_v37  ;;  %v6747_v11 = vadd.f32 %v2275_v41, %v2211_v49 }
 0x177   : > { %v5550_v2 = vpop.f32.mrf.mxu0 }
 0x178   : > { %v2316_v63 = vmul.f32 %v2308_v23, %v6734_v37  ;;  %v2306_v49 = vmul.f32 %v6747_v11, %v6747_v11  ;;  %v6764_v60 = vadd.f32 %v5550_v2, %v2222_v25  ;;  %v2877_v25 = vshrl.u32 %v2783_v54, 16  ;;  %v2924_v23 = vld [vmem:[#allocation2 + $0x20] sm:$0x1]  ;;  %v2638_v54 = vld [vmem:[#allocation2 + $0x50] sm:$0x1] }
 0x179   : > { %v2278_v13 = vpop.f32.mrf.mxu0  ;;  %v5328_v2 = vadd.f32 %v6684_v5, %v6669_v34 }
 0x17a   : > { %v2324_v29 = vmul.f32 0.044715, %v2316_v63  ;;  %v2314_v14 = vmul.f32 %v2306_v49, %v6747_v11  ;;  %v2309_v52 = vmul.f32 %v6764_v60, %v6764_v60  ;;  %v6775_v51 = vadd.f32 %v2278_v13, %v2214_v1 }
 0x17b   : > { %v2165_v1 = vadd.f32 %v5288_v55, %v6714_v38  ;;  %v2227_v63 = vadd.f32 %v5325_v57, %v2162_v50  ;;  %v2238_v49 = vadd.f32 %v5334_v9, %v2173_v44 }
 0x17c   : > { %v2332_v3 = vadd.f32 %v2324_v29, %v6734_v37  ;;  %v2322_v20 = vmul.f32 0.044715, %v2314_v14  ;;  %v2317_v21 = vmul.f32 %v2309_v52, %v6764_v60  ;;  %v2307_v56 = vmul.f32 %v6775_v51, %v6775_v51  ;;  %v5553_v41 = vpop.f32.mrf.mxu0 }
 0x17d   : > { %v6791_v58 = vadd.f32 %v5553_v41, %v2235_v18  ;;  %v2961_v14 = vshll.u32 %v2924_v23, 16  ;;  %v3083_v52 = vshrl.u32 %v6787_v42, 16  ;;  %v2230_v44 = vadd.f32 %v5328_v2, %v2165_v1  ;;  %v2926_v42 = vld [vmem:[#allocation2 + $0x2c] sm:$0x1]  ;;  %v2928_v2 = vld [vmem:[#allocation2 + $0x38] sm:$0x1] }
 0x17e   : > { %v2340_v45 = vmul.f32 0.7978846, %v2332_v3  ;;  %v2330_v10 = vadd.f32 %v2322_v20, %v6747_v11  ;;  %v2325_v22 = vmul.f32 0.044715, %v2317_v21  ;;  %v2315_v24 = vmul.f32 %v2307_v56, %v6775_v51  ;;  %v2291_v38 = vpop.f32.mrf.mxu0 }
 0x17f   : > { %v2312_v48 = vmul.f32 %v6791_v58, %v6791_v58  ;;  %v6796_v13 = vadd.f32 %v2291_v38, %v2227_v63  ;;  %v6805_v3 = vrot.slane %v2851_v19, 11  ;;  %v6809_v56 = vrot.slane %v2568_v59, 11  ;;  %v3070_v63 = vld [vmem:[#allocation2 + $0x30] sm:$0x8]  ;;  %v3072_v38 = vld [vmem:[#allocation2 + $0x3c] sm:$0x8] }
 0x180   : > { %5877 = vtanh.f32 %v2340_v45  ;;  %v2338_v28 = vmul.f32 0.7978846, %v2330_v10  ;;  %v2333_v55 = vadd.f32 %v2325_v22, %v6764_v60  ;;  %v2323_v35 = vmul.f32 0.044715, %v2315_v24  ;;  %v5554_v29 = vpop.f32.mrf.mxu0 }
 0x181   : > { %v6800_v50 = vadd.f32 %v5554_v29, %v2238_v49  ;;  %v2320_v33 = vmul.f32 %v2312_v48, %v6791_v58  ;;  %v2310_v57 = vmul.f32 %v6796_v13, %v6796_v13  ;;  %7735 = vst [vmem:[#allocation10_spill] sm:$0xff] %v6805_v3  ;;  %7736 = vst [vmem:[#allocation11_spill] sm:$0xff] %v6809_v56  ;;  %v2735_v45 = vshll.u32 %v2638_v54, 16  ;;  %v3076_v48 = vld [vmem:[#allocation2 + $0x54] sm:$0x8] }
 0x182   : > { %5879 = vtanh.f32 %v2338_v28  ;;  %v2341_v34 = vmul.f32 0.7978846, %v2333_v55  ;;  %v2331_v5 = vadd.f32 %v2323_v35, %v6775_v51  ;;  %v2294_v9 = vpop.f32.mrf.mxu0  ;;  %v6815_v1 = vrot.slane %v2877_v25, 11  ;;  %v2930_v35 = vld [vmem:[#allocation2 + $0x44] sm:$0x1] }
 0x183   : > { %v2313_v21 = vmul.f32 %v6800_v50, %v6800_v50  ;;  %v2328_v18 = vmul.f32 0.044715, %v2320_v33  ;;  %v2318_v41 = vmul.f32 %v2310_v57, %v6796_v13  ;;  %v6812_v23 = vadd.f32 %v2294_v9, %v2230_v44 }
 0x184   : > { %5881 = vtanh.f32 %v2341_v34  ;;  %v2339_v20 = vmul.f32 0.7978846, %v2331_v5  ;;  %7737 = vst [vmem:[#allocation12_spill] sm:$0xff] %v6815_v1  ;;  %v6817_v19 = vrot.slane %v2947_v43, 5  ;;  %v6824_v43 = vrot.slane %v2961_v14, 5 }
 0x185   : > { %v2321_v10 = vmul.f32 %v2313_v21, %v6800_v50  ;;  %v2336_v22 = vadd.f32 %v2328_v18, %v6791_v58  ;;  %v2326_v24 = vmul.f32 0.044715, %v2318_v41  ;;  %v2311_v55 = vmul.f32 %v6812_v23, %v6812_v23  ;;  %v3074_v5 = vld [vmem:[#allocation2 + $0x48] sm:$0x8] }
 0x186   : > { %5883 = vtanh.f32 %v2339_v20  ;;  %7738 = vst [vmem:[#allocation13_spill] sm:$0xff] %v6817_v19  ;;  %7739 = vst [vmem:[#allocation14_spill] sm:$0xff] %v6824_v43  ;;  %v2975_v29 = vshll.u32 %v2926_v42, 16  ;;  %v2989_v34 = vshll.u32 %v2928_v2, 16  ;;  %v3109_v33 = vshrl.u32 %v3070_v63, 16 }
 0x187   : > { %v2329_v59 = vmul.f32 0.044715, %v2321_v10  ;;  %v2344_v49 = vmul.f32 0.7978846, %v2336_v22  ;;  %v2334_v28 = vadd.f32 %v2326_v24, %v6796_v13  ;;  %v3122_v57 = vshrl.u32 %v3072_v38, 16 }
 0x188   : > { %v6826_v9 = vrot.slane %v2735_v45, 5  ;;  %v3003_v20 = vshll.u32 %v2930_v35, 16  ;;  %v3148_v21 = vshrl.u32 %v3076_v48, 16  ;;  %v2319_v41 = vmul.f32 %v2311_v55, %v6812_v23  ;;  %v2932_v42 = vld [vmem:[#allocation2 + $0x50] sm:$0x1] }
 0x189   : > { %v2337_v25 = vadd.f32 %v2329_v59, %v6800_v50  ;;  %5885 = vtanh.f32 %v2344_v49  ;;  %v2342_v54 = vmul.f32 0.7978846, %v2334_v28  ;;  %v6829_v10 = vrot.slane %v3083_v52, 11  ;;  %v2934_v2 = vld [vmem:[#allocation2 + $0x5c] sm:$0x1] }
 0x18a   : > { %7740 = vst [vmem:[#allocation15_spill] sm:$0xff] %v6826_v9  ;;  %v3135_v14 = vshrl.u32 %v3074_v5, 16  ;;  %v6833_v24 = vrot.slane %v3096_v12, 11  ;;  %v6835_v45 = vld [vmem:[#allocation3 + $0x10] sm:$0xf]  ;;  %v6837_v63 = vrot.slane %v2975_v29, 5 }
 0x18b   : > { %v2345_v44 = vmul.f32 0.7978846, %v2337_v25  ;;  %5887 = vtanh.f32 %v2342_v54  ;;  %7741 = vst [vmem:[#allocation16_spill] sm:$0xff] %v6829_v10  ;;  %7743 = vst [vmem:[#allocation18_spill] sm:$0xff] %v6835_v45  ;;  %v6839_v38 = vrot.slane %v2989_v34, 5  ;;  %v6841_v49 = vrot.slane %v3109_v33, 11 }
 0x18c   : > { %7742 = vst [vmem:[#allocation17_spill] sm:$0xff] %v6833_v24  ;;  %7744 = vst [vmem:[#allocation19_spill] sm:$0xff] %v6837_v63  ;;  %v6843_v52 = vrot.slane %v3122_v57, 11  ;;  %v6845_v35 = vld [vmem:[#allocation3 + $0x34] sm:$0xf]  ;;  %v6847_v30 = vrot.slane %v3003_v20, 5 }
 0x18d   : > { %v5878_v18 = vpop.eup %5877  ;;  %5889 = vtanh.f32 %v2345_v44  ;;  %7745 = vst [vmem:[#allocation20_spill] sm:$0xff] %v6839_v38  ;;  %7746 = vst [vmem:[#allocation21_spill] sm:$0xff] %v6841_v49  ;;  %v6849_v12 = vrot.slane %v3148_v21, 11  ;;  %v2327_v25 = vmul.f32 0.044715, %v2319_v41  ;;  %v3017_v5 = vshll.u32 %v2932_v42, 16 }
 0x18e   : > { %v2356_v22 = vadd.f32 1.0, %v5878_v18  ;;  %7747 = vst [vmem:[#allocation22_spill] sm:$0xff] %v6843_v52  ;;  %7748 = vst [vmem:[#allocation23_spill] sm:$0xff] %v6845_v35  ;;  %v6851_v54 = vrot.slane %v3135_v14, 11  ;;  %v3031_v29 = vshll.u32 %v2934_v2, 16 }
 0x18f   : > { %v5880_v59 = vpop.eup %5879  ;;  %7749 = vst [vmem:[#allocation24_spill] sm:$0xff] %v6847_v30  ;;  %7750 = vst [vmem:[#allocation25_spill] sm:$0xff] %v6849_v12  ;;  %v6854_v57 = vld [vmem:[#allocation3 + $0x58] sm:$0xf]  ;;  %v6856_v18 = vld [vmem:[#allocation3 + $0x7c] sm:$0xf] }
 0x190   : > { %v2364_v28 = vmul.f32 0.5, %v2356_v22  ;;  %v2354_v55 = vadd.f32 1.0, %v5880_v59  ;;  %7751 = vst [vmem:[#allocation26_spill] sm:$0xff] %v6851_v54  ;;  %7752 = vst [vmem:[#allocation27_spill] sm:$0xff] %v6854_v57  ;;  %v2936_v22 = vld [vmem:[#allocation2 + $0x68] sm:$0x1] }
 0x191   : > { %v5882_v48 = vpop.eup %5881  ;;  %7753 = vst [vmem:[#allocation28_spill] sm:$0xff] %v6856_v18  ;;  %v3078_v59 = vld [vmem:[#allocation2 + $0x60] sm:$0x8]  ;;  %v3219_v12 = vld [vmem:[#allocation2 + $0x20] sm:$0x1]  ;;  %v3045_v54 = vshll.u32 %v2936_v22, 16 }
 0x192   : > { %v2372_v34 = vmul.f32 %v2364_v28, %v6734_v37  ;;  %v2362_v33 = vmul.f32 0.5, %v2354_v55  ;;  %v2357_v44 = vadd.f32 1.0, %v5882_v48  ;;  %v3221_v41 = vld [vmem:[#allocation2 + $0x2c] sm:$0x1]  ;;  %v3223_v42 = vld [vmem:[#allocation2 + $0x38] sm:$0x1]  ;;  %v2335_v48 = vadd.f32 %v2327_v25, %v6812_v23 }
 0x193   : > { %v5884_v21 = vpop.eup %5883  ;;  %v3225_v28 = vld [vmem:[#allocation2 + $0x44] sm:$0x1]  ;;  %v3229_v55 = vld [vmem:[#allocation2 + $0x5c] sm:$0x1]  ;;  %v3161_v38 = vshrl.u32 %v3078_v59, 16  ;;  %v3244_v63 = vshll.u32 %v3219_v12, 16 }
 0x194   : > { %v5169_v14 = vpack.c.bf16 %v2372_v34, %v2372_v34  ;;  %v2370_v2 = vmul.f32 %v2362_v33, %v6747_v11  ;;  %v2365_v30 = vmul.f32 0.5, %v2357_v44  ;;  %v2355_v37 = vadd.f32 1.0, %v5884_v21  ;;  %v3227_v52 = vld [vmem:[#allocation2 + $0x50] sm:$0x1]  ;;  %v3231_v20 = vld [vmem:[#allocation2 + $0x68] sm:$0x1] }
 0x195   : > { %v3258_v11 = vshll.u32 %v3221_v41, 16  ;;  %v3272_v33 = vshll.u32 %v3223_v42, 16  ;;  %v3286_v44 = vshll.u32 %v3225_v28, 16  ;;  %v3314_v21 = vshll.u32 %v3229_v55, 16 }
 0x196   : > { %2464 = vst [vmem:[#allocation2 + $0x28] sm:$0xf] %v5169_v14  ;;  %v5167_v35 = vpack.c.bf16 %v2370_v2, %v2370_v2  ;;  %v2373_v45 = vmul.f32 %v2365_v30, %v6764_v60  ;;  %v2363_v34 = vmul.f32 0.5, %v2355_v37  ;;  %v5886_v24 = vpop.eup %5885  ;;  %v3300_v59 = vshll.u32 %v3227_v52, 16 }
 0x197   : > { %v3328_v43 = vshll.u32 %v3231_v20, 16  ;;  %v2360_v19 = vadd.f32 1.0, %v5886_v24  ;;  %v2343_v49 = vmul.f32 0.7978846, %v2335_v48  ;;  %v6866_v18 = vrot.slane %v3017_v5, 5 }
 0x198   : > { %2462 = vst [vmem:[#allocation2 + $0x10] sm:$0xf] %v5167_v35  ;;  %v5170_v25 = vpack.c.bf16 %v2373_v45, %v2373_v45  ;;  %v2371_v22 = vmul.f32 %v2363_v34, %v6775_v51  ;;  %v6868_v14 = vrot.slane %v3031_v29, 5  ;;  %v5888_v60 = vpop.eup %5887  ;;  %v6870_v12 = vrot.slane %v3045_v54, 5 }
 0x199   : > { %7754 = vst [vmem:[#allocation29_spill] sm:$0xff] %v6866_v18  ;;  %v6872_v41 = vrot.slane %v3161_v38, 11  ;;  %v6874_v42 = vrot.slane %v3244_v63, 5  ;;  %v2368_v35 = vmul.f32 0.5, %v2360_v19  ;;  %v6876_v51 = vrot.slane %v3258_v11, 5 }
 0x19a   : > { %7755 = vst [vmem:[#allocation30_spill] sm:$0xff] %v6868_v14  ;;  %2465 = vst [vmem:[#allocation2 + $0x34] sm:$0xf] %v5170_v25  ;;  %v5168_v30 = vpack.c.bf16 %v2371_v22, %v2371_v22  ;;  %v5890_v45 = vpop.eup %5889  ;;  %v6878_v52 = vrot.slane %v3272_v33, 5  ;;  %v6880_v24 = vrot.slane %v3286_v44, 5  ;;  %v2358_v5 = vadd.f32 1.0, %v5888_v60 }
 0x19b   : > { %7756 = vst [vmem:[#allocation31_spill] sm:$0xff] %v6870_v12  ;;  %7757 = vst [vmem:[#allocation32_spill] sm:$0xff] %v6872_v41  ;;  %v6882_v29 = vrot.slane %v3300_v59, 5  ;;  %v6884_v20 = vrot.slane %v3314_v21, 5  ;;  %v6886_v54 = vrot.slane %v3328_v43, 5  ;;  %5891 = vtanh.f32 %v2343_v49 }
 0x19c   : > { %7758 = vst [vmem:[#allocation33_spill] sm:$0xff] %v6874_v42  ;;  %7759 = vst [vmem:[#allocation34_spill] sm:$0xff] %v6876_v51  ;;  %v6893_v48 = vadd.f32 1.0, %v5890_v45  ;;  %v2376_v43 = vmul.f32 %v2368_v35, %v6791_v58 }
 0x19d   : > { %7760 = vst [vmem:[#allocation35_spill] sm:$0xff] %v6878_v52  ;;  %7761 = vst [vmem:[#allocation36_spill] sm:$0xff] %v6880_v24  ;;  %v6888_v38 = vld [vmem:[#allocation2 + $0x28] sm:$0xf] }
 0x19e   : > { %2463 = vst [vmem:[#allocation2 + $0x1c] sm:$0xf] %v5168_v30  ;;  %7762 = vst [vmem:[#allocation37_spill] sm:$0xff] %v6882_v29  ;;  %v2631_v63 = vld [vmem:[#allocation2 + $0x28] sm:$0xf]  ;;  %v2534_v19 = vshrl.u32 %v6888_v38, 16 }
 0x19f   : > { %7763 = vst [vmem:[#allocation38_spill] sm:$0xff] %v6884_v20  ;;  %7764 = vst [vmem:[#allocation39_spill] sm:$0xff] %v6886_v54  ;;  %v6890_v2 = vld [vmem:[#allocation2 + $0x28] sm:$0xf]  ;;  %v2684_v37 = vshrl.u32 %v2631_v63, 16  ;;  %v2687_v28 = vshll.u32 %v2631_v63, 16 }
 0x1a0   : > { %v2925_v55 = vld [vmem:[#allocation2 + $0x28] sm:$0xf]  ;;  %v2817_v34 = vshrl.u32 %v6890_v2, 16  ;;  %v6899_v21 = vrot.slane %v2534_v19, 7  ;;  %v2627_v49 = vld [vmem:[#allocation2 + $0x10] sm:$0xf] }
 0x1a1   : > { %v2966_v11 = vshrl.u32 %v2925_v55, 16  ;;  %v2969_v33 = vshll.u32 %v2925_v55, 16  ;;  %v6896_v44 = vld [vmem:[#allocation2 + $0x28] sm:$0xf]  ;;  %v6904_v60 = vrot.slane %v2684_v37, 4  ;;  %v6906_v30 = vrot.slane %v2687_v28, 5 }
 0x1a2   : > { %7765 = vst [vmem:[#allocation40_spill] sm:$0xff] %v6896_v44  ;;  %v3101_v22 = vshrl.u32 %v6896_v44, 16  ;;  %v3220_v59 = vld [vmem:[#allocation2 + $0x28] sm:$0xf]  ;;  %v6908_v45 = vrot.slane %v2817_v34, 7  ;;  %v2656_v54 = vshrl.u32 %v2627_v49, 16  ;;  %v5173_v28 = vpack.c.bf16 %v2376_v43, %v2376_v43 }
 0x1a3   : > { %v6910_v63 = vrot.slane %v2966_v11, 4  ;;  %v6912_v55 = vld [vmem:[#allocation2 + $0x10] sm:$0xf]  ;;  %v6914_v58 = vrot.slane %v2969_v33, 5  ;;  %v3249_v35 = vshrl.u32 %v3220_v59, 16  ;;  %v3252_v19 = vshll.u32 %v3220_v59, 16 }
 0x1a4   : > { %v2508_v25 = vshrl.u32 %v6912_v55, 16  ;;  %v2659_v37 = vshll.u32 %v2627_v49, 16  ;;  %v6918_v20 = vld [vmem:[#allocation2 + $0x10] sm:$0xf]  ;;  %v6920_v34 = vrot.slane %v3101_v22, 7  ;;  %v6930_v12 = vrot.slane %v2656_v54, 4 }
 0x1a5   : > { %7766 = vst [vmem:[#allocation41_spill] sm:$0xff] %v6910_v63  ;;  %7767 = vst [vmem:[#allocation42_spill] sm:$0xff] %v6914_v58  ;;  %v6922_v11 = vrot.slane %v3249_v35, 4  ;;  %v2791_v33 = vshrl.u32 %v6918_v20, 16  ;;  %v2921_v51 = vld [vmem:[#allocation2 + $0x10] sm:$0xf] }
 0x1a6   : > { %7768 = vst [vmem:[#allocation43_spill] sm:$0xff] %v6920_v34  ;;  %v6926_v59 = vrot.slane %v3252_v19, 5  ;;  %v6928_v42 = vrot.slane %v2508_v25, 7  ;;  %v2938_v57 = vshrl.u32 %v2921_v51, 16  ;;  %v6932_v49 = vld [vmem:[#allocation2 + $0x34] sm:$0xf] }
 0x1a7   : > { %7769 = vst [vmem:[#allocation44_spill] sm:$0xff] %v6922_v11  ;;  %2468 = vst [vmem:[#allocation2 + $0x58] sm:$0xf] %v5173_v28  ;;  %v6934_v43 = vrot.slane %v2659_v37, 5  ;;  %v2941_v35 = vshll.u32 %v2921_v51, 16  ;;  %v2547_v29 = vshrl.u32 %v6932_v49, 16 }
 0x1a8   : > { %7770 = vst [vmem:[#allocation45_spill] sm:$0xff] %v6926_v59  ;;  %v2633_v41 = vld [vmem:[#allocation2 + $0x34] sm:$0xf]  ;;  %v6938_v14 = vrot.slane %v2791_v33, 7  ;;  %v2366_v54 = vmul.f32 0.5, %v2358_v5  ;;  %v6942_v52 = vrot.slane %v2938_v57, 4 }
 0x1a9   : > { %v2698_v19 = vshrl.u32 %v2633_v41, 16  ;;  %v2701_v24 = vshll.u32 %v2633_v41, 16  ;;  %v6940_v25 = vld [vmem:[#allocation2 + $0x34] sm:$0xf]  ;;  %v6944_v59 = vrot.slane %v2941_v35, 5  ;;  %v6948_v51 = vrot.slane %v2547_v29, 7  ;;  %v6953_v41 = vpop.eup %5891 }
 0x1aa   : > { %7771 = vst [vmem:[#allocation46_spill] sm:$0xff] %v6942_v52  ;;  %v2830_v28 = vshrl.u32 %v6940_v25, 16  ;;  %v2927_v22 = vld [vmem:[#allocation2 + $0x34] sm:$0xf]  ;;  %v2374_v63 = vmul.f32 %v2366_v54, %v6796_v13  ;;  %v6971_v54 = vld [vmem:[#allocation2 + $0x1c] sm:$0xf] }
 0x1ab   : > { %7772 = vst [vmem:[#allocation47_spill] sm:$0xff] %v6944_v59  ;;  %v2980_v33 = vshrl.u32 %v2927_v22, 16  ;;  %v2983_v18 = vshll.u32 %v2927_v22, 16  ;;  %v6951_v58 = vld [vmem:[#allocation2 + $0x34] sm:$0xf]  ;;  %v6955_v5 = vrot.slane %v2698_v19, 4 }
 0x1ac   : > { %7773 = vst [vmem:[#allocation48_spill] sm:$0xff] %v6951_v58  ;;  %v6957_v57 = vrot.slane %v2701_v24, 5  ;;  %v3114_v35 = vshrl.u32 %v6951_v58, 16  ;;  %v3222_v37 = vld [vmem:[#allocation2 + $0x34] sm:$0xf]  ;;  %v6961_v44 = vrot.slane %v2830_v28, 7  ;;  %v5171_v15 = vpack.c.bf16 %v2374_v63, %v2374_v63 }
 0x1ad   : > { %v3263_v11 = vshrl.u32 %v3222_v37, 16  ;;  %v3266_v34 = vshll.u32 %v3222_v37, 16  ;;  %v6964_v22 = vld [vmem:[#allocation2 + $0x1c] sm:$0xf]  ;;  %v6966_v10 = vrot.slane %v2980_v33, 4  ;;  %v6968_v1 = vrot.slane %v2983_v18, 5 }
 0x1ae   : > { %v2521_v24 = vshrl.u32 %v6964_v22, 16  ;;  %v2629_v19 = vld [vmem:[#allocation2 + $0x1c] sm:$0xf]  ;;  %v6973_v28 = vrot.slane %v3114_v35, 7  ;;  %v2804_v33 = vshrl.u32 %v6971_v54, 16 }
 0x1af   : > { %7774 = vst [vmem:[#allocation49_spill] sm:$0xff] %v6966_v10  ;;  %7775 = vst [vmem:[#allocation50_spill] sm:$0xff] %v6968_v1  ;;  %v3265_v8 = vrot.slane %v3263_v11, 4  ;;  %v3268_v9 = vrot.slane %v3266_v34, 5  ;;  %v2670_v59 = vshrl.u32 %v2629_v19, 16  ;;  %v2673_v13 = vshll.u32 %v2629_v19, 16 }
 0x1b0   : > { %7776 = vst [vmem:[#allocation51_spill] sm:$0xff] %v6973_v28  ;;  %v6975_v29 = vrot.slane %v2521_v24, 7  ;;  %v2923_v18 = vld [vmem:[#allocation2 + $0x1c] sm:$0xf]  ;;  %2466 = vst [vmem:[#allocation2 + $0x40] sm:$0xf] %v5171_v15 }
 0x1b1   : > { %v3269_v58 = vor.u32 %v3268_v9, %v3265_v8  ;;  %v2952_v63 = vshrl.u32 %v2923_v18, 16  ;;  %v6980_v11 = vld [vmem:[#allocation2 + $0x1c] sm:$0xf]  ;;  %v2369_v34 = vmul.f32 0.5, %v6893_v48  ;;  %v6983_v19 = vrot.slane %v2670_v59, 4 }
 0x1b2   : > { %7777 = vst [vmem:[#allocation52_spill] sm:$0xff] %v6980_v11  ;;  %v6985_v35 = vrot.slane %v2673_v13, 5  ;;  %v2955_v24 = vshll.u32 %v2923_v18, 16  ;;  %v3088_v28 = vshrl.u32 %v6980_v11, 16  ;;  %v3218_v37 = vld [vmem:[#allocation2 + $0x1c] sm:$0xf] }
 0x1b3   : > { %v6988_v10 = vrot.slane %v2804_v33, 7  ;;  %v3235_v8 = vshrl.u32 %v3218_v37, 16  ;;  %v3238_v9 = vshll.u32 %v3218_v37, 16  ;;  %v6991_v1 = vld [vmem:[#allocation2 + $0x58] sm:$0xf]  ;;  %v6993_v52 = vrot.slane %v3269_v58, 4 }
 0x1b4   : > { %7778 = vst [vmem:[#allocation53_spill] sm:$0xff] %v6991_v1  ;;  %v6995_v17 = vrot.slane %v2952_v63, 4  ;;  %v6997_v48 = vrot.slane %v2955_v24, 5  ;;  %v2586_v59 = vshrl.u32 %v6991_v1, 16  ;;  %v2639_v13 = vld [vmem:[#allocation2 + $0x58] sm:$0xf]  ;;  %v2377_v24 = vmul.f32 %v2369_v34, %v6800_v50 }
 0x1b5   : > { %7779 = vst [vmem:[#allocation54_spill] sm:$0xff] %v6993_v52  ;;  %v7000_v18 = vrot.slane %v3088_v28, 7  ;;  %v2740_v4 = vshrl.u32 %v2639_v13, 16  ;;  %v2743_v56 = vshll.u32 %v2639_v13, 16  ;;  %v7003_v15 = vld [vmem:[#allocation2 + $0x58] sm:$0xf] }
 0x1b6   : > { %7780 = vst [vmem:[#allocation55_spill] sm:$0xff] %v6995_v17  ;;  %7781 = vst [vmem:[#allocation56_spill] sm:$0xff] %v6997_v48  ;;  %v7005_v37 = vrot.slane %v3235_v8, 4  ;;  %v7007_v11 = vrot.slane %v3238_v9, 5  ;;  %v2869_v58 = vshrl.u32 %v7003_v15, 16  ;;  %v7011_v52 = vrot.slane %v2586_v59, 7 }
 0x1b7   : > { %7782 = vst [vmem:[#allocation57_spill] sm:$0xff] %v7000_v18  ;;  %7783 = vst [vmem:[#allocation58_spill] sm:$0xff] %v7003_v15  ;;  %v2933_v63 = vld [vmem:[#allocation2 + $0x58] sm:$0xf]  ;;  %v7016_v13 = vrot.slane %v2740_v4, 4  ;;  %v7018_v17 = vrot.slane %v2743_v56, 5 }
 0x1b8   : > { %7784 = vst [vmem:[#allocation59_spill] sm:$0xff] %v7005_v37  ;;  %7785 = vst [vmem:[#allocation60_spill] sm:$0xff] %v7007_v11  ;;  %v3022_v18 = vshrl.u32 %v2933_v63, 16  ;;  %v3025_v48 = vshll.u32 %v2933_v63, 16  ;;  %v7014_v33 = vld [vmem:[#allocation2 + $0x58] sm:$0xf]  ;;  %v5174_v11 = vpack.c.bf16 %v2377_v24, %v2377_v24 }
 0x1b9   : > { %7786 = vst [vmem:[#allocation61_spill] sm:$0xff] %v7011_v52  ;;  %7787 = vst [vmem:[#allocation62_spill] sm:$0xff] %v7014_v33  ;;  %v3153_v8 = vshrl.u32 %v7014_v33, 16  ;;  %v3228_v9 = vld [vmem:[#allocation2 + $0x58] sm:$0xf]  ;;  %v7021_v37 = vrot.slane %v2869_v58, 7 }
 0x1ba   : > { %7788 = vst [vmem:[#allocation63_spill] sm:$0xff] %v7016_v13  ;;  %7789 = vst [vmem:[#allocation64_spill] sm:$0xff] %v7018_v17  ;;  %v3305_v34 = vshrl.u32 %v3228_v9, 16  ;;  %v3308_v59 = vshll.u32 %v3228_v9, 16  ;;  %v7024_v3 = vld [vmem:[#allocation2 + $0x40] sm:$0xf] }
 0x1bb   : > { %7790 = vst [vmem:[#allocation65_spill] sm:$0xff] %v7021_v37  ;;  %v7026_v28 = vrot.slane %v3022_v18, 4  ;;  %v7028_v63 = vrot.slane %v3025_v48, 5  ;;  %v2560_v4 = vshrl.u32 %v7024_v3, 16  ;;  %v2635_v56 = vld [vmem:[#allocation2 + $0x40] sm:$0xf] }
 0x1bc   : > { %2469 = vst [vmem:[#allocation2 + $0x64] sm:$0xf] %v5174_v11  ;;  %v2359_v15 = vadd.f32 1.0, %v6953_v41  ;;  %v7032_v16 = vrot.slane %v3153_v8, 7  ;;  %v2712_v24 = vshrl.u32 %v2635_v56, 16  ;;  %v2715_v50 = vshll.u32 %v2635_v56, 16 }
 0x1bd   : > { %7791 = vst [vmem:[#allocation66_spill] sm:$0xff] %v7026_v28  ;;  %7792 = vst [vmem:[#allocation67_spill] sm:$0xff] %v7028_v63  ;;  %v7035_v33 = vld [vmem:[#allocation2 + $0x40] sm:$0xf]  ;;  %v7037_v9 = vrot.slane %v3305_v34, 4  ;;  %v7039_v18 = vrot.slane %v3308_v59, 5 }
 0x1be   : > { %7793 = vst [vmem:[#allocation68_spill] sm:$0xff] %v7032_v16  ;;  %v2843_v48 = vshrl.u32 %v7035_v33, 16  ;;  %v2929_v63 = vld [vmem:[#allocation2 + $0x40] sm:$0xf]  ;;  %v2367_v28 = vmul.f32 0.5, %v2359_v15  ;;  %v7042_v37 = vrot.slane %v2560_v4, 7 }
 0x1bf   : > { %7794 = vst [vmem:[#allocation69_spill] sm:$0xff] %v7037_v9  ;;  %7795 = vst [vmem:[#allocation70_spill] sm:$0xff] %v7039_v18  ;;  %v2994_v11 = vshrl.u32 %v2929_v63, 16  ;;  %v2997_v8 = vshll.u32 %v2929_v63, 16  ;;  %v7045_v16 = vld [vmem:[#allocation2 + $0x40] sm:$0xf] }
 0x1c0   : > { %v7047_v58 = vrot.slane %v2712_v24, 4  ;;  %v7049_v56 = vrot.slane %v2715_v50, 5  ;;  %v7051_v34 = vrot.slane %v2843_v48, 7  ;;  %v3224_v59 = vld [vmem:[#allocation2 + $0x40] sm:$0xf]  ;;  %v2375_v18 = vmul.f32 %v2367_v28, %v6812_v23 }
 0x1c1   : > { %v3127_v9 = vshrl.u32 %v7045_v16, 16  ;;  %v3277_v4 = vshrl.u32 %v3224_v59, 16  ;;  %v3280_v17 = vshll.u32 %v3224_v59, 16  ;;  %v2610_v41 = vld [vmem:[#allocation2 + $0x10] sm:$0xf]  ;;  %v7056_v13 = vrot.slane %v2994_v11, 4 }
 0x1c2   : > { %v7058_v63 = vrot.slane %v2997_v8, 5  ;;  %v5172_v24 = vpack.c.bf16 %v2375_v18, %v2375_v18  ;;  %v7796_v50 = vshll.u32 %v6912_v55, 16  ;;  %2618 = vst [vmem:[#allocation3 + $0x28] sm:$0xf] %v2610_v41  ;;  %v2611_v36 = vld [vmem:[#allocation2 + $0x1c] sm:$0xf] }
 0x1c3   : > { %v2612_v1 = vld [vmem:[#allocation2 + $0x28] sm:$0xf]  ;;  %v3279_v23 = vrot.slane %v3277_v4, 4  ;;  %v3282_v28 = vrot.slane %v3280_v17, 5  ;;  %v7063_v52 = vld [vmem:[#allocation2 + $0x64] sm:$0xf]  ;;  %v2662_v17 = vor.u32 %v6934_v43, %v6930_v12 }
 0x1c4   : > { %v2513_v48 = vor.u32 %v7796_v50, %v6928_v42  ;;  %v2935_v15 = vld [vmem:[#allocation2 + $0x64] sm:$0xf]  ;;  %v7797_v59 = vshll.u32 %v6964_v22, 16  ;;  %v7798_v8 = vshll.u32 %v6888_v38, 16  ;;  %2619 = vst [vmem:[#allocation3 + $0x4c] sm:$0xf] %v2611_v36 }
 0x1c5   : > { %2620 = vst [vmem:[#allocation3 + $0x70] sm:$0xf] %v2612_v1  ;;  %v2882_v42 = vshrl.u32 %v7063_v52, 16  ;;  %v3036_v55 = vshrl.u32 %v2935_v15, 16  ;;  %v3039_v41 = vshll.u32 %v2935_v15, 16  ;;  %v7076_v4 = vrot.slane %v3127_v9, 7 }
 0x1c6   : > { %v2526_v11 = vor.u32 %v7797_v59, %v6975_v29  ;;  %v2539_v18 = vor.u32 %v7798_v8, %v6899_v21  ;;  %v7072_v50 = vld [vmem:[#allocation2 + $0x64] sm:$0xf]  ;;  %2467 = vst [vmem:[#allocation2 + $0x4c] sm:$0xf] %v5172_v24  ;;  %v3283_v22 = vor.u32 %v3282_v28, %v3279_v23  ;;  %v2514_v36 = vsel %vm6098_vm5, %v6704_v0, %v2513_v48  ;;  %v2613_v1 = vld [vmem:[#allocation2 + $0x34] sm:$0xf] }
 0x1c7   : > { %v3166_v29 = vshrl.u32 %v7072_v50, 16  ;;  %v7079_v59 = vld [vmem:[#allocation2 + $0x64] sm:$0xf]  ;;  %v7084_v38 = vrot.slane %v2882_v42, 7  ;;  %v2885_v21 = vshll.u32 %v7063_v52, 16  ;;  %v3169_v15 = vshll.u32 %v7072_v50, 16 }
 0x1c8   : > { %v3319_v12 = vshrl.u32 %v7079_v59, 16  ;;  %2602 = vst [vmem:[#allocation3 + $0x24] sm:$0xf] %v2514_v36  ;;  %v2614_v43 = vld [vmem:[#allocation2 + $0x40] sm:$0xf]  ;;  %v7089_v9 = vrot.slane %v3283_v22, 4  ;;  %v2527_v0 = vsel %vm6098_vm5, %v6710_v62, %v2526_v11  ;;  %v2540_v8 = vsel %vm6098_vm5, %v6698_v26, %v2539_v18 }
 0x1c9   : > { %2621 = vst [vmem:[#allocation3 + $0x94] sm:$0xf] %v2613_v1  ;;  %v7091_v24 = vrot.slane %v3036_v55, 4  ;;  %v7093_v23 = vrot.slane %v3039_v41, 5  ;;  %2622 = vst [vmem:[#allocation3 + $0xb8] sm:$0xf] %v2614_v43 }
 0x1ca   : > { %v2616_v48 = vld [vmem:[#allocation2 + $0x58] sm:$0xf]  ;;  %v7098_v28 = vrot.slane %v3166_v29, 7  ;;  %2603 = vst [vmem:[#allocation3 + $0x48] sm:$0xf] %v2527_v0  ;;  %v2663_v42 = vrot.slane %v2662_v17, 4 }
 0x1cb   : > { %v7799_v55 = vshll.u32 %v6918_v20, 16  ;;  %2624 = vst [vmem:[#allocation3 + $0x100] sm:$0xf] %v2616_v48  ;;  %v2905_v41 = vld [vmem:[#allocation2 + $0x10] sm:$0xf]  ;;  %v7106_v1 = vrot.slane %v3319_v12, 4 }
 0x1cc   : > { %v2906_v36 = vld [vmem:[#allocation2 + $0x1c] sm:$0xf]  ;;  %v3322_v62 = vshll.u32 %v7079_v59, 16  ;;  %2604 = vst [vmem:[#allocation3 + $0x6c] sm:$0xf] %v2540_v8  ;;  %v7800_v11 = vshll.u32 %v6971_v54, 16  ;;  %v3042_v59 = vor.u32 %v7093_v23, %v7091_v24 }
 0x1cd   : > { %v2796_v22 = vor.u32 %v7799_v55, %v6938_v14  ;;  %2913 = vst [vmem:[#allocation3 + $0x10] sm:$0xf] %v2905_v41  ;;  %2914 = vst [vmem:[#allocation3 + $0x34] sm:$0xf] %v2906_v36  ;;  %v3202_v26 = vld [vmem:[#allocation2 + $0x1c] sm:$0xf]  ;;  %v2668_v14 = vsel %vm6073_vm3, %v2663_v42, %v6712_v32  ;;  %v2676_v32 = vor.u32 %v6985_v35, %v6983_v19 }
 0x1ce   : > { %v2809_v29 = vor.u32 %v7800_v11, %v6988_v10  ;;  %v3203_v18 = vld [vmem:[#allocation2 + $0x28] sm:$0xf]  ;;  %3210 = vst [vmem:[#allocation3 + $0x1c] sm:$0xf] %v3202_v26  ;;  %v2908_v12 = vld [vmem:[#allocation2 + $0x34] sm:$0xf] }
 0x1cf   : > { %v2797_v20 = vsel %vm6098_vm5, %v6706_v6, %v2796_v22  ;;  %3211 = vst [vmem:[#allocation3 + $0x40] sm:$0xf] %v3203_v18  ;;  %v2907_v17 = vld [vmem:[#allocation2 + $0x28] sm:$0xf]  ;;  %v3204_v43 = vld [vmem:[#allocation2 + $0x34] sm:$0xf]  ;;  %v2690_v6 = vor.u32 %v6906_v30, %v6904_v60 }
 0x1d0   : > { %v7118_v0 = vld [vmem:[#allocation2 + $0x4c] sm:$0xf]  ;;  %2762 = vst [vmem:[#allocation3 + $0x2c] sm:$0xf] %v2668_v14  ;;  %v2810_v48 = vsel %vm6098_vm5, %v6718_v47, %v2809_v29  ;;  %2897 = vst [vmem:[#allocation3 + $0xc] sm:$0xf] %v2797_v20 }
 0x1d1   : > { %v2637_v10 = vld [vmem:[#allocation2 + $0x4c] sm:$0xf]  ;;  %v7801_v8 = vshll.u32 %v6890_v2, 16  ;;  %2915 = vst [vmem:[#allocation3 + $0x58] sm:$0xf] %v2907_v17  ;;  %v2573_v55 = vshrl.u32 %v7118_v0, 16 }
 0x1d2   : > { %v7120_v54 = vld [vmem:[#allocation2 + $0x4c] sm:$0xf]  ;;  %2916 = vst [vmem:[#allocation3 + $0x7c] sm:$0xf] %v2908_v12  ;;  %3212 = vst [vmem:[#allocation3 + $0x64] sm:$0xf] %v3204_v43 }
 0x1d3   : > { %v2822_v42 = vor.u32 %v7801_v8, %v6908_v45  ;;  %v2726_v22 = vshrl.u32 %v2637_v10, 16  ;;  %v2729_v41 = vshll.u32 %v2637_v10, 16  ;;  %v2931_v36 = vld [vmem:[#allocation2 + $0x4c] sm:$0xf]  ;;  %2898 = vst [vmem:[#allocation3 + $0x30] sm:$0xf] %v2810_v48 }
 0x1d4   : > { %v7802_v47 = vshll.u32 %v6940_v25, 16  ;;  %v2856_v35 = vshrl.u32 %v7120_v54, 16  ;;  %v3008_v60 = vshrl.u32 %v2931_v36, 16  ;;  %v3011_v30 = vshll.u32 %v2931_v36, 16  ;;  %v7137_v11 = vld [vmem:[#allocation2 + $0x4c] sm:$0xf] }
 0x1d5   : > { %v7803_v2 = vshll.u32 %v6932_v49, 16  ;;  %v2576_v29 = vshll.u32 %v7118_v0, 16  ;;  %v2859_v26 = vshll.u32 %v7120_v54, 16  ;;  %v7804_v18 = vshll.u32 %v7024_v3, 16  ;;  %v5785_v49 = vld [vmem:[%s7711_s3 + $0x138] sm:$0xff]  }
 0x1d6   : > { %v2835_v19 = vor.u32 %v7802_v47, %v6961_v44  ;;  %v2704_v44 = vor.u32 %v6957_v57, %v6955_v5  ;;  %v2575_v25 = vrot.slane %v2573_v55, 7  ;;  %v7149_v20 = vrot.slane %v2726_v22, 4  ;;  %v7163_v5 = vld [vmem:[#allocation3 + $0x6c] sm:$0xff]  ;;  %v5792_v57 = vld [vmem:[%s7711_s3 + $0x170] sm:$0xff]   ;;  %v7171_v54 = vld [vmem:[#allocation3 + $0xa0] sm:$0xf] }
 0x1d7   : > { %v2552_v45 = vor.u32 %v7803_v2, %v6948_v51  ;;  %v2565_v14 = vor.u32 %v7804_v18, %v7042_v37  ;;  %v7151_v17 = vrot.slane %v2729_v41, 5  ;;  %v3140_v12 = vshrl.u32 %v7137_v11, 16  ;;  %v7157_v51 = vld [vmem:[#allocation3 + $0x48] sm:$0xff]  ;;  %v5780_v37 = vld [vmem:[#allocation3] ss:$36 sps:$4 sm:$0xff]   ;;  %v5793_v2 = vld [vmem:[%s7711_s3 + $0x130] sm:$0xff]  }
 0x1d8   : > { %v2858_v43 = vrot.slane %v2856_v35, 7  ;;  %v7159_v0 = vrot.slane %v3008_v60, 4  ;;  %v7161_v3 = vrot.slane %v3011_v30, 5  ;;  %v2823_v10 = vsel %vm6098_vm5, %v6720_v7, %v2822_v42  ;;  %v7173_v48 = vld [vmem:[#allocation3 + $0xc4] sm:$0xf] }
 0x1d9   : > { %v5782_v8 = vld [vmem:[#allocation3 + $0x4] ss:$36 sps:$4 sm:$0xff]   ;;  %v5787_v55 = vld [vmem:[#allocation3 + $0x4c] ss:$36 sps:$4 sm:$0xff]   ;;  %v2677_v22 = vrot.slane %v2676_v32, 4  ;;  %v2691_v41 = vrot.slane %v2690_v6, 4  ;;  %v2836_v36 = vsel %vm6098_vm5, %v6732_v61, %v2835_v19  ;;  %v5052_v42 = vcombine.low %v7157_v51, %v7163_v5 }
 0x1da   : > { %2899 = vst [vmem:[#allocation3 + $0x54] sm:$0xf] %v2823_v10  ;;  %v3143_v47 = vshll.u32 %v7137_v11, 16  ;;  %2900 = vst [vmem:[#allocation3 + $0x78] sm:$0xf] %v2836_v36  ;;  %v7182_v7 = vld [vmem:[%s7711_s3 + $0x1b8] sm:$0xff]   ;;  %v2553_v32 = vsel %vm6098_vm5, %v6736_v39, %v2552_v45  ;;  %v2566_v61 = vsel %vm6098_vm5, %v6749_v40, %v2565_v14  ;;  %4194 = vmatprep.mubr.bf16.mxu1 %v5782_v8 }
 0x1db   : > { %v2615_v6 = vld [vmem:[#allocation2 + $0x4c] sm:$0xf]  ;;  %v7192_v19 = vld [vmem:[#allocation3 + $0xe8] sm:$0xf]  ;;  %v7194_v35 = vld [vmem:[#allocation3 + $0x10c] sm:$0xf]  ;;  %v2682_v39 = vsel %vm6073_vm3, %v2677_v22, %v6726_v46  ;;  %v2696_v40 = vsel %vm6073_vm3, %v2691_v41, %v6728_v31  ;;  %v2718_v18 = vor.u32 %v7049_v56, %v7047_v58  ;;  %4195 = vmatmul.mubr.bf16.vlgmr.msra.gmra.mxu1 %v5780_v37  ;;  %v2861_v8 = vor.u32 %v2859_v26, %v2858_v43 }
 0x1dc   : > { %v5789_v60 = vld [vmem:[#allocation3 + $0x8] ss:$36 sps:$4 sm:$0xff]   ;;  %2605 = vst [vmem:[#allocation3 + $0x90] sm:$0xf] %v2553_v32  ;;  %2606 = vst [vmem:[#allocation3 + $0xb4] sm:$0xf] %v2566_v61  ;;  %v2578_v31 = vor.u32 %v2576_v29, %v2575_v25  ;;  %5428 = vmatpush3.bf16.msra.mxu1 %v5785_v49  ;;  %4202 = vmatprep.mubr.bf16.mxu1 %v5787_v55  ;;  %v2732_v29 = vor.u32 %v7151_v17, %v7149_v20 }
 0x1dd   : > { %v5791_v30 = vld [vmem:[#allocation3 + $0xc] ss:$36 sps:$4 sm:$0xff]   ;;  %v2705_v45 = vrot.slane %v2704_v44, 4  ;;  %2623 = vst [vmem:[#allocation3 + $0xdc] sm:$0xf] %v2615_v6  ;;  %v7805_v46 = vshll.u32 %v7035_v33, 16  ;;  %5429 = vmatprep.subr.bf16.mxu1 %v5792_v57 }
 0x1de   : > { %2763 = vst [vmem:[#allocation3 + $0x50] sm:$0xf] %v2682_v39  ;;  %2764 = vst [vmem:[#allocation3 + $0x74] sm:$0xf] %v2696_v40  ;;  %v5798_v14 = vld [vmem:[%s7711_s3 + $0x168] sm:$0xff]   ;;  %v7806_v22 = vld [vmem:[#allocation61_spill] sm:$0xff]  ;;  %4259 = vmatprep.mubr.bf16.mxu0 %v5791_v30 }
 0x1df   : > { %v2848_v10 = vor.u32 %v7805_v46, %v7051_v34  ;;  %v7807_v41 = vld [vmem:[#allocation53_spill] sm:$0xff]  ;;  %v2910_v56 = vld [vmem:[#allocation2 + $0x4c] sm:$0xf]  ;;  %v5800_v37 = vld [vmem:[%s7711_s3 + $0x1f0] sm:$0xff]   ;;  %v2719_v34 = vrot.slane %v2718_v18, 4  ;;  %4260 = vmatmul.mubr.bf16.vlgmr.msra.gmra.mxu0 %v5789_v60  ;;  %v3043_v23 = vrot.slane %v3042_v59, 4 }
 0x1e0   : > { %v7808_v44 = vshll.u32 %v7807_v41, 16  ;;  %v3205_v32 = vld [vmem:[#allocation2 + $0x40] sm:$0xf]  ;;  %v7809_v61 = vld [vmem:[#allocation4_spill] sm:$0xff]  ;;  %v7810_v26 = vld [vmem:[#allocation63_spill] sm:$0xff]  ;;  %v2733_v41 = vrot.slane %v2732_v29, 4  ;;  %5468 = vmatpush3.bf16.msra.mxu0 %v7182_v7  ;;  %5430 = vmatpush3.bf16.msra.mxu1 %v5793_v2 }
 0x1e1   : > { %v2909_v58 = vld [vmem:[#allocation2 + $0x40] sm:$0xf]  ;;  %v2710_v33 = vsel %vm6073_vm3, %v2705_v45, %v7809_v61  ;;  %v7811_v25 = vld [vmem:[#allocation64_spill] sm:$0xff]  ;;  %3213 = vst [vmem:[#allocation3 + $0x88] sm:$0xf] %v3205_v32  ;;  %v7812_v6 = vld [vmem:[#allocation6_spill] sm:$0xff]  ;;  %v2887_v61 = vor.u32 %v2885_v21, %v7084_v38  ;;  %5469 = vmatprep.subr.bf16.mxu0 %v5800_v37  ;;  %5431 = vmatprep.subr.bf16.mxu1 %v5798_v14 }
 0x1e2   : > { %v2591_v36 = vor.u32 %v7808_v44, %v7806_v22  ;;  %v2746_v43 = vor.u32 %v7811_v25, %v7810_v26  ;;  %2917 = vst [vmem:[#allocation3 + $0xa0] sm:$0xf] %v2909_v58  ;;  %2918 = vst [vmem:[#allocation3 + $0xc4] sm:$0xf] %v2910_v56  ;;  %v3206_v49 = vld [vmem:[#allocation2 + $0x4c] sm:$0xf]  ;;  %v2849_v39 = vsel %vm6098_vm5, %v7812_v6, %v2848_v10 }
 0x1e3   : > { %v3207_v55 = vld [vmem:[#allocation2 + $0x58] sm:$0xf]  ;;  %2765 = vst [vmem:[#allocation3 + $0x98] sm:$0xf] %v2710_v33  ;;  %v7813_v40 = vld [vmem:[#allocation10_spill] sm:$0xff]  ;;  %v7814_v20 = vld [vmem:[#allocation11_spill] sm:$0xff]  ;;  %4203 = vmatmul.mubr.bf16.gmra.mxu1 %v5052_v42 }
 0x1e4   : > { %v2862_v45 = vsel %vm6098_vm5, %v7813_v40, %v2861_v8  ;;  %v2579_v17 = vsel %vm6098_vm5, %v7814_v20, %v2578_v31  ;;  %3214 = vst [vmem:[#allocation3 + $0xac] sm:$0xf] %v3206_v49  ;;  %3215 = vst [vmem:[#allocation3 + $0xd0] sm:$0xf] %v3207_v55  ;;  %v2911_v18 = vld [vmem:[#allocation2 + $0x58] sm:$0xf] }
 0x1e5   : > { %v2912_v46 = vld [vmem:[#allocation2 + $0x64] sm:$0xf]  ;;  %2901 = vst [vmem:[#allocation3 + $0x9c] sm:$0xf] %v2849_v39  ;;  %2902 = vst [vmem:[#allocation3 + $0xc0] sm:$0xf] %v2862_v45 }
 0x1e6   : > { %v3208_v22 = vld [vmem:[#allocation2 + $0x64] sm:$0xf]  ;;  %2607 = vst [vmem:[#allocation3 + $0xd8] sm:$0xf] %v2579_v17  ;;  %v2747_v44 = vrot.slane %v2746_v43, 4  ;;  %v5803_v60 = vld [vmem:[%s7711_s3 + $0x1b0] sm:$0xff]  }
 0x1e7   : > { %v7815_v57 = vld [vmem:[#allocation9_spill] sm:$0xff]  ;;  %2919 = vst [vmem:[#allocation3 + $0xe8] sm:$0xf] %v2911_v18  ;;  %2920 = vst [vmem:[#allocation3 + $0x10c] sm:$0xf] %v2912_v46  ;;  %v7818_v58 = vld [vmem:[#allocation58_spill] sm:$0xff]  ;;  %5470 = vmatpush3.bf16.msra.mxu0 %v5803_v60 }
 0x1e8   : > { %v2724_v30 = vsel %vm6073_vm3, %v2719_v34, %v7815_v57  ;;  %v7816_v10 = vld [vmem:[#allocation5_spill] sm:$0xff]  ;;  %3216 = vst [vmem:[#allocation3 + $0xf4] sm:$0xf] %v3208_v22  ;;  %v7241_v31 = vld [vmem:[#allocation2 + $0x4c] sm:$0xf]  ;;  %v7819_v56 = vshll.u32 %v7818_v58, 16 }
 0x1e9   : > { %v2592_v8 = vsel %vm6098_vm5, %v7816_v10, %v2591_v36  ;;  %2766 = vst [vmem:[#allocation3 + $0xbc] sm:$0xf] %v2724_v30  ;;  %v7817_v32 = vld [vmem:[#allocation65_spill] sm:$0xff]  ;;  %v7820_v33 = vld [vmem:[#allocation46_spill] sm:$0xff]  ;;  %v7821_v34 = vld [vmem:[#allocation47_spill] sm:$0xff]  ;;  %v3142_v43 = vrot.slane %v3140_v12, 7 }
 0x1ea   : > { %2608 = vst [vmem:[#allocation3 + $0xfc] sm:$0xf] %v2592_v8  ;;  %v2874_v36 = vor.u32 %v7819_v56, %v7817_v32  ;;  %v2944_v29 = vor.u32 %v7821_v34, %v7820_v33  ;;  %v7822_v26 = vld [vmem:[#allocation55_spill] sm:$0xff]  ;;  %v7823_v25 = vld [vmem:[#allocation56_spill] sm:$0xff]  ;;  %v5799_v49 = vld [vmem:[%s7711_s3 + $0x128] sm:$0xff]   ;;  %v3291_v22 = vshrl.u32 %v7241_v31, 16 }
 0x1eb   : > { %v2958_v7 = vor.u32 %v7823_v25, %v7822_v26  ;;  %v7824_v55 = vld [vmem:[#allocation15_spill] sm:$0xff]  ;;  %v7826_v6 = vld [vmem:[#allocation57_spill] sm:$0xff]  ;;  %v7827_v39 = vld [vmem:[#allocation52_spill] sm:$0xff]  ;;  %5432 = vmatpush3.bf16.msra.mxu1 %v5799_v49  ;;  %v7845_v49 = vshll.u32 %v7045_v16, 16  ;;  %v3145_v16 = vor.u32 %v3143_v47, %v3142_v43 }
 0x1ec   : > { %v2738_v52 = vsel %vm6073_vm3, %v2733_v41, %v7824_v55  ;;  %v7825_v38 = vld [vmem:[#allocation7_spill] sm:$0xff]  ;;  %v7828_v40 = vshll.u32 %v7827_v39, 16  ;;  %v5804_v12 = vld [vmem:[%s7711_s3 + $0x160] sm:$0xff]   ;;  %v5807_v2 = vld [vmem:[%s7711_s3 + $0x1e8] sm:$0xff]   ;;  %v2945_v46 = vrot.slane %v2944_v29, 4 }
 0x1ed   : > { %v2752_v21 = vsel %vm6073_vm3, %v2747_v44, %v7825_v38  ;;  %2767 = vst [vmem:[#allocation3 + $0xe0] sm:$0xf] %v2738_v52  ;;  %v7829_v37 = vld [vmem:[#allocation8_spill] sm:$0xff]  ;;  %v2959_v14 = vrot.slane %v2958_v7, 4  ;;  %v5795_v57 = vld [vmem:[#allocation3 + $0x54] ss:$36 sps:$4 sm:$0xff]   ;;  %5433 = vmatprep.subr.bf16.mxu1 %v5804_v12  ;;  %5471 = vmatprep.subr.bf16.mxu0 %v5807_v2 }
 0x1ee   : > { %v3093_v45 = vor.u32 %v7828_v40, %v7826_v6  ;;  %2768 = vst [vmem:[#allocation3 + $0x104] sm:$0xf] %v2752_v21  ;;  %v2875_v20 = vsel %vm6098_vm5, %v7829_v37, %v2874_v36  ;;  %v7830_v17 = vld [vmem:[#allocation12_spill] sm:$0xff]  ;;  %v7832_v8 = vld [vmem:[#allocation43_spill] sm:$0xff]  ;;  %v7835_v58 = vld [vmem:[#allocation41_spill] sm:$0xff]  ;;  %4267 = vmatprep.mubr.bf16.mxu0 %v5795_v57  ;;  %v3132_v37 = vor.u32 %v7845_v49, %v7076_v4  ;;  %v7331_v4 = vrot.slane %v3291_v22, 4 }
 0x1ef   : > { %v2888_v18 = vsel %vm6098_vm5, %v7830_v17, %v2887_v61  ;;  %2903 = vst [vmem:[#allocation3 + $0xe4] sm:$0xf] %v2875_v20  ;;  %v7831_v30 = vld [vmem:[#allocation16_spill] sm:$0xff]  ;;  %v7836_v56 = vld [vmem:[#allocation42_spill] sm:$0xff]  ;;  %v3294_v61 = vshll.u32 %v7241_v31, 16  ;;  %v7837_v29 = vld [vmem:[#allocation13_spill] sm:$0xff] }
 0x1f0   : > { %2904 = vst [vmem:[#allocation3 + $0x108] sm:$0xf] %v2888_v18  ;;  %v3094_v10 = vsel %vm6098_vm5, %v7831_v30, %v3093_v45  ;;  %v7833_v41 = vld [vmem:[#allocation40_spill] sm:$0xff]  ;;  %v2972_v36 = vor.u32 %v7836_v56, %v7835_v58  ;;  %v5801_v33 = vld [vmem:[#allocation3 + $0x94] ss:$36 sps:$4 sm:$0xff]   ;;  %v2950_v26 = vsel %vm6073_vm3, %v2945_v46, %v7837_v29  ;;  %v7839_v31 = vld [vmem:[#allocation49_spill] sm:$0xff]  ;;  %v3000_v46 = vor.u32 %v7058_v63, %v7056_v13 }
 0x1f1   : > { %v7834_v44 = vshll.u32 %v7833_v41, 16  ;;  %v5810_v34 = vld [vmem:[%s7711_s3 + $0x1a8] sm:$0xff]   ;;  %3194 = vst [vmem:[#allocation3 + $0x18] sm:$0xf] %v3094_v10  ;;  %v5806_v42 = vld [vmem:[%s7711_s3 + $0x120] sm:$0xff]   ;;  %v7842_v6 = vld [vmem:[#allocation51_spill] sm:$0xff]  ;;  %4210 = vmatprep.mubr.bf16.mxu1 %v5801_v33 }
 0x1f2   : > { %v7838_v25 = vld [vmem:[#allocation14_spill] sm:$0xff]  ;;  %3057 = vst [vmem:[#allocation3 + $0x14] sm:$0xf] %v2950_v26  ;;  %v7841_v60 = vld [vmem:[#allocation17_spill] sm:$0xff]  ;;  %v2973_v21 = vrot.slane %v2972_v36, 4  ;;  %v7843_v39 = vld [vmem:[#allocation48_spill] sm:$0xff]  ;;  %5472 = vmatpush3.bf16.msra.mxu0 %v5810_v34  ;;  %5434 = vmatpush3.bf16.msra.mxu1 %v5806_v42 }
 0x1f3   : > { %v3106_v32 = vor.u32 %v7834_v44, %v7832_v8  ;;  %v2964_v7 = vsel %vm6073_vm3, %v2959_v14, %v7838_v25  ;;  %v7840_v55 = vld [vmem:[#allocation50_spill] sm:$0xff]  ;;  %v7844_v40 = vshll.u32 %v7843_v39, 16  ;;  %v5811_v20 = vld [vmem:[%s7711_s3 + $0x158] sm:$0xff]   ;;  %v5813_v17 = vld [vmem:[%s7711_s3 + $0x1e0] sm:$0xff]   ;;  %v3014_v14 = vor.u32 %v7161_v3, %v7159_v0 }
 0x1f4   : > { %v2986_v52 = vor.u32 %v7840_v55, %v7839_v31  ;;  %v3387_v51 = vld [vmem:[#allocation3 + $0xb4] sm:$0xff]  ;;  %3058 = vst [vmem:[#allocation3 + $0x38] sm:$0xf] %v2964_v7  ;;  %v5808_v57 = vld [vmem:[#allocation3 + $0x9c] ss:$36 sps:$4 sm:$0xff]   ;;  %v7847_v8 = vld [vmem:[#allocation21_spill] sm:$0xff]  ;;  %5435 = vmatprep.subr.bf16.mxu1 %v5811_v20  ;;  %5473 = vmatprep.subr.bf16.mxu0 %v5813_v17 }
 0x1f5   : > { %v5805_v5 = vld [vmem:[#allocation3 + $0x50] ss:$36 sps:$4 sm:$0xff]   ;;  %v3107_v38 = vsel %vm6098_vm5, %v7841_v60, %v3106_v32  ;;  %v3119_v45 = vor.u32 %v7844_v40, %v7842_v6  ;;  %v7846_v30 = vld [vmem:[#allocation19_spill] sm:$0xff]  ;;  %v5816_v3 = vld [vmem:[%s7711_s3 + $0x1a0] sm:$0xff]   ;;  %v3001_v2 = vrot.slane %v3000_v46, 4  ;;  %v3015_v22 = vrot.slane %v3014_v14, 4 }
 0x1f6   : > { %3195 = vst [vmem:[#allocation3 + $0x3c] sm:$0xf] %v3107_v38  ;;  %v2987_v18 = vrot.slane %v2986_v52, 4  ;;  %v3382_v12 = vld [vmem:[#allocation3 + $0x90] sm:$0xff]  ;;  %4268 = vmatmul.mubr.bf16.gmra.mxu0 %v5805_v5  ;;  %v2978_v10 = vsel %vm6073_vm3, %v2973_v21, %v7846_v30  ;;  %v7849_v47 = vld [vmem:[#allocation20_spill] sm:$0xff]  ;;  %v3296_v41 = vrot.slane %v3294_v61, 5  ;;  %v3171_v6 = vor.u32 %v3169_v15, %v7098_v28 }
 0x1f7   : > { %v3120_v13 = vsel %vm6098_vm5, %v7847_v8, %v3119_v45  ;;  %v7848_v63 = vld [vmem:[#allocation22_spill] sm:$0xff]  ;;  %v5061_v11 = vcombine.low %v3382_v12, %v3387_v51  ;;  %3059 = vst [vmem:[#allocation3 + $0x5c] sm:$0xf] %v2978_v10  ;;  %4275 = vmatprep.mubr.bf16.mxu0 %v5808_v57  ;;  %v5812_v44 = vld [vmem:[%s7711_s3 + $0x118] sm:$0xff]   ;;  %v5817_v32 = vld [vmem:[%s7711_s3 + $0x150] sm:$0xff]   ;;  %v7364_v7 = vrot.slane %v3322_v62, 5  ;;  %5474 = vmatpush3.bf16.msra.mxu0 %v5816_v3 }
 0x1f8   : > { %v3133_v0 = vsel %vm6098_vm5, %v7848_v63, %v3132_v37  ;;  %v2992_v43 = vsel %vm6073_vm3, %v2987_v18, %v7849_v47  ;;  %3196 = vst [vmem:[#allocation3 + $0x60] sm:$0xf] %v3120_v13  ;;  %v7850_v58 = vld [vmem:[#allocation26_spill] sm:$0xff]  ;;  %v7851_v36 = vld [vmem:[#allocation68_spill] sm:$0xff]  ;;  %v7855_v26 = vld [vmem:[#allocation67_spill] sm:$0xff]  ;;  %5436 = vmatpush3.bf16.msra.mxu1 %v5812_v44  ;;  %v5153_v44 = vcombine.low %v7171_v54, %v7173_v48 }
 0x1f9   : > { %3197 = vst [vmem:[#allocation3 + $0x84] sm:$0xf] %v3133_v0  ;;  %3060 = vst [vmem:[#allocation3 + $0x80] sm:$0xf] %v2992_v43  ;;  %v3146_v56 = vsel %vm6098_vm5, %v7850_v58, %v3145_v16  ;;  %v7852_v33 = vld [vmem:[#allocation62_spill] sm:$0xff]  ;;  %v5820_v31 = vld [vmem:[%s7711_s3 + $0x1d8] sm:$0xff]   ;;  %4211 = vmatmul.mubr.bf16.gmra.mxu1 %v5061_v11  ;;  %5437 = vmatprep.subr.bf16.mxu1 %v5817_v32  ;;  %v5154_v32 = vcombine.low %v7192_v19, %v7194_v35 }
 0x1fa   : > { %v7853_v34 = vshll.u32 %v7852_v33, 16  ;;  %v7854_v61 = vld [vmem:[#allocation66_spill] sm:$0xff]  ;;  %v7856_v55 = vld [vmem:[#allocation24_spill] sm:$0xff]  ;;  %v7857_v51 = vld [vmem:[#allocation29_spill] sm:$0xff]  ;;  %3198 = vst [vmem:[#allocation3 + $0xa8] sm:$0xf] %v3146_v56  ;;  %5475 = vmatprep.subr.bf16.mxu0 %v5820_v31 }
 0x1fb   : > { %v3028_v25 = vor.u32 %v7855_v26, %v7854_v61  ;;  %v3006_v52 = vsel %vm6073_vm3, %v3001_v2, %v7856_v55  ;;  %v3020_v5 = vsel %vm6073_vm3, %v3015_v22, %v7857_v51  ;;  %v5814_v62 = vld [vmem:[#allocation3 + $0xdc] ss:$36 sps:$4 sm:$0xff]   ;;  %v7858_v60 = vld [vmem:[#allocation25_spill] sm:$0xff]  ;;  %v7864_v18 = vld [vmem:[#allocation54_spill] sm:$0xff] }
 0x1fc   : > { %v3158_v29 = vor.u32 %v7853_v34, %v7851_v36  ;;  %v5819_v42 = vld [vmem:[%s7711_s3 + $0x110] sm:$0xff]   ;;  %3061 = vst [vmem:[#allocation3 + $0xa4] sm:$0xf] %v3006_v52  ;;  %3062 = vst [vmem:[#allocation3 + $0xc8] sm:$0xf] %v3020_v5  ;;  %v7860_v40 = vld [vmem:[#allocation60_spill] sm:$0xff]  ;;  %4218 = vmatprep.mubr.bf16.mxu1 %v5814_v62 }
 0x1fd   : > { %v3029_v21 = vrot.slane %v3028_v25, 4  ;;  %v7859_v39 = vld [vmem:[#allocation59_spill] sm:$0xff]  ;;  %v5823_v24 = vld [vmem:[%s7711_s3 + $0x198] sm:$0xff]   ;;  %v7862_v37 = vld [vmem:[#allocation45_spill] sm:$0xff]  ;;  %5438 = vmatpush3.bf16.msra.mxu1 %v5819_v42 }
 0x1fe   : > { %v3159_v38 = vsel %vm6098_vm5, %v7858_v60, %v3158_v29  ;;  %v3241_v45 = vor.u32 %v7860_v40, %v7859_v39  ;;  %v7861_v49 = vld [vmem:[#allocation44_spill] sm:$0xff]  ;;  %v7863_v17 = vld [vmem:[#allocation35_spill] sm:$0xff]  ;;  %v7866_v16 = vld [vmem:[#allocation30_spill] sm:$0xff]  ;;  %5476 = vmatpush3.bf16.msra.mxu0 %v5823_v24 }
 0x1ff   : > { %3199 = vst [vmem:[#allocation3 + $0xcc] sm:$0xf] %v3159_v38  ;;  %v3255_v20 = vor.u32 %v7862_v37, %v7861_v49  ;;  %v3275_v50 = vsel %vm6073_vm3, %v7864_v18, %v7863_v17  ;;  %v7865_v15 = vld [vmem:[#allocation36_spill] sm:$0xff]  ;;  %v5818_v46 = vld [vmem:[#allocation3 + $0x98] ss:$36 sps:$4 sm:$0xff]   ;;  %v3034_v12 = vsel %vm6073_vm3, %v3029_v21, %v7866_v16  ;;  %v5824_v13 = vld [vmem:[%s7711_s3 + $0x148] sm:$0xff]  }
 0x200   : > { %v3289_v28 = vsel %vm6073_vm3, %v7089_v9, %v7865_v15  ;;  %v5826_v14 = vld [vmem:[%s7711_s3 + $0x1d0] sm:$0xff]   ;;  %v7867_v57 = vld [vmem:[#allocation32_spill] sm:$0xff]  ;;  %v3242_v10 = vrot.slane %v3241_v45, 4  ;;  %3356 = vst [vmem:[#allocation3 + $0x68] sm:$0xf] %v3275_v50  ;;  %v3297_v9 = vor.u32 %v3296_v41, %v7331_v4  ;;  %v7869_v11 = vld [vmem:[#allocation69_spill] sm:$0xff]  ;;  %v3325_v4 = vor.u32 %v7364_v7, %v7106_v1  ;;  %4276 = vmatmul.mubr.bf16.gmra.mxu0 %v5818_v46 }
 0x201   : > { %v3172_v30 = vsel %vm6098_vm5, %v7867_v57, %v3171_v6  ;;  %3357 = vst [vmem:[#allocation3 + $0x8c] sm:$0xf] %v3289_v28  ;;  %v5821_v8 = vld [vmem:[#allocation3 + $0xe4] ss:$36 sps:$4 sm:$0xff]   ;;  %v7868_v63 = vld [vmem:[#allocation31_spill] sm:$0xff]  ;;  %v3256_v27 = vrot.slane %v3255_v20, 4  ;;  %5477 = vmatprep.subr.bf16.mxu0 %v5826_v14  ;;  %5439 = vmatprep.subr.bf16.mxu1 %v5824_v13 }
 0x202   : > { %v3048_v0 = vsel %vm6073_vm3, %v3043_v23, %v7868_v63  ;;  %3063 = vst [vmem:[#allocation3 + $0xec] sm:$0xf] %v3034_v12  ;;  %3200 = vst [vmem:[#allocation3 + $0xf0] sm:$0xf] %v3172_v30  ;;  %v7870_v3 = vld [vmem:[#allocation70_spill] sm:$0xff]  ;;  %v3392_v43 = vld [vmem:[#allocation3 + $0xd8] sm:$0xff]  ;;  %4283 = vmatprep.mubr.bf16.mxu0 %v5821_v8 }
 0x203   : > { %v3311_v47 = vor.u32 %v7870_v3, %v7869_v11  ;;  %3064 = vst [vmem:[#allocation3 + $0x110] sm:$0xf] %v3048_v0  ;;  %v7871_v2 = vld [vmem:[#allocation33_spill] sm:$0xff]  ;;  %v3298_v41 = vrot.slane %v3297_v9, 4  ;;  %v5830_v1 = vld [vmem:[%s7711_s3 + $0x190] sm:$0xff]   ;;  %v7872_v58 = vld [vmem:[#allocation34_spill] sm:$0xff] }
 0x204   : > { %v3247_v22 = vsel %vm6073_vm3, %v3242_v10, %v7871_v2  ;;  %v3261_v56 = vsel %vm6073_vm3, %v3256_v27, %v7872_v58  ;;  %v3397_v33 = vld [vmem:[#allocation3 + $0xfc] sm:$0xff]  ;;  %v5825_v34 = vld [vmem:[%s7711_s3 + $0x108] sm:$0xff]   ;;  %v7873_v29 = vld [vmem:[#allocation37_spill] sm:$0xff]  ;;  %v3326_v26 = vrot.slane %v3325_v4, 4  ;;  %5478 = vmatpush3.bf16.msra.mxu0 %v5830_v1 }
 0x205   : > { %3354 = vst [vmem:[#allocation3 + $0x20] sm:$0xf] %v3247_v22  ;;  %v3312_v36 = vrot.slane %v3311_v47, 4  ;;  %3355 = vst [vmem:[#allocation3 + $0x44] sm:$0xf] %v3261_v56  ;;  %v3303_v61 = vsel %vm6073_vm3, %v3298_v41, %v7873_v29  ;;  %v5070_v25 = vcombine.low %v3392_v43, %v3397_v33  ;;  %v5831_v7 = vld [vmem:[%s7711_s3 + $0x140] sm:$0xff]   ;;  %5440 = vmatpush3.bf16.msra.mxu1 %v5825_v34 }
 0x206   : > { %v5834_v31 = vld [vmem:[%s7711_s3 + $0x1c8] sm:$0xff]   ;;  %3358 = vst [vmem:[#allocation3 + $0xb0] sm:$0xf] %v3303_v61  ;;  %v5833_v5 = vld [vmem:[%s7711_s3 + $0x100] sm:$0xff]   ;;  %v7875_v62 = vld [vmem:[#allocation39_spill] sm:$0xff]  ;;  %5441 = vmatprep.subr.bf16.mxu1 %v5831_v7 }
 0x207   : > { %v7874_v55 = vld [vmem:[#allocation38_spill] sm:$0xff]  ;;  %v3331_v42 = vsel %vm6073_vm3, %v3326_v26, %v7875_v62  ;;  %4219 = vmatmul.mubr.bf16.gmra.mxu1 %v5070_v25  ;;  %v5840_v60 = vld [vmem:[%s7711_s3 + $0x1c0] sm:$0xff]   ;;  %v5832_v38 = vld [vmem:[#allocation3 + $0xe0] ss:$36 sps:$4 sm:$0xff]   ;;  %5479 = vmatprep.subr.bf16.mxu0 %v5834_v31 }
 0x208   : > { %v3317_v52 = vsel %vm6073_vm3, %v3312_v36, %v7874_v55  ;;  %v5829_v51 = vld [vmem:[#allocation3 + $0x14] ss:$36 sps:$4 sm:$0xff]   ;;  %3360 = vst [vmem:[#allocation3 + $0xf8] sm:$0xf] %v3331_v42  ;;  %v5838_v21 = vld [vmem:[#allocation3 + $0x1c] ss:$36 sps:$4 sm:$0xff]   ;;  %4284 = vmatmul.mubr.bf16.gmra.mxu0 %v5832_v38 }
 0x209   : > { %v5835_v59 = vld [vmem:[%s7711_s3 + $0x188] sm:$0xff]   ;;  %3359 = vst [vmem:[#allocation3 + $0xd4] sm:$0xf] %v3317_v52  ;;  %4324 = vmatprep.mubr.bf16.mxu1 %v5829_v51  ;;  %v5839_v6 = vld [vmem:[%s7711_s3 + $0x238] sm:$0xff]   ;;  %4389 = vmatprep.mubr.bf16.mxu0 %v5838_v21  ;;  %v5844_v39 = vld [vmem:[%s7711_s3 + $0x230] sm:$0xff]  }
 0x20a   : > { %5480 = vmatpush3.bf16.msra.mxu0 %v5835_v59  ;;  %5442 = vmatpush3.bf16.msra.mxu1 %v5833_v5  ;;  %v5827_v40 = vld [vmem:[#allocation3 + $0x10] ss:$36 sps:$4 sm:$0xff]   ;;  %v7473_v45 = vld [vmem:[%s7712_s4 + $0x38] sm:$0xff]   ;;  %v5836_v23 = vld [vmem:[#allocation3 + $0x18] ss:$36 sps:$4 sm:$0xff]  }
 0x20b   : > { %5481 = vmatprep.subr.bf16.mxu0 %v5840_v60  ;;  %5555 = vmatprep.subr.bf16.mxu1 %v5839_v6  ;;  %v5841_v24 = vld [vmem:[#allocation3 + $0x5c] ss:$36 sps:$4 sm:$0xff]   ;;  %v5846_v37 = vld [vmem:[#allocation3 + $0x64] ss:$36 sps:$4 sm:$0xff]   ;;  %v5848_v20 = vld [vmem:[%s7711_s3 + $0x228] sm:$0xff]  }
 0x20c   : > { %v7478_v49 = vld [vmem:[%s7712_s4 + $0x30] sm:$0xff]   ;;  %v5852_v15 = vld [vmem:[%s7711_s3 + $0x220] sm:$0xff]   ;;  %v7492_v28 = vld [vmem:[%s7712_s4 + $0x28] sm:$0xff]  }
 0x20d   : > { %v3379_v17 = vld [vmem:[#allocation3 + $0x7c] sm:$0xff]  ;;  %v5850_v46 = vld [vmem:[#allocation3 + $0xa4] ss:$36 sps:$4 sm:$0xff]   ;;  %v5855_v12 = vld [vmem:[#allocation3 + $0xac] ss:$36 sps:$4 sm:$0xff]  }
 0x20e   : > { %5482 = vmatpush3.bf16.msra.mxu0 %v5843_v53  ;;  %v3374_v18 = vld [vmem:[#allocation3 + $0x58] sm:$0xff]  ;;  %v5853_v14 = vld [vmem:[#allocation3 + $0x60] ss:$36 sps:$4 sm:$0xff]   ;;  %v7498_v16 = vld [vmem:[%s7712_s4 + $0x20] sm:$0xff]  }
 0x20f   : > { %4325 = vmatmul.mubr.bf16.vlgmr.msra.gmra.mxu1 %v5827_v40  ;;  %5579 = vmatprep.subr.bf16.mxu0 %v7473_v45  ;;  %v5056_v50 = vcombine.low %v3374_v18, %v3379_v17  ;;  %v5857_v57 = vld [vmem:[%s7711_s3 + $0x218] sm:$0xff]   ;;  %v5861_v8 = vld [vmem:[%s7711_s3 + $0x210] sm:$0xff]   ;;  %v5859_v63 = vld [vmem:[#allocation3 + $0xec] ss:$36 sps:$4 sm:$0xff]  }
 0x210   : > { %5556 = vmatpush3.bf16.msra.mxu1 %v5839_v6  ;;  %4332 = vmatprep.mubr.bf16.mxu1 %v5841_v24  ;;  %v3389_v30 = vld [vmem:[#allocation3 + $0xc4] sm:$0xff]  ;;  %v5868_v27 = vld [vmem:[%s7712_s4 + $0x10] sm:$0xff]   ;;  %v5866_v3 = vld [vmem:[%s7711_s3 + $0x208] sm:$0xff]  }
 0x211   : > { %5557 = vmatprep.subr.bf16.mxu1 %v5844_v39  ;;  %4390 = vmatmul.mubr.bf16.vlgmr.msra.gmra.mxu0 %v5836_v23  ;;  %v3384_v10 = vld [vmem:[#allocation3 + $0xa0] sm:$0xff]  ;;  %v5862_v0 = vld [vmem:[#allocation3 + $0xa8] ss:$36 sps:$4 sm:$0xff]   ;;  %v5864_v11 = vld [vmem:[#allocation3 + $0xf4] ss:$36 sps:$4 sm:$0xff]  }
 0x212   : > { %4397 = vmatprep.mubr.bf16.mxu0 %v5846_v37  ;;  %5580 = vmatpush3.bf16.msra.mxu0 %v7473_v45  ;;  %v5065_v9 = vcombine.low %v3384_v10, %v3389_v30  ;;  %v5863_v13 = vld [vmem:[%s7712_s4 + $0x18] sm:$0xff]   ;;  %v5867_v47 = vld [vmem:[#allocation3 + $0xe8] ss:$36 sps:$4 sm:$0xff]   ;;  %v5872_v43 = vld [vmem:[%s7712_s4 + $0x8] sm:$0xff]  }
 0x213   : > { %5581 = vmatprep.subr.bf16.mxu0 %v7478_v49  ;;  %v5870_v4 = vld [vmem:[%s7711_s3 + $0x200] sm:$0xff]   ;;  %v5869_v2 = vld [vmem:[#allocation3 + $0x20] ss:$36 sps:$4 sm:$0xff]   ;;  %v5871_v22 = vld [vmem:[#allocation3 + $0xf0] ss:$36 sps:$4 sm:$0xff]  }
 0x214   : > { %5558 = vmatpush3.bf16.msra.mxu1 %v5844_v39  ;;  %v5874_v41 = vld [vmem:[%s7712_s4] sm:$0xff]   ;;  %v7876_v1 = vld [vmem:[#allocation18_spill] sm:$0xff]  ;;  %v7877_v58 = vld [vmem:[#allocation23_spill] sm:$0xff] }
 0x215   : > { %5559 = vmatprep.subr.bf16.mxu1 %v5848_v20  ;;  %v7878_v56 = vcombine.low %v7876_v1, %v7877_v58  ;;  %v5873_v36 = vld [vmem:[#allocation3 + $0x68] ss:$36 sps:$4 sm:$0xff]   ;;  %v5875_v33 = vld [vmem:[#allocation3 + $0xb0] ss:$36 sps:$4 sm:$0xff]   ;;  %v7879_v34 = vld [vmem:[#allocation27_spill] sm:$0xff] }
 0x216   : > { %5582 = vmatpush3.bf16.msra.mxu0 %v7478_v49  ;;  %v7880_v29 = vld [vmem:[#allocation28_spill] sm:$0xff]  ;;  %v5876_v26 = vld [vmem:[#allocation3 + $0xf8] ss:$36 sps:$4 sm:$0xff]  }
 0x217   : > { %4333 = vmatmul.mubr.bf16.gmra.mxu1 %v5056_v50  ;;  %5583 = vmatprep.subr.bf16.mxu0 %v7492_v28  ;;  %v7881_v61 = vcombine.low %v7879_v34, %v7880_v29 }
 0x218   : > { %5560 = vmatpush3.bf16.msra.mxu1 %v5848_v20  ;;  %4340 = vmatprep.mubr.bf16.mxu1 %v5850_v46 }
 0x219   : > { %5561 = vmatprep.subr.bf16.mxu1 %v5852_v15  ;;  %4398 = vmatmul.mubr.bf16.gmra.mxu0 %v5853_v14 }
 0x21a   : > { %4405 = vmatprep.mubr.bf16.mxu0 %v5855_v12  ;;  %5584 = vmatpush3.bf16.msra.mxu0 %v7492_v28 }
 0x21b   : > { %5585 = vmatprep.subr.bf16.mxu0 %v7498_v16 }
 0x21c   : > { %5562 = vmatpush3.bf16.msra.mxu1 %v5852_v15 }
 0x21d   : > { %5563 = vmatprep.subr.bf16.mxu1 %v5857_v57 }
 0x21e   : > { %5586 = vmatpush3.bf16.msra.mxu0 %v7498_v16 }
 0x21f   : > { %4341 = vmatmul.mubr.bf16.gmra.mxu1 %v5065_v9  ;;  %5587 = vmatprep.subr.bf16.mxu0 %v5863_v13 }
 0x220   : > { %5564 = vmatpush3.bf16.msra.mxu1 %v5857_v57  ;;  %4348 = vmatprep.mubr.bf16.mxu1 %v5859_v63 }
 0x221   : > { %5565 = vmatprep.subr.bf16.mxu1 %v5861_v8  ;;  %4406 = vmatmul.mubr.bf16.gmra.mxu0 %v5862_v0 }
 0x222   : > { %4413 = vmatprep.mubr.bf16.mxu0 %v5864_v11  ;;  %5588 = vmatpush3.bf16.msra.mxu0 %v5863_v13 }
 0x223   : > { %5589 = vmatprep.subr.bf16.mxu0 %v5868_v27 }
 0x224   : > { %5566 = vmatpush3.bf16.msra.mxu1 %v5861_v8 }
 0x225   : > { %5567 = vmatprep.subr.bf16.mxu1 %v5866_v3 }
 0x226   : > { %5590 = vmatpush3.bf16.msra.mxu0 %v5868_v27 }
 0x227   : > { %4349 = vmatmul.mubr.bf16.gmra.mxu1 %v5867_v47  ;;  %5591 = vmatprep.subr.bf16.mxu0 %v5872_v43 }
 0x228   : > { %5568 = vmatpush3.bf16.msra.mxu1 %v5866_v3  ;;  %5571 = vmatprep.mubr.bf16.mxu1 %v5869_v2 }
 0x229   : > { %5569 = vmatprep.subr.bf16.mxu1 %v5870_v4  ;;  %4414 = vmatmul.mubr.bf16.gmra.mxu0 %v5871_v22 }
 0x22a   : > { %5592 = vmatpush3.bf16.msra.mxu0 %v5872_v43  ;;  %5595 = vmatprep.mubr.bf16.mxu0 %v7878_v56 }
 0x22b   : > { %5593 = vmatprep.subr.bf16.mxu0 %v5874_v41 }
 0x22c   : > { %5570 = vmatpush3.bf16.msra.mxu1 %v5870_v4 }
 0x22d   : > { %5603 = vmatprep.subr.bf16.mxu1 %v7473_v45 }
 0x22e   : > { %5594 = vmatpush3.bf16.msra.mxu0 %v5874_v41 }
 0x22f   : > { %5572 = vmatmul.mubr.bf16.vlgmr.msra.gmra.mxu1 %v5873_v36 }
 0x230   : > { %5611 = vmatpush3.bf16.msra.mxu1 %v7473_v45  ;;  %5575 = vmatprep.mubr.bf16.mxu1 %v5875_v33 }
 0x231   : > { %5604 = vmatprep.subr.bf16.mxu1 %v7478_v49  ;;  %5596 = vmatmul.mubr.bf16.vlgmr.msra.gmra.mxu0 %v7881_v61 }
 0x234   : > { %5612 = vmatpush3.bf16.msra.mxu1 %v7478_v49 }
 0x235   : > { %5605 = vmatprep.subr.bf16.mxu1 %v7492_v28 }
 0x237   : > { %5576 = vmatmul.mubr.bf16.gmra.mxu1 %v5876_v26 }
 0x238   : > { %5613 = vmatpush3.bf16.msra.mxu1 %v7492_v28  ;;  %5599 = vmatprep.mubr.bf16.mxu1 %v5153_v44 }
 0x239   : > { %5606 = vmatprep.subr.bf16.mxu1 %v7498_v16 }
 0x23c   : > { %5614 = vmatpush3.bf16.msra.mxu1 %v7498_v16 }
 0x23d   : > { %5607 = vmatprep.subr.bf16.mxu1 %v5863_v13 }
 0x240   : > { %5615 = vmatpush3.bf16.msra.mxu1 %v5863_v13 }
 0x241   : > { %5608 = vmatprep.subr.bf16.mxu1 %v5868_v27 }
 0x244   : > { %5616 = vmatpush3.bf16.msra.mxu1 %v5868_v27 }
 0x245   : > { %5609 = vmatprep.subr.bf16.mxu1 %v5872_v43 }
 0x248   : > { %5617 = vmatpush3.bf16.msra.mxu1 %v5872_v43 }
 0x249   : > { %5610 = vmatprep.subr.bf16.mxu1 %v5874_v41 }
 0x24c   : > { %5618 = vmatpush3.bf16.msra.mxu1 %v5874_v41 }
 0x24f   : > { %5600 = vmatmul.mubr.bf16.vlgmr.msra.gmra.mxu1 %v5154_v32 }
 0x29b   : > { %v7548_v25 = vpop.f32.mrf.mxu1 }
 0x29d   : > { %v7550_v54 = vpop.f32.mrf.mxu1 }
 0x29f   : > { %v5403_v48 = vpop.f32.mrf.mxu0  ;;  %v7552_v44 = vpop.f32.mrf.mxu1 }
 0x2a1   : > { %v5404_v7 = vpop.f32.mrf.mxu0  ;;  %v7554_v31 = vpop.f32.mrf.mxu1 }
 0x2a3   : > { %v7556_v55 = vpop.f32.mrf.mxu0  ;;  %v5369_v52 = vpop.f32.mrf.mxu1 }
 0x2a5   : > { %v7558_v51 = vpop.f32.mrf.mxu0  ;;  %v5370_v5 = vpop.f32.mrf.mxu1 }
 0x2a7   : > { %v7560_v62 = vpop.f32.mrf.mxu1 }
 0x2a9   : > { %v7562_v35 = vpop.f32.mrf.mxu1 }
 0x2b6   : > { %v5409_v59 = vpop.f32.mrf.mxu0 }
 0x2b8   : > { %v5410_v19 = vpop.f32.mrf.mxu0 }
 0x2b9   : > { %v5375_v42 = vpop.f32.mrf.mxu1  ;;  %v5411_v29 = vadd.f32 %v5410_v19, %v5409_v59  ;;  %v5408_v59 = vadd.f32 %v7558_v51, %v7556_v55 }
 0x2ba   : > { %v5412_v32 = vpop.f32.mrf.mxu0 }
 0x2bb   : > { %v5376_v38 = vpop.f32.mrf.mxu1 }
 0x2bc   : > { %v5413_v60 = vpop.f32.mrf.mxu0  ;;  %v5377_v21 = vadd.f32 %v5376_v38, %v5375_v42  ;;  %v5405_v42 = vadd.f32 %v5404_v7, %v5403_v48  ;;  %v5371_v38 = vadd.f32 %v5370_v5, %v5369_v52  ;;  %v5374_v48 = vadd.f32 %v7562_v35, %v7560_v62 }
 0x2bd   : > { %v5378_v53 = vpop.f32.mrf.mxu1 }
 0x2bf   : > { %v5379_v40 = vpop.f32.mrf.mxu1 }
 0x2c0   : > { %v5415_v6 = vpop.f32.mrf.mxu0  ;;  %v5380_v24 = vadd.f32 %v5379_v40, %v5378_v53  ;;  %v5414_v53 = vadd.f32 %v5413_v60, %v5412_v32  ;;  %v5365_v40 = vadd.f32 %v7550_v54, %v7548_v25  ;;  %v5368_v25 = vadd.f32 %v7554_v31, %v7552_v44  ;;  %v7627_v44 = vld [vmem:[%s7713_s5] ss:$0 sm:$0xff] }
 0x2c2   : > { %v5416_v39 = vpop.f32.mrf.mxu0  ;;  %v4262_v52 = vadd.f32 %v5405_v42, %v5365_v40  ;;  %v4273_v54 = vadd.f32 %v5414_v53, %v5374_v48  ;;  %v4265_v62 = vadd.f32 %v5408_v59, %v5368_v25 }
 0x2c3   : > { %v5417_v45 = vadd.f32 %v5416_v39, %v5415_v6 }
 0x2c4   : > { %v5418_v23 = vpop.f32.mrf.mxu0 }
 0x2c5   : > { %v7564_v49 = vadd.f32 %v5417_v45, %v5377_v21  ;;  %v4270_v45 = vadd.f32 %v5411_v29, %v5371_v38 }
 0x2c6   : > { %v5419_v20 = vpop.f32.mrf.mxu0 }
 0x2c7   : > { %v7566_v37 = vpop.f32.mrf.mxu1  ;;  %v5420_v18 = vadd.f32 %v5419_v20, %v5418_v23 }
 0x2c8   : > { %v7570_v50 = vpop.f32.mrf.mxu0 }
 0x2c9   : > { %v7568_v17 = vpop.f32.mrf.mxu1  ;;  %v7572_v15 = vadd.f32 %v5420_v18, %v5380_v24 }
 0x2ca   : > { %v7576_v46 = vpop.f32.mrf.mxu0 }
 0x2cb   : > { %v7574_v28 = vpop.f32.mrf.mxu1 }
 0x2cc   : > { %v7580_v16 = vpop.f32.mrf.mxu0 }
 0x2cd   : > { %v7578_v14 = vpop.f32.mrf.mxu1 }
 0x2ce   : > { %v7582_v57 = vpop.f32.mrf.mxu0 }
 0x2cf   : > { %v5443_v12 = vpop.f32.mrf.mxu1 }
 0x2d1   : > { %v5444_v30 = vpop.f32.mrf.mxu1  ;;  %v5483_v10 = vpop.f32.mrf.mxu0 }
 0x2d2   : > { %v5445_v24 = vadd.f32 %v5444_v30, %v5443_v12 }
 0x2d3   : > { %v5446_v9 = vpop.f32.mrf.mxu1  ;;  %v5484_v8 = vpop.f32.mrf.mxu0 }
 0x2d4   : > { %v5485_v5 = vadd.f32 %v5484_v8, %v5483_v10  ;;  %v4327_v12 = vadd.f32 %v5445_v24, %v4262_v52 }
 0x2d5   : > { %v5447_v13 = vpop.f32.mrf.mxu1  ;;  %v5486_v63 = vpop.f32.mrf.mxu0 }
 0x2d6   : > { %v5448_v30 = vadd.f32 %v5447_v13, %v5446_v9 }
 0x2d7   : > { %v5449_v0 = vpop.f32.mrf.mxu1  ;;  %v5487_v27 = vpop.f32.mrf.mxu0 }
 0x2d8   : > { %v4330_v31 = vadd.f32 %v5448_v30, %v4265_v62 }
 0x2d9   : > { %v5450_v11 = vpop.f32.mrf.mxu1  ;;  %v5489_v3 = vpop.f32.mrf.mxu0 }
 0x2da   : > { %v5451_v21 = vadd.f32 %v5450_v11, %v5449_v0  ;;  %v5488_v11 = vadd.f32 %v5487_v27, %v5486_v63 }
 0x2db   : > { %v5452_v47 = vpop.f32.mrf.mxu1  ;;  %v5490_v4 = vpop.f32.mrf.mxu0 }
 0x2dc   : > { %v5491_v23 = vadd.f32 %v5490_v4, %v5489_v3  ;;  %v4335_v19 = vadd.f32 %v5451_v21, %v4270_v45  ;;  %v4392_v3 = vadd.f32 %v5485_v5, %v4327_v12  ;;  %v4395_v63 = vadd.f32 %v5488_v11, %v4330_v31 }
 0x2dd   : > { %v5453_v43 = vpop.f32.mrf.mxu1  ;;  %v5492_v2 = vpop.f32.mrf.mxu0 }
 0x2de   : > { %v5454_v32 = vadd.f32 %v5453_v43, %v5452_v47  ;;  %v4400_v51 = vadd.f32 %v5491_v23, %v4335_v19 }
 0x2df   : > { %v7584_v22 = vpop.f32.mrf.mxu1  ;;  %v5493_v41 = vpop.f32.mrf.mxu0 }
 0x2e0   : > { %v5494_v55 = vadd.f32 %v5493_v41, %v5492_v2  ;;  %v4338_v10 = vadd.f32 %v5454_v32, %v4273_v54 }
 0x2e1   : > { %v7586_v1 = vpop.f32.mrf.mxu1  ;;  %v7588_v58 = vpop.f32.mrf.mxu0 }
 0x2e2   : > { %v4403_v9 = vadd.f32 %v5494_v55, %v4338_v10 }
 0x2e3   : > { %v7590_v56 = vpop.f32.mrf.mxu1  ;;  %v7592_v36 = vpop.f32.mrf.mxu0 }
 0x2e5   : > { %v7594_v33 = vpop.f32.mrf.mxu1  ;;  %v7596_v34 = vpop.f32.mrf.mxu0 }
 0x2e7   : > { %v7598_v61 = vpop.f32.mrf.mxu1  ;;  %v7600_v26 = vpop.f32.mrf.mxu0 }
 0x2e9   : > { %v7602_v6 = vpop.f32.mrf.mxu1  ;;  %v7604_v39 = vpop.f32.mrf.mxu0 }
 0x2eb   : > { %v7608_v20 = vpop.f32.mrf.mxu1  ;;  %v7614_v7 = vpop.f32.mrf.mxu0 }
 0x2ed   : > { %v7616_v60 = vpop.f32.mrf.mxu1  ;;  %v7620_v18 = vpop.f32.mrf.mxu0 }
 0x2ef   : > { %v5573_v0 = vpop.f32.mrf.mxu1  ;;  %v7622_v35 = vpop.f32.mrf.mxu0 }
 0x2f0   : > { %v4465_v8 = vadd.f32 %v5573_v0, %v4400_v51 }
 0x2f1   : > { %v4456_v47 = vpop.f32.mrf.mxu1  ;;  %v5597_v4 = vpop.f32.mrf.mxu0 }
 0x2f2   : > { %v4457_v43 = vadd.f32 %v4456_v47, %v4392_v3  ;;  %v4602_v2 = vadd.f32 %v5597_v4, %v4465_v8 }
 0x2f3   : > { %v5574_v13 = vpop.f32.mrf.mxu1  ;;  %v4593_v41 = vpop.f32.mrf.mxu0 }
 0x2f4   : > { %v4468_v29 = vadd.f32 %v5574_v13, %v4403_v9  ;;  %v7630_v42 = vadd.f32 %v7627_v44, %v4602_v2  ;;  %v4594_v38 = vadd.f32 %v4593_v41, %v4457_v43  ;;  %v5423_v9 = vadd.f32 %v7576_v46, %v7570_v50 }
 0x2f5   : > { %v4459_v27 = vpop.f32.mrf.mxu1  ;;  %v5598_v21 = vpop.f32.mrf.mxu0  ;;  %v5383_v41 = vadd.f32 %v7568_v17, %v7566_v37  ;;  %v5503_v50 = vadd.f32 %v7614_v7, %v7604_v39  ;;  %v5386_v46 = vadd.f32 %v7578_v14, %v7574_v28  ;;  %v5497_v37 = vadd.f32 %v7592_v36, %v7588_v58 }
 0x2f6   : > { %v4641_v53 = vmul.f32 %v7630_v42, %v7630_v42  ;;  %v4460_v40 = vadd.f32 %v4459_v27, %v4395_v63  ;;  %v7635_v45 = vadd.f32 %v7627_v44, %v4594_v38  ;;  %v4605_v24 = vadd.f32 %v5598_v21, %v4468_v29 }
 0x2f7   : > { %v4596_v23 = vpop.f32.mrf.mxu0  ;;  %v5577_v3 = vpop.f32.mrf.mxu1  ;;  %v5463_v29 = vadd.f32 %v7602_v6, %v7598_v61  ;;  %v5426_v63 = vadd.f32 %v7582_v57, %v7580_v16  ;;  %v4286_v27 = vadd.f32 %v5423_v9, %v5383_v41  ;;  %v5457_v38 = vadd.f32 %v7586_v1, %v7584_v22 }
 0x2f8   : > { %v4649_v59 = vmul.f32 %v4641_v53, %v7630_v42  ;;  %v4639_v48 = vmul.f32 %v7635_v45, %v7635_v45  ;;  %v7641_v52 = vadd.f32 %v7627_v44, %v4605_v24  ;;  %v4597_v5 = vadd.f32 %v4596_v23, %v4460_v40 }
 0x2f9   : > { %v4472_v13 = vpop.f32.mrf.mxu1  ;;  %v4351_v17 = vadd.f32 %v5463_v29, %v4286_v27  ;;  %v5466_v16 = vadd.f32 %v7616_v60, %v7608_v20  ;;  %v4289_v57 = vadd.f32 %v5426_v63, %v5386_v46  ;;  %v4343_v61 = vadd.f32 %v5457_v38, %v7564_v49 }
 0x2fa   : > { %v4657_v19 = vmul.f32 0.044715, %v4649_v59  ;;  %v4647_v32 = vmul.f32 %v4639_v48, %v7635_v45  ;;  %v4642_v25 = vmul.f32 %v7641_v52, %v7641_v52  ;;  %v7647_v54 = vadd.f32 %v7627_v44, %v4597_v5 }
 0x2fb   : > { %v5578_v21 = vpop.f32.mrf.mxu1  ;;  %v5460_v22 = vadd.f32 %v7594_v33, %v7590_v56  ;;  %v5506_v1 = vadd.f32 %v7622_v35, %v7620_v18  ;;  %v4416_v6 = vadd.f32 %v5503_v50, %v4351_v17  ;;  %v5500_v39 = vadd.f32 %v7600_v26, %v7596_v34 }
 0x2fc   : > { %v4665_v12 = vadd.f32 %v4657_v19, %v7630_v42  ;;  %v4655_v30 = vmul.f32 0.044715, %v4647_v32  ;;  %v4650_v55 = vmul.f32 %v4642_v25, %v7641_v52  ;;  %v4640_v51 = vmul.f32 %v7647_v54, %v7647_v54 }
 0x2fd   : > { %v4475_v28 = vpop.f32.mrf.mxu1  ;;  %v4354_v58 = vadd.f32 %v5466_v16, %v4289_v57  ;;  %v4481_v36 = vadd.f32 %v5577_v3, %v4416_v6  ;;  %v4408_v7 = vadd.f32 %v5497_v37, %v4343_v61  ;;  %v4346_v49 = vadd.f32 %v5460_v22, %v7572_v15 }
 0x2fe   : > { %v4673_v0 = vmul.f32 0.7978846, %v4665_v12  ;;  %v4663_v62 = vadd.f32 %v4655_v30, %v7635_v45  ;;  %v4658_v11 = vmul.f32 0.044715, %v4650_v55  ;;  %v4648_v10 = vmul.f32 %v4640_v51, %v7647_v54 }
 0x2ff   : > { %v4473_v40 = vadd.f32 %v4472_v13, %v4408_v7  ;;  %v4419_v56 = vadd.f32 %v5506_v1, %v4354_v58  ;;  %v4411_v26 = vadd.f32 %v5500_v39, %v4346_v49 }
 0x300   : > { %5893 = vtanh.f32 %v4673_v0  ;;  %v4671_v8 = vmul.f32 0.7978846, %v4663_v62  ;;  %v4666_v47 = vadd.f32 %v4658_v11, %v7641_v52  ;;  %v4656_v4 = vmul.f32 0.044715, %v4648_v10 }
 0x301   : > { %v4484_v34 = vadd.f32 %v5578_v21, %v4419_v56  ;;  %v4476_v12 = vadd.f32 %v4475_v28, %v4411_v26 }
 0x302   : > { %5895 = vtanh.f32 %v4671_v8  ;;  %v4674_v31 = vmul.f32 0.7978846, %v4666_v47  ;;  %v4664_v43 = vadd.f32 %v4656_v4, %v7647_v54 }
 0x304   : > { %5897 = vtanh.f32 %v4674_v31  ;;  %v4672_v2 = vmul.f32 0.7978846, %v4664_v43 }
 0x306   : > { %5899 = vtanh.f32 %v4672_v2 }
 0x30d   : > { %v5894_v14 = vpop.eup %5893 }
 0x30e   : > { %v4689_v20 = vadd.f32 1.0, %v5894_v14 }
 0x30f   : > { %v5601_v60 = vpop.f32.mrf.mxu1  ;;  %v5896_v53 = vpop.eup %5895 }
 0x310   : > { %v4618_v33 = vadd.f32 %v5601_v60, %v4481_v36  ;;  %v4697_v24 = vmul.f32 0.5, %v4689_v20  ;;  %v4687_v18 = vadd.f32 1.0, %v5896_v53 }
 0x311   : > { %v4609_v35 = vpop.f32.mrf.mxu1  ;;  %v5898_v23 = vpop.eup %5897 }
 0x312   : > { %v4637_v59 = vadd.f32 %v7627_v44, %v4618_v33  ;;  %v4610_v48 = vadd.f32 %v4609_v35, %v4473_v40  ;;  %v4705_v15 = vmul.f32 %v4697_v24, %v7630_v42  ;;  %v4695_v5 = vmul.f32 0.5, %v4687_v18 }
 0x313   : > { %v4690_v19 = vadd.f32 1.0, %v5898_v23  ;;  %v5602_v32 = vpop.f32.mrf.mxu1  ;;  %v5900_v25 = vpop.eup %5899 }
 0x314   : > { %v4645_v30 = vmul.f32 %v4637_v59, %v4637_v59  ;;  %v4635_v55 = vadd.f32 %v7627_v44, %v4610_v48  ;;  %v4621_v51 = vadd.f32 %v5602_v32, %v4484_v34  ;;  %4713 = vst [vmem:[%s7687_s9 + $0x10] sm:$0xff] %v4705_v15  ;;  %v4703_v0 = vmul.f32 %v4695_v5, %v7635_v45 }
 0x315   : > { %v4698_v62 = vmul.f32 0.5, %v4690_v19  ;;  %v4688_v11 = vadd.f32 1.0, %v5900_v25  ;;  %v4612_v10 = vpop.f32.mrf.mxu1 }
 0x316   : > { %v4653_v8 = vmul.f32 %v4645_v30, %v4637_v59  ;;  %v4643_v3 = vmul.f32 %v4635_v55, %v4635_v55  ;;  %v4638_v42 = vadd.f32 %v7627_v44, %v4621_v51  ;;  %v4613_v47 = vadd.f32 %v4612_v10, %v4476_v12  ;;  %4711 = vst [vmem:[%s7687_s9] sm:$0xff] %v4703_v0 }
 0x317   : > { %v4706_v4 = vmul.f32 %v4698_v62, %v7641_v52  ;;  %v4696_v31 = vmul.f32 0.5, %v4688_v11 }
 0x318   : > { %v4661_v43 = vmul.f32 0.044715, %v4653_v8  ;;  %v4651_v9 = vmul.f32 %v4643_v3, %v4635_v55  ;;  %v4646_v13 = vmul.f32 %v4638_v42, %v4638_v42  ;;  %v4636_v2 = vadd.f32 %v7627_v44, %v4613_v47 }
 0x319   : > { %4714 = vst [vmem:[%s7687_s9 + $0x18] sm:$0xff] %v4706_v4  ;;  %v4704_v45 = vmul.f32 %v4696_v31, %v7647_v54 }
 0x31a   : > { %v4669_v41 = vadd.f32 %v4661_v43, %v4637_v59  ;;  %v4659_v29 = vmul.f32 0.044715, %v4651_v9  ;;  %v4654_v63 = vmul.f32 %v4646_v13, %v4638_v42  ;;  %v4644_v27 = vmul.f32 %v4636_v2, %v4636_v2 }
 0x31b   : > { %4712 = vst [vmem:[%s7687_s9 + $0x8] sm:$0xff] %v4704_v45 }
 0x31c   : > { %v4677_v38 = vmul.f32 0.7978846, %v4669_v41  ;;  %v4667_v50 = vadd.f32 %v4659_v29, %v4635_v55  ;;  %v4662_v46 = vmul.f32 0.044715, %v4654_v63  ;;  %v4652_v21 = vmul.f32 %v4644_v27, %v4636_v2 }
 0x31e   : > { %5901 = vtanh.f32 %v4677_v38  ;;  %v4675_v52 = vmul.f32 0.7978846, %v4667_v50  ;;  %v4670_v37 = vadd.f32 %v4662_v46, %v4638_v42  ;;  %v4660_v17 = vmul.f32 0.044715, %v4652_v21 }
 0x320   : > { %5903 = vtanh.f32 %v4675_v52  ;;  %v4678_v16 = vmul.f32 0.7978846, %v4670_v37  ;;  %v4668_v44 = vadd.f32 %v4660_v17, %v4636_v2 }
 0x322   : > { %5905 = vtanh.f32 %v4678_v16  ;;  %v4676_v57 = vmul.f32 0.7978846, %v4668_v44 }
 0x324   : > { %5907 = vtanh.f32 %v4676_v57 }
 0x32b   : > { %v5902_v54 = vpop.eup %5901 }
 0x32c   : > { %v4693_v61 = vadd.f32 1.0, %v5902_v54 }
 0x32d   : > { %v5904_v22 = vpop.eup %5903 }
 0x32e   : > { %v4701_v1 = vmul.f32 0.5, %v4693_v61  ;;  %v4691_v6 = vadd.f32 1.0, %v5904_v22 }
 0x32f   : > { %v5906_v28 = vpop.eup %5905 }
 0x330   : > { %v4709_v14 = vmul.f32 %v4701_v1, %v4637_v59  ;;  %v4699_v39 = vmul.f32 0.5, %v4691_v6  ;;  %v4694_v58 = vadd.f32 1.0, %v5906_v28 }
 0x331   : > { %v5908_v36 = vpop.eup %5907 }
 0x332   : > { %4717 = vst [vmem:[%s7687_s9 + $0x30] sm:$0xff] %v4709_v14  ;;  %v4707_v7 = vmul.f32 %v4699_v39, %v4635_v55  ;;  %v4702_v20 = vmul.f32 0.5, %v4694_v58  ;;  %v4692_v60 = vadd.f32 1.0, %v5908_v36 }
 0x334   : > { %4715 = vst [vmem:[%s7687_s9 + $0x20] sm:$0xff] %v4707_v7  ;;  %v4710_v53 = vmul.f32 %v4702_v20, %v4638_v42  ;;  %v4700_v49 = vmul.f32 0.5, %v4692_v60 }
 0x336   : > { %4718 = vst [vmem:[%s7687_s9 + $0x38] sm:$0xff] %v4710_v53  ;;  %v4708_v40 = vmul.f32 %v4700_v49, %v4636_v2 }
 0x338   : > { %4716 = vst [vmem:[%s7687_s9 + $0x28] sm:$0xff] %v4708_v40 }
 0x339 PF: > { %s16_s21 = sadd.s32 1, %s5915_s21  }
 0x33a   : > { %p13_p4 = scmp.ge.s32.totalorder %s16_s21, 4  }
 0x33c   :  { %15 = sbr.rel (!%p13_p4) target bundleno = 1 (0x1), region = 83 }

</bundles_post_ra>
